<compile_context>
chip_gen: v5e
topology: v5e:2x2
jax: 0.10.0
libtpu: 0.0.40
codegen_flags: <defaults>
</compile_context>

<pallas_src>
import functools

import jax
import jax.numpy as jnp
from jax.experimental import pallas as pl
from jax.experimental.pallas import tpu as pltpu


def _round_up(x, m):
    return ((x + m - 1) // m) * m


# --------------------------- fused multi-layer LSTM kernel --------------------------- #
def make_lstm_kernel(T, Bp, Hp, num_layers):
    """Build the fused LSTM kernel body for static (T, Bp, Hp, num_layers).

    Gate layout is (i, f, o, g): one contiguous sigmoid slab [:, :3Hp] and one
    contiguous tanh slab [:, 3Hp:]. Weights are bf16; all gate math stays f32.
    """

    def kernel(*refs):
        # refs: x, (wih_t, whh_t, bias) * L, out, pre_scr, seq_scr
        x_ref = refs[0]
        w_refs = refs[1:1 + 3 * num_layers]
        out_ref = refs[1 + 3 * num_layers]
        pre_scr, seq_scr = refs[2 + 3 * num_layers:]

        h_fin = None
        for l in range(num_layers):
            wih_ref = w_refs[3 * l + 0]
            whh_ref = w_refs[3 * l + 1]
            b_ref = w_refs[3 * l + 2]

            # Input projection hoisted out of the recurrence: one big bf16 MXU matmul
            # over all T*Bp rows, bias folded in here (f32 accumulate).
            layer_in = x_ref[...] if l == 0 else seq_scr[...]        # (T*Bp, Ein) bf16
            pre_scr[...] = (
                jnp.dot(layer_in, wih_ref[...], preferred_element_type=jnp.float32)
                + b_ref[...]
            )                                                        # (T*Bp, 4Hp) f32

            last_layer = (l == num_layers - 1)
            h0 = jnp.zeros((Bp, Hp), jnp.float32)
            c0 = jnp.zeros((Bp, Hp), jnp.float32)

            def step(t, carry, _last=last_layer, _whh_ref=whh_ref):
                h_prev, c_prev = carry
                row = pl.multiple_of(t * Bp, Bp)      # sublane-aligned dynamic offset
                gates = pre_scr[pl.ds(row, Bp), :] + jnp.dot(
                    h_prev.astype(jnp.bfloat16), _whh_ref[...],
                    preferred_element_type=jnp.float32,
                )                                     # (Bp, 4Hp) f32, order (i, f, o, g)
                sig = jax.nn.sigmoid(gates[:, : 3 * Hp])   # one contiguous sigmoid slab
                i_g = sig[:, 0 * Hp:1 * Hp]
                f_g = sig[:, 1 * Hp:2 * Hp]
                o_g = sig[:, 2 * Hp:3 * Hp]
                g_g = jnp.tanh(gates[:, 3 * Hp:])          # one contiguous tanh slab

                c_new = f_g * c_prev + i_g * g_g
                h_new = o_g * jnp.tanh(c_new)
                if not _last:
                    # becomes next layer's input; last layer's sequence is never used
                    seq_scr[pl.ds(row, Bp), :] = h_new.astype(jnp.bfloat16)
                return (h_new, c_new)

            # Small static T -> fully unroll so the scheduler overlaps one step's
            # VPU/EUP gate math with the next step's MXU push; cap unroll for long T.
            h_fin, _ = jax.lax.fori_loop(
                0, T, step, (h0, c0), unroll=(True if T <= 8 else 8))

        out_ref[...] = h_fin      # last-timestep hidden state of the last layer

    return kernel


def lstm_forward(x_flat, layers, T, Bp, Hp):
    """x_flat: (T*Bp, Ep) time-major flattened embeddings (bf16). Returns (Bp, Hp) f32."""
    num_layers = len(layers)
    args = [x_flat]
    nbytes = x_flat.size * x_flat.dtype.itemsize
    for lp in layers:
        args += [lp["wih_t"], lp["whh_t"], lp["bias"]]
        nbytes += sum(a.size * a.dtype.itemsize
                      for a in (lp["wih_t"], lp["whh_t"], lp["bias"]))
    nbytes += T * Bp * 4 * Hp * 4          # pre_scr (f32)
    nbytes += T * Bp * Hp * 2              # seq_scr (bf16)
    nbytes += Bp * Hp * 4                  # output
    vmem_limit = min(128 << 20, max(32 << 20, 2 * nbytes))

    return pl.pallas_call(
        make_lstm_kernel(T, Bp, Hp, num_layers),
        out_shape=jax.ShapeDtypeStruct((Bp, Hp), jnp.float32),
        in_specs=[pl.BlockSpec(memory_space=pltpu.MemorySpace.VMEM)] * len(args),
        out_specs=pl.BlockSpec(memory_space=pltpu.MemorySpace.VMEM),
        scratch_shapes=[
            pltpu.VMEM((T * Bp, 4 * Hp), jnp.float32),   # precomputed input pre-gates
            pltpu.VMEM((T * Bp, Hp), jnp.bfloat16),      # per-layer hidden sequence
        ],
        compiler_params=pltpu.CompilerParams(vmem_limit_bytes=vmem_limit),
    )(*args)


# ----------------------- head: (BN folded) Linear, vocab-tiled ----------------------- #
def head_kernel(h_ref, w_ref, b_ref, out_ref):
    out_ref[...] = (
        jnp.dot(h_ref[...].astype(jnp.bfloat16), w_ref[...],
                preferred_element_type=jnp.float32)
        + b_ref[...]
    )


def head(h_last, w_t, b):
    """h_last: (Bp, Hp) f32; w_t: (Hp, Vp) BN-folded bf16 fc weight; b: (1, Vp) f32."""
    Bp, Hp = h_last.shape
    Vp = w_t.shape[1]
    tv = min(1024, Vp)             # lane-dense vocab tile (multiple of 128)
    while Vp % tv:
        tv //= 2

    return pl.pallas_call(
        head_kernel,
        out_shape=jax.ShapeDtypeStruct((Bp, Vp), jnp.float32),
        grid_spec=pltpu.PrefetchScalarGridSpec(
            num_scalar_prefetch=0,
            grid=(Vp // tv,),
            in_specs=[
                pl.BlockSpec((Bp, Hp), lambda j: (0, 0)),
                pl.BlockSpec((Hp, tv), lambda j: (0, j)),
                pl.BlockSpec((1, tv), lambda j: (0, j)),
            ],
            out_specs=pl.BlockSpec((Bp, tv), lambda j: (0, j)),
        ),
        compiler_params=pltpu.CompilerParams(
            dimension_semantics=("parallel",),
        ),
    )(h_last, w_t, b)


# ----------------------------------- parameters -------------------------------------- #
def init_params(key, vocab_size, embed_size, hidden_size, num_layers):
    Ep = _round_up(embed_size, 128)
    Hp = _round_up(hidden_size, 128)
    Vp = _round_up(vocab_size, 128)
    H = hidden_size

    keys = jax.random.split(key, 3 + 4 * num_layers)
    kit = iter(keys)

    params = {}

    # Embedding, feature dim zero-padded to a lane multiple.
    emb = jax.random.normal(next(kit), (vocab_size, embed_size), jnp.float32)
    params["embedding"] = jnp.pad(emb, ((0, 0), (0, Ep - embed_size)))

    bound = 1.0 / float(hidden_size) ** 0.5

    def repack_w(w, in_dim, in_dim_p):
        # w: (4H, in_dim) in PyTorch gate order (i, f, g, o)
        # -> (in_dim_p, 4Hp) in (i, f, o, g) order, each gate zero-padded to Hp; bf16.
        gates = [w[0 * H:1 * H], w[1 * H:2 * H], w[3 * H:4 * H], w[2 * H:3 * H]]
        gates = [jnp.pad(g, ((0, Hp - H), (0, in_dim_p - in_dim))) for g in gates]
        return jnp.transpose(jnp.concatenate(gates, axis=0)).astype(jnp.bfloat16)

    def repack_b(b):
        gates = [b[0 * H:1 * H], b[1 * H:2 * H], b[3 * H:4 * H], b[2 * H:3 * H]]
        gates = [jnp.pad(g, (0, Hp - H)) for g in gates]
        return jnp.concatenate(gates).reshape(1, 4 * Hp)          # f32

    layers = []
    for l in range(num_layers):
        in_dim = embed_size if l == 0 else hidden_size
        in_dim_p = Ep if l == 0 else Hp
        w_ih = jax.random.uniform(next(kit), (4 * H, in_dim), jnp.float32, -bound, bound)
        w_hh = jax.random.uniform(next(kit), (4 * H, H), jnp.float32, -bound, bound)
        b_ih = jax.random.uniform(next(kit), (4 * H,), jnp.float32, -bound, bound)
        b_hh = jax.random.uniform(next(kit), (4 * H,), jnp.float32, -bound, bound)
        layers.append(dict(
            wih_t=repack_w(w_ih, in_dim, in_dim_p),   # (in_dim_p, 4Hp) bf16
            whh_t=repack_w(w_hh, H, Hp),              # (Hp, 4Hp) bf16
            bias=repack_b(b_ih + b_hh),               # (1, 4Hp) f32
        ))
    params["lstm"] = layers

    # BatchNorm1d (eval mode) default parameters.
    gamma = jnp.ones((hidden_size,), jnp.float32)
    beta = jnp.zeros((hidden_size,), jnp.float32)
    run_mean = jnp.zeros((hidden_size,), jnp.float32)
    run_var = jnp.ones((hidden_size,), jnp.float32)
    eps = 1e-5

    fb = 1.0 / float(hidden_size) ** 0.5
    fc_w = jax.random.uniform(next(kit), (vocab_size, hidden_size), jnp.float32, -fb, fb)
    fc_b = jax.random.uniform(next(kit), (vocab_size,), jnp.float32, -fb, fb)

    # Fold eval-mode BN into the fc layer (BN is affine with fixed running stats):
    #   fc(bn(h)) = h @ W't + b'   with W't = scale[:,None] * fc_w.T,
    #   b' = fc_b + fc_w @ (beta - mean*scale)
    scale = gamma * jax.lax.rsqrt(run_var + eps)
    shift = beta - run_mean * scale
    w_fold_t = scale[:, None] * jnp.transpose(fc_w)              # (H, V)
    b_fold = fc_b + fc_w @ shift                                 # (V,)

    # TODO(synk): int8 + per-column scale head weights for v5e/v6e (no int MXU on v7x).
    params["head_w_t"] = jnp.pad(
        w_fold_t, ((0, Hp - hidden_size), (0, Vp - vocab_size))).astype(jnp.bfloat16)
    params["head_b"] = jnp.pad(b_fold, (0, Vp - vocab_size)).reshape(1, Vp)
    return params


# ----------------------------------- full forward ------------------------------------ #
@functools.partial(jax.jit, static_argnames=("vocab_size",))
def lstm_model_forward(token_ids, params, vocab_size):
    B, T = token_ids.shape
    Bp = _round_up(B, 8)                                  # sublane-aligned batch
    Hp = params["lstm"][0]["whh_t"].shape[0]

    # Embedding lookup glue: pad the tiny token-id array (not the activations), gather
    # directly time-major.  Padded batch rows are independent and sliced off at the end.
    tok = token_ids
    if Bp != B:
        tok = jnp.pad(tok, ((0, Bp - B), (0, 0)))
    emb = jnp.take(params["embedding"], tok.T, axis=0)           # (T, Bp, Ep)
    x_flat = emb.reshape(T * Bp, -1).astype(jnp.bfloat16)        # (T*Bp, Ep) bf16

    h_last = lstm_forward(x_flat, params["lstm"], T, Bp, Hp)     # (Bp, Hp) == output[:, -1, :]

    # Dropout(0.4) is identity in eval mode; BN already folded into head weights.
    logits_p = head(h_last, params["head_w_t"], params["head_b"])  # (Bp, Vp)
    return logits_p[:B, :vocab_size]


if __name__ == "__main__":
    vocab_size, embed_size, hidden_size, num_layers = 32, 16, 32, 2
    batch, seq = 4, 8

    key = jax.random.PRNGKey(0)
    k_tok, k_param = jax.random.split(key)
    token_ids = jax.random.randint(k_tok, (batch, seq), 0, vocab_size, dtype=jnp.int32)
    params = init_params(k_param, vocab_size, embed_size, hidden_size, num_layers)

    out = lstm_model_forward(token_ids, params, vocab_size)
    jax.block_until_ready(out)
    assert out.shape == (batch, vocab_size), out.shape
    print("KERNEL_OK")
</pallas_src>

<mosaic_0001>
module attributes {stable_mosaic.version = 11 : i64} {
  func.func @head_kernel(%arg0: i32, %arg1: memref<8x128xf32, #tpu.memory_space<vmem>>, %arg2: memref<128x128xbf16, #tpu.memory_space<vmem>>, %arg3: memref<1x128xf32, #tpu.memory_space<vmem>>, %arg4: memref<8x128xf32, #tpu.memory_space<vmem>>) attributes {dimension_semantics = [#tpu.dimension_semantics<parallel>], iteration_bounds = array<i64: 1>, scalar_prefetch = 0 : i64, scratch_operands = 0 : i64, tpu.core_type = #tpu.core_type<tc>, window_params = [{pipeline_mode = #tpu.pipeline_mode<synchronous>, transform_indices = @transform_0, window_bounds = array<i64: 8, 128>}, {transform_indices = @transform_1, window_bounds = array<i64: 128, 128>}, {transform_indices = @transform_2, window_bounds = array<i64: 1, 128>}, {transform_indices = @transform_3, window_bounds = array<i64: 8, 128>}]} {
    %c0 = arith.constant 0 : index
    %c0_0 = arith.constant 0 : index
    %0 = vector.load %arg1[%c0, %c0_0] : memref<8x128xf32, #tpu.memory_space<vmem>>, vector<8x128xf32>
    %1 = arith.truncf %0 : vector<8x128xf32> to vector<8x128xbf16>
    %c0_1 = arith.constant 0 : index
    %c0_2 = arith.constant 0 : index
    %2 = vector.load %arg2[%c0_1, %c0_2] : memref<128x128xbf16, #tpu.memory_space<vmem>>, vector<128x128xbf16>
    %cst = arith.constant dense<0.000000e+00> : vector<8x128xf32>
    %3 = tpu.matmul %1, %2, %cst {dimension_numbers = #tpu.dot_dimension_numbers<[1], [0], [0], [1], [0, 0, 1, 1], [], []>} : vector<8x128xbf16>, vector<128x128xbf16>, vector<8x128xf32> -> vector<8x128xf32>
    %c0_3 = arith.constant 0 : index
    %c0_4 = arith.constant 0 : index
    %4 = vector.load %arg3[%c0_3, %c0_4] : memref<1x128xf32, #tpu.memory_space<vmem>>, vector<1x128xf32>
    %5 = vector.broadcast %4 : vector<1x128xf32> to vector<8x128xf32>
    %6 = arith.addf %3, %5 : vector<8x128xf32>
    %c0_5 = arith.constant 0 : index
    %c0_6 = arith.constant 0 : index
    %7 = vector.load %arg4[%c0_5, %c0_6] : memref<8x128xf32, #tpu.memory_space<vmem>>, vector<8x128xf32>
    tpu.vector_store %arg4[%c0_5, %c0_6], %6 {strides = array<i32>} : memref<8x128xf32, #tpu.memory_space<vmem>>, vector<8x128xf32>,
    return
  }
  func.func @transform_0(%arg0: i32) -> (i32, i32) {
    %c0_i32 = arith.constant 0 : i32
    %c0_i32_0 = arith.constant 0 : i32
    %c0_i32_1 = arith.constant 0 : i32
    return %c0_i32, %c0_i32_0 : i32, i32
  }
  func.func @transform_1(%arg0: i32) -> (i32, i32) {
    %c0_i32 = arith.constant 0 : i32
    %c0_i32_0 = arith.constant 0 : i32
    return %c0_i32, %arg0 : i32, i32
  }
  func.func @transform_2(%arg0: i32) -> (i32, i32) {
    %c0_i32 = arith.constant 0 : i32
    %c0_i32_0 = arith.constant 0 : i32
    return %c0_i32, %arg0 : i32, i32
  }
  func.func @transform_3(%arg0: i32) -> (i32, i32) {
    %c0_i32 = arith.constant 0 : i32
    %c0_i32_0 = arith.constant 0 : i32
    return %c0_i32, %arg0 : i32, i32
  }
}

module attributes {stable_mosaic.version = 11 : i64} {
  func.func @kernel(%arg0: memref<64x128xbf16, #tpu.memory_space<vmem>>, %arg1: memref<128x512xbf16, #tpu.memory_space<vmem>>, %arg2: memref<128x512xbf16, #tpu.memory_space<vmem>>, %arg3: memref<1x512xf32, #tpu.memory_space<vmem>>, %arg4: memref<128x512xbf16, #tpu.memory_space<vmem>>, %arg5: memref<128x512xbf16, #tpu.memory_space<vmem>>, %arg6: memref<1x512xf32, #tpu.memory_space<vmem>>, %arg7: memref<8x128xf32, #tpu.memory_space<vmem>>, %arg8: memref<64x512xf32, #tpu.memory_space<vmem>>, %arg9: memref<64x128xbf16, #tpu.memory_space<vmem>>) attributes {dimension_semantics = [], scalar_prefetch = 0 : i64, scratch_operands = 2 : i64, tpu.core_type = #tpu.core_type<tc>} {
    %c0 = arith.constant 0 : index
    %c0_0 = arith.constant 0 : index
    %0 = vector.load %arg0[%c0, %c0_0] : memref<64x128xbf16, #tpu.memory_space<vmem>>, vector<64x128xbf16>
    %c0_1 = arith.constant 0 : index
    %c0_2 = arith.constant 0 : index
    %1 = vector.load %arg1[%c0_1, %c0_2] : memref<128x512xbf16, #tpu.memory_space<vmem>>, vector<128x512xbf16>
    %cst = arith.constant dense<0.000000e+00> : vector<64x512xf32>
    %2 = tpu.matmul %0, %1, %cst {dimension_numbers = #tpu.dot_dimension_numbers<[1], [0], [0], [1], [0, 0, 1, 1], [], []>} : vector<64x128xbf16>, vector<128x512xbf16>, vector<64x512xf32> -> vector<64x512xf32>
    %c0_3 = arith.constant 0 : index
    %c0_4 = arith.constant 0 : index
    %3 = vector.load %arg3[%c0_3, %c0_4] : memref<1x512xf32, #tpu.memory_space<vmem>>, vector<1x512xf32>
    %4 = vector.broadcast %3 : vector<1x512xf32> to vector<64x512xf32>
    %5 = arith.addf %2, %4 : vector<64x512xf32>
    %c0_5 = arith.constant 0 : index
    %c0_6 = arith.constant 0 : index
    %6 = vector.load %arg8[%c0_5, %c0_6] : memref<64x512xf32, #tpu.memory_space<vmem>>, vector<64x512xf32>
    tpu.vector_store %arg8[%c0_5, %c0_6], %5 {strides = array<i32>} : memref<64x512xf32, #tpu.memory_space<vmem>>, vector<64x512xf32>,
    %cst_7 = arith.constant 0.000000e+00 : f32
    %7 = vector.broadcast %cst_7 : f32 to vector<8x128xf32>
    %cst_8 = arith.constant 0.000000e+00 : f32
    %8 = vector.broadcast %cst_8 : f32 to vector<8x128xf32>
    %c0_i32 = arith.constant 0 : i32
    %c8_i32 = arith.constant 8 : i32
    %9 = arith.muli %c0_i32, %c8_i32 : i32
    %10 = tpu.assume_multiple %9, 8 : i32
    %11 = arith.index_cast %10 : i32 to index
    %c0_9 = arith.constant 0 : index
    %12 = vector.load %arg8[%11, %c0_9] : memref<64x512xf32, #tpu.memory_space<vmem>>, vector<8x512xf32>
    %13 = arith.truncf %7 : vector<8x128xf32> to vector<8x128xbf16>
    %c0_10 = arith.constant 0 : index
    %c0_11 = arith.constant 0 : index
    %14 = vector.load %arg2[%c0_10, %c0_11] : memref<128x512xbf16, #tpu.memory_space<vmem>>, vector<128x512xbf16>
    %cst_12 = arith.constant dense<0.000000e+00> : vector<8x512xf32>
    %15 = tpu.matmul %13, %14, %cst_12 {dimension_numbers = #tpu.dot_dimension_numbers<[1], [0], [0], [1], [0, 0, 1, 1], [], []>} : vector<8x128xbf16>, vector<128x512xbf16>, vector<8x512xf32> -> vector<8x512xf32>
    %16 = arith.addf %12, %15 : vector<8x512xf32>
    %17 = vector.extract_strided_slice %16 {offsets = [0, 0], sizes = [8, 384], strides = [1, 1]} : vector<8x512xf32> to vector<8x384xf32>
    %18 = arith.negf %17 : vector<8x384xf32>
    %19 = math.exp %18 : vector<8x384xf32>
    %cst_13 = arith.constant 1.000000e+00 : f32
    %20 = vector.broadcast %cst_13 : f32 to vector<8x384xf32>
    %21 = arith.addf %20, %19 : vector<8x384xf32>
    %22 = arith.divf %20, %21 : vector<8x384xf32>
    %23 = vector.extract_strided_slice %22 {offsets = [0, 0], sizes = [8, 128], strides = [1, 1]} : vector<8x384xf32> to vector<8x128xf32>
    %24 = vector.extract_strided_slice %22 {offsets = [0, 128], sizes = [8, 128], strides = [1, 1]} : vector<8x384xf32> to vector<8x128xf32>
    %25 = vector.extract_strided_slice %22 {offsets = [0, 256], sizes = [8, 128], strides = [1, 1]} : vector<8x384xf32> to vector<8x128xf32>
    %26 = vector.extract_strided_slice %16 {offsets = [0, 384], sizes = [8, 128], strides = [1, 1]} : vector<8x512xf32> to vector<8x128xf32>
    %27 = math.tanh %26 : vector<8x128xf32>
    %28 = arith.mulf %24, %8 : vector<8x128xf32>
    %29 = arith.mulf %23, %27 : vector<8x128xf32>
    %30 = arith.addf %28, %29 : vector<8x128xf32>
    %31 = math.tanh %30 : vector<8x128xf32>
    %32 = arith.mulf %25, %31 : vector<8x128xf32>
    %33 = arith.truncf %32 : vector<8x128xf32> to vector<8x128xbf16>
    %34 = arith.index_cast %10 : i32 to index
    %c0_14 = arith.constant 0 : index
    %35 = vector.load %arg9[%34, %c0_14] : memref<64x128xbf16, #tpu.memory_space<vmem>>, vector<8x128xbf16>
    tpu.vector_store %arg9[%34, %c0_14], %33 {strides = array<i32>} : memref<64x128xbf16, #tpu.memory_space<vmem>>, vector<8x128xbf16>,
    %c1_i32 = arith.constant 1 : i32
    %c8_i32_15 = arith.constant 8 : i32
    %36 = arith.muli %c1_i32, %c8_i32_15 : i32
    %37 = tpu.assume_multiple %36, 8 : i32
    %38 = arith.index_cast %37 : i32 to index
    %c0_16 = arith.constant 0 : index
    %39 = vector.load %arg8[%38, %c0_16] : memref<64x512xf32, #tpu.memory_space<vmem>>, vector<8x512xf32>
    %40 = arith.truncf %32 : vector<8x128xf32> to vector<8x128xbf16>
    %c0_17 = arith.constant 0 : index
    %c0_18 = arith.constant 0 : index
    %41 = vector.load %arg2[%c0_17, %c0_18] : memref<128x512xbf16, #tpu.memory_space<vmem>>, vector<128x512xbf16>
    %cst_19 = arith.constant dense<0.000000e+00> : vector<8x512xf32>
    %42 = tpu.matmul %40, %41, %cst_19 {dimension_numbers = #tpu.dot_dimension_numbers<[1], [0], [0], [1], [0, 0, 1, 1], [], []>} : vector<8x128xbf16>, vector<128x512xbf16>, vector<8x512xf32> -> vector<8x512xf32>
    %43 = arith.addf %39, %42 : vector<8x512xf32>
    %44 = vector.extract_strided_slice %43 {offsets = [0, 0], sizes = [8, 384], strides = [1, 1]} : vector<8x512xf32> to vector<8x384xf32>
    %45 = arith.negf %44 : vector<8x384xf32>
    %46 = math.exp %45 : vector<8x384xf32>
    %cst_20 = arith.constant 1.000000e+00 : f32
    %47 = vector.broadcast %cst_20 : f32 to vector<8x384xf32>
    %48 = arith.addf %47, %46 : vector<8x384xf32>
    %49 = arith.divf %47, %48 : vector<8x384xf32>
    %50 = vector.extract_strided_slice %49 {offsets = [0, 0], sizes = [8, 128], strides = [1, 1]} : vector<8x384xf32> to vector<8x128xf32>
    %51 = vector.extract_strided_slice %49 {offsets = [0, 128], sizes = [8, 128], strides = [1, 1]} : vector<8x384xf32> to vector<8x128xf32>
    %52 = vector.extract_strided_slice %49 {offsets = [0, 256], sizes = [8, 128], strides = [1, 1]} : vector<8x384xf32> to vector<8x128xf32>
    %53 = vector.extract_strided_slice %43 {offsets = [0, 384], sizes = [8, 128], strides = [1, 1]} : vector<8x512xf32> to vector<8x128xf32>
    %54 = math.tanh %53 : vector<8x128xf32>
    %55 = arith.mulf %51, %30 : vector<8x128xf32>
    %56 = arith.mulf %50, %54 : vector<8x128xf32>
    %57 = arith.addf %55, %56 : vector<8x128xf32>
    %58 = math.tanh %57 : vector<8x128xf32>
    %59 = arith.mulf %52, %58 : vector<8x128xf32>
    %60 = arith.truncf %59 : vector<8x128xf32> to vector<8x128xbf16>
    %61 = arith.index_cast %37 : i32 to index
    %c0_21 = arith.constant 0 : index
    %62 = vector.load %arg9[%61, %c0_21] : memref<64x128xbf16, #tpu.memory_space<vmem>>, vector<8x128xbf16>
    tpu.vector_store %arg9[%61, %c0_21], %60 {strides = array<i32>} : memref<64x128xbf16, #tpu.memory_space<vmem>>, vector<8x128xbf16>,
    %c2_i32 = arith.constant 2 : i32
    %c8_i32_22 = arith.constant 8 : i32
    %63 = arith.muli %c2_i32, %c8_i32_22 : i32
    %64 = tpu.assume_multiple %63, 8 : i32
    %65 = arith.index_cast %64 : i32 to index
    %c0_23 = arith.constant 0 : index
    %66 = vector.load %arg8[%65, %c0_23] : memref<64x512xf32, #tpu.memory_space<vmem>>, vector<8x512xf32>
    %67 = arith.truncf %59 : vector<8x128xf32> to vector<8x128xbf16>
    %c0_24 = arith.constant 0 : index
    %c0_25 = arith.constant 0 : index
    %68 = vector.load %arg2[%c0_24, %c0_25] : memref<128x512xbf16, #tpu.memory_space<vmem>>, vector<128x512xbf16>
    %cst_26 = arith.constant dense<0.000000e+00> : vector<8x512xf32>
    %69 = tpu.matmul %67, %68, %cst_26 {dimension_numbers = #tpu.dot_dimension_numbers<[1], [0], [0], [1], [0, 0, 1, 1], [], []>} : vector<8x128xbf16>, vector<128x512xbf16>, vector<8x512xf32> -> vector<8x512xf32>
    %70 = arith.addf %66, %69 : vector<8x512xf32>
    %71 = vector.extract_strided_slice %70 {offsets = [0, 0], sizes = [8, 384], strides = [1, 1]} : vector<8x512xf32> to vector<8x384xf32>
    %72 = arith.negf %71 : vector<8x384xf32>
    %73 = math.exp %72 : vector<8x384xf32>
    %cst_27 = arith.constant 1.000000e+00 : f32
    %74 = vector.broadcast %cst_27 : f32 to vector<8x384xf32>
    %75 = arith.addf %74, %73 : vector<8x384xf32>
    %76 = arith.divf %74, %75 : vector<8x384xf32>
    %77 = vector.extract_strided_slice %76 {offsets = [0, 0], sizes = [8, 128], strides = [1, 1]} : vector<8x384xf32> to vector<8x128xf32>
    %78 = vector.extract_strided_slice %76 {offsets = [0, 128], sizes = [8, 128], strides = [1, 1]} : vector<8x384xf32> to vector<8x128xf32>
    %79 = vector.extract_strided_slice %76 {offsets = [0, 256], sizes = [8, 128], strides = [1, 1]} : vector<8x384xf32> to vector<8x128xf32>
    %80 = vector.extract_strided_slice %70 {offsets = [0, 384], sizes = [8, 128], strides = [1, 1]} : vector<8x512xf32> to vector<8x128xf32>
    %81 = math.tanh %80 : vector<8x128xf32>
    %82 = arith.mulf %78, %57 : vector<8x128xf32>
    %83 = arith.mulf %77, %81 : vector<8x128xf32>
    %84 = arith.addf %82, %83 : vector<8x128xf32>
    %85 = math.tanh %84 : vector<8x128xf32>
    %86 = arith.mulf %79, %85 : vector<8x128xf32>
    %87 = arith.truncf %86 : vector<8x128xf32> to vector<8x128xbf16>
    %88 = arith.index_cast %64 : i32 to index
    %c0_28 = arith.constant 0 : index
    %89 = vector.load %arg9[%88, %c0_28] : memref<64x128xbf16, #tpu.memory_space<vmem>>, vector<8x128xbf16>
    tpu.vector_store %arg9[%88, %c0_28], %87 {strides = array<i32>} : memref<64x128xbf16, #tpu.memory_space<vmem>>, vector<8x128xbf16>,
    %c3_i32 = arith.constant 3 : i32
    %c8_i32_29 = arith.constant 8 : i32
    %90 = arith.muli %c3_i32, %c8_i32_29 : i32
    %91 = tpu.assume_multiple %90, 8 : i32
    %92 = arith.index_cast %91 : i32 to index
    %c0_30 = arith.constant 0 : index
    %93 = vector.load %arg8[%92, %c0_30] : memref<64x512xf32, #tpu.memory_space<vmem>>, vector<8x512xf32>
    %94 = arith.truncf %86 : vector<8x128xf32> to vector<8x128xbf16>
    %c0_31 = arith.constant 0 : index
    %c0_32 = arith.constant 0 : index
    %95 = vector.load %arg2[%c0_31, %c0_32] : memref<128x512xbf16, #tpu.memory_space<vmem>>, vector<128x512xbf16>
    %cst_33 = arith.constant dense<0.000000e+00> : vector<8x512xf32>
    %96 = tpu.matmul %94, %95, %cst_33 {dimension_numbers = #tpu.dot_dimension_numbers<[1], [0], [0], [1], [0, 0, 1, 1], [], []>} : vector<8x128xbf16>, vector<128x512xbf16>, vector<8x512xf32> -> vector<8x512xf32>
    %97 = arith.addf %93, %96 : vector<8x512xf32>
    %98 = vector.extract_strided_slice %97 {offsets = [0, 0], sizes = [8, 384], strides = [1, 1]} : vector<8x512xf32> to vector<8x384xf32>
    %99 = arith.negf %98 : vector<8x384xf32>
    %100 = math.exp %99 : vector<8x384xf32>
    %cst_34 = arith.constant 1.000000e+00 : f32
    %101 = vector.broadcast %cst_34 : f32 to vector<8x384xf32>
    %102 = arith.addf %101, %100 : vector<8x384xf32>
    %103 = arith.divf %101, %102 : vector<8x384xf32>
    %104 = vector.extract_strided_slice %103 {offsets = [0, 0], sizes = [8, 128], strides = [1, 1]} : vector<8x384xf32> to vector<8x128xf32>
    %105 = vector.extract_strided_slice %103 {offsets = [0, 128], sizes = [8, 128], strides = [1, 1]} : vector<8x384xf32> to vector<8x128xf32>
    %106 = vector.extract_strided_slice %103 {offsets = [0, 256], sizes = [8, 128], strides = [1, 1]} : vector<8x384xf32> to vector<8x128xf32>
    %107 = vector.extract_strided_slice %97 {offsets = [0, 384], sizes = [8, 128], strides = [1, 1]} : vector<8x512xf32> to vector<8x128xf32>
    %108 = math.tanh %107 : vector<8x128xf32>
    %109 = arith.mulf %105, %84 : vector<8x128xf32>
    %110 = arith.mulf %104, %108 : vector<8x128xf32>
    %111 = arith.addf %109, %110 : vector<8x128xf32>
    %112 = math.tanh %111 : vector<8x128xf32>
    %113 = arith.mulf %106, %112 : vector<8x128xf32>
    %114 = arith.truncf %113 : vector<8x128xf32> to vector<8x128xbf16>
    %115 = arith.index_cast %91 : i32 to index
    %c0_35 = arith.constant 0 : index
    %116 = vector.load %arg9[%115, %c0_35] : memref<64x128xbf16, #tpu.memory_space<vmem>>, vector<8x128xbf16>
    tpu.vector_store %arg9[%115, %c0_35], %114 {strides = array<i32>} : memref<64x128xbf16, #tpu.memory_space<vmem>>, vector<8x128xbf16>,
    %c4_i32 = arith.constant 4 : i32
    %c8_i32_36 = arith.constant 8 : i32
    %117 = arith.muli %c4_i32, %c8_i32_36 : i32
    %118 = tpu.assume_multiple %117, 8 : i32
    %119 = arith.index_cast %118 : i32 to index
    %c0_37 = arith.constant 0 : index
    %120 = vector.load %arg8[%119, %c0_37] : memref<64x512xf32, #tpu.memory_space<vmem>>, vector<8x512xf32>
    %121 = arith.truncf %113 : vector<8x128xf32> to vector<8x128xbf16>
    %c0_38 = arith.constant 0 : index
    %c0_39 = arith.constant 0 : index
    %122 = vector.load %arg2[%c0_38, %c0_39] : memref<128x512xbf16, #tpu.memory_space<vmem>>, vector<128x512xbf16>
    %cst_40 = arith.constant dense<0.000000e+00> : vector<8x512xf32>
    %123 = tpu.matmul %121, %122, %cst_40 {dimension_numbers = #tpu.dot_dimension_numbers<[1], [0], [0], [1], [0, 0, 1, 1], [], []>} : vector<8x128xbf16>, vector<128x512xbf16>, vector<8x512xf32> -> vector<8x512xf32>
    %124 = arith.addf %120, %123 : vector<8x512xf32>
    %125 = vector.extract_strided_slice %124 {offsets = [0, 0], sizes = [8, 384], strides = [1, 1]} : vector<8x512xf32> to vector<8x384xf32>
    %126 = arith.negf %125 : vector<8x384xf32>
    %127 = math.exp %126 : vector<8x384xf32>
    %cst_41 = arith.constant 1.000000e+00 : f32
    %128 = vector.broadcast %cst_41 : f32 to vector<8x384xf32>
    %129 = arith.addf %128, %127 : vector<8x384xf32>
    %130 = arith.divf %128, %129 : vector<8x384xf32>
    %131 = vector.extract_strided_slice %130 {offsets = [0, 0], sizes = [8, 128], strides = [1, 1]} : vector<8x384xf32> to vector<8x128xf32>
    %132 = vector.extract_strided_slice %130 {offsets = [0, 128], sizes = [8, 128], strides = [1, 1]} : vector<8x384xf32> to vector<8x128xf32>
    %133 = vector.extract_strided_slice %130 {offsets = [0, 256], sizes = [8, 128], strides = [1, 1]} : vector<8x384xf32> to vector<8x128xf32>
    %134 = vector.extract_strided_slice %124 {offsets = [0, 384], sizes = [8, 128], strides = [1, 1]} : vector<8x512xf32> to vector<8x128xf32>
    %135 = math.tanh %134 : vector<8x128xf32>
    %136 = arith.mulf %132, %111 : vector<8x128xf32>
    %137 = arith.mulf %131, %135 : vector<8x128xf32>
    %138 = arith.addf %136, %137 : vector<8x128xf32>
    %139 = math.tanh %138 : vector<8x128xf32>
    %140 = arith.mulf %133, %139 : vector<8x128xf32>
    %141 = arith.truncf %140 : vector<8x128xf32> to vector<8x128xbf16>
    %142 = arith.index_cast %118 : i32 to index
    %c0_42 = arith.constant 0 : index
    %143 = vector.load %arg9[%142, %c0_42] : memref<64x128xbf16, #tpu.memory_space<vmem>>, vector<8x128xbf16>
    tpu.vector_store %arg9[%142, %c0_42], %141 {strides = array<i32>} : memref<64x128xbf16, #tpu.memory_space<vmem>>, vector<8x128xbf16>,
    %c5_i32 = arith.constant 5 : i32
    %c8_i32_43 = arith.constant 8 : i32
    %144 = arith.muli %c5_i32, %c8_i32_43 : i32
    %145 = tpu.assume_multiple %144, 8 : i32
    %146 = arith.index_cast %145 : i32 to index
    %c0_44 = arith.constant 0 : index
    %147 = vector.load %arg8[%146, %c0_44] : memref<64x512xf32, #tpu.memory_space<vmem>>, vector<8x512xf32>
    %148 = arith.truncf %140 : vector<8x128xf32> to vector<8x128xbf16>
    %c0_45 = arith.constant 0 : index
    %c0_46 = arith.constant 0 : index
    %149 = vector.load %arg2[%c0_45, %c0_46] : memref<128x512xbf16, #tpu.memory_space<vmem>>, vector<128x512xbf16>
    %cst_47 = arith.constant dense<0.000000e+00> : vector<8x512xf32>
    %150 = tpu.matmul %148, %149, %cst_47 {dimension_numbers = #tpu.dot_dimension_numbers<[1], [0], [0], [1], [0, 0, 1, 1], [], []>} : vector<8x128xbf16>, vector<128x512xbf16>, vector<8x512xf32> -> vector<8x512xf32>
    %151 = arith.addf %147, %150 : vector<8x512xf32>
    %152 = vector.extract_strided_slice %151 {offsets = [0, 0], sizes = [8, 384], strides = [1, 1]} : vector<8x512xf32> to vector<8x384xf32>
    %153 = arith.negf %152 : vector<8x384xf32>
    %154 = math.exp %153 : vector<8x384xf32>
    %cst_48 = arith.constant 1.000000e+00 : f32
    %155 = vector.broadcast %cst_48 : f32 to vector<8x384xf32>
    %156 = arith.addf %155, %154 : vector<8x384xf32>
    %157 = arith.divf %155, %156 : vector<8x384xf32>
    %158 = vector.extract_strided_slice %157 {offsets = [0, 0], sizes = [8, 128], strides = [1, 1]} : vector<8x384xf32> to vector<8x128xf32>
    %159 = vector.extract_strided_slice %157 {offsets = [0, 128], sizes = [8, 128], strides = [1, 1]} : vector<8x384xf32> to vector<8x128xf32>
    %160 = vector.extract_strided_slice %157 {offsets = [0, 256], sizes = [8, 128], strides = [1, 1]} : vector<8x384xf32> to vector<8x128xf32>
    %161 = vector.extract_strided_slice %151 {offsets = [0, 384], sizes = [8, 128], strides = [1, 1]} : vector<8x512xf32> to vector<8x128xf32>
    %162 = math.tanh %161 : vector<8x128xf32>
    %163 = arith.mulf %159, %138 : vector<8x128xf32>
    %164 = arith.mulf %158, %162 : vector<8x128xf32>
    %165 = arith.addf %163, %164 : vector<8x128xf32>
    %166 = math.tanh %165 : vector<8x128xf32>
    %167 = arith.mulf %160, %166 : vector<8x128xf32>
    %168 = arith.truncf %167 : vector<8x128xf32> to vector<8x128xbf16>
    %169 = arith.index_cast %145 : i32 to index
    %c0_49 = arith.constant 0 : index
    %170 = vector.load %arg9[%169, %c0_49] : memref<64x128xbf16, #tpu.memory_space<vmem>>, vector<8x128xbf16>
    tpu.vector_store %arg9[%169, %c0_49], %168 {strides = array<i32>} : memref<64x128xbf16, #tpu.memory_space<vmem>>, vector<8x128xbf16>,
    %c6_i32 = arith.constant 6 : i32
    %c8_i32_50 = arith.constant 8 : i32
    %171 = arith.muli %c6_i32, %c8_i32_50 : i32
    %172 = tpu.assume_multiple %171, 8 : i32
    %173 = arith.index_cast %172 : i32 to index
    %c0_51 = arith.constant 0 : index
    %174 = vector.load %arg8[%173, %c0_51] : memref<64x512xf32, #tpu.memory_space<vmem>>, vector<8x512xf32>
    %175 = arith.truncf %167 : vector<8x128xf32> to vector<8x128xbf16>
    %c0_52 = arith.constant 0 : index
    %c0_53 = arith.constant 0 : index
    %176 = vector.load %arg2[%c0_52, %c0_53] : memref<128x512xbf16, #tpu.memory_space<vmem>>, vector<128x512xbf16>
    %cst_54 = arith.constant dense<0.000000e+00> : vector<8x512xf32>
    %177 = tpu.matmul %175, %176, %cst_54 {dimension_numbers = #tpu.dot_dimension_numbers<[1], [0], [0], [1], [0, 0, 1, 1], [], []>} : vector<8x128xbf16>, vector<128x512xbf16>, vector<8x512xf32> -> vector<8x512xf32>
    %178 = arith.addf %174, %177 : vector<8x512xf32>
    %179 = vector.extract_strided_slice %178 {offsets = [0, 0], sizes = [8, 384], strides = [1, 1]} : vector<8x512xf32> to vector<8x384xf32>
    %180 = arith.negf %179 : vector<8x384xf32>
    %181 = math.exp %180 : vector<8x384xf32>
    %cst_55 = arith.constant 1.000000e+00 : f32
    %182 = vector.broadcast %cst_55 : f32 to vector<8x384xf32>
    %183 = arith.addf %182, %181 : vector<8x384xf32>
    %184 = arith.divf %182, %183 : vector<8x384xf32>
    %185 = vector.extract_strided_slice %184 {offsets = [0, 0], sizes = [8, 128], strides = [1, 1]} : vector<8x384xf32> to vector<8x128xf32>
    %186 = vector.extract_strided_slice %184 {offsets = [0, 128], sizes = [8, 128], strides = [1, 1]} : vector<8x384xf32> to vector<8x128xf32>
    %187 = vector.extract_strided_slice %184 {offsets = [0, 256], sizes = [8, 128], strides = [1, 1]} : vector<8x384xf32> to vector<8x128xf32>
    %188 = vector.extract_strided_slice %178 {offsets = [0, 384], sizes = [8, 128], strides = [1, 1]} : vector<8x512xf32> to vector<8x128xf32>
    %189 = math.tanh %188 : vector<8x128xf32>
    %190 = arith.mulf %186, %165 : vector<8x128xf32>
    %191 = arith.mulf %185, %189 : vector<8x128xf32>
    %192 = arith.addf %190, %191 : vector<8x128xf32>
    %193 = math.tanh %192 : vector<8x128xf32>
    %194 = arith.mulf %187, %193 : vector<8x128xf32>
    %195 = arith.truncf %194 : vector<8x128xf32> to vector<8x128xbf16>
    %196 = arith.index_cast %172 : i32 to index
    %c0_56 = arith.constant 0 : index
    %197 = vector.load %arg9[%196, %c0_56] : memref<64x128xbf16, #tpu.memory_space<vmem>>, vector<8x128xbf16>
    tpu.vector_store %arg9[%196, %c0_56], %195 {strides = array<i32>} : memref<64x128xbf16, #tpu.memory_space<vmem>>, vector<8x128xbf16>,
    %c7_i32 = arith.constant 7 : i32
    %c8_i32_57 = arith.constant 8 : i32
    %198 = arith.muli %c7_i32, %c8_i32_57 : i32
    %199 = tpu.assume_multiple %198, 8 : i32
    %200 = arith.index_cast %199 : i32 to index
    %c0_58 = arith.constant 0 : index
    %201 = vector.load %arg8[%200, %c0_58] : memref<64x512xf32, #tpu.memory_space<vmem>>, vector<8x512xf32>
    %202 = arith.truncf %194 : vector<8x128xf32> to vector<8x128xbf16>
    %c0_59 = arith.constant 0 : index
    %c0_60 = arith.constant 0 : index
    %203 = vector.load %arg2[%c0_59, %c0_60] : memref<128x512xbf16, #tpu.memory_space<vmem>>, vector<128x512xbf16>
    %cst_61 = arith.constant dense<0.000000e+00> : vector<8x512xf32>
    %204 = tpu.matmul %202, %203, %cst_61 {dimension_numbers = #tpu.dot_dimension_numbers<[1], [0], [0], [1], [0, 0, 1, 1], [], []>} : vector<8x128xbf16>, vector<128x512xbf16>, vector<8x512xf32> -> vector<8x512xf32>
    %205 = arith.addf %201, %204 : vector<8x512xf32>
    %206 = vector.extract_strided_slice %205 {offsets = [0, 0], sizes = [8, 384], strides = [1, 1]} : vector<8x512xf32> to vector<8x384xf32>
    %207 = arith.negf %206 : vector<8x384xf32>
    %208 = math.exp %207 : vector<8x384xf32>
    %cst_62 = arith.constant 1.000000e+00 : f32
    %209 = vector.broadcast %cst_62 : f32 to vector<8x384xf32>
    %210 = arith.addf %209, %208 : vector<8x384xf32>
    %211 = arith.divf %209, %210 : vector<8x384xf32>
    %212 = vector.extract_strided_slice %211 {offsets = [0, 0], sizes = [8, 128], strides = [1, 1]} : vector<8x384xf32> to vector<8x128xf32>
    %213 = vector.extract_strided_slice %211 {offsets = [0, 128], sizes = [8, 128], strides = [1, 1]} : vector<8x384xf32> to vector<8x128xf32>
    %214 = vector.extract_strided_slice %211 {offsets = [0, 256], sizes = [8, 128], strides = [1, 1]} : vector<8x384xf32> to vector<8x128xf32>
    %215 = vector.extract_strided_slice %205 {offsets = [0, 384], sizes = [8, 128], strides = [1, 1]} : vector<8x512xf32> to vector<8x128xf32>
    %216 = math.tanh %215 : vector<8x128xf32>
    %217 = arith.mulf %213, %192 : vector<8x128xf32>
    %218 = arith.mulf %212, %216 : vector<8x128xf32>
    %219 = arith.addf %217, %218 : vector<8x128xf32>
    %220 = math.tanh %219 : vector<8x128xf32>
    %221 = arith.mulf %214, %220 : vector<8x128xf32>
    %222 = arith.truncf %221 : vector<8x128xf32> to vector<8x128xbf16>
    %223 = arith.index_cast %199 : i32 to index
    %c0_63 = arith.constant 0 : index
    %224 = vector.load %arg9[%223, %c0_63] : memref<64x128xbf16, #tpu.memory_space<vmem>>, vector<8x128xbf16>
    tpu.vector_store %arg9[%223, %c0_63], %222 {strides = array<i32>} : memref<64x128xbf16, #tpu.memory_space<vmem>>, vector<8x128xbf16>,
    %c8_i32_64 = arith.constant 8 : i32
    %c0_65 = arith.constant 0 : index
    %c0_66 = arith.constant 0 : index
    %225 = vector.load %arg9[%c0_65, %c0_66] : memref<64x128xbf16, #tpu.memory_space<vmem>>, vector<64x128xbf16>
    %c0_67 = arith.constant 0 : index
    %c0_68 = arith.constant 0 : index
    %226 = vector.load %arg4[%c0_67, %c0_68] : memref<128x512xbf16, #tpu.memory_space<vmem>>, vector<128x512xbf16>
    %cst_69 = arith.constant dense<0.000000e+00> : vector<64x512xf32>
    %227 = tpu.matmul %225, %226, %cst_69 {dimension_numbers = #tpu.dot_dimension_numbers<[1], [0], [0], [1], [0, 0, 1, 1], [], []>} : vector<64x128xbf16>, vector<128x512xbf16>, vector<64x512xf32> -> vector<64x512xf32>
    %c0_70 = arith.constant 0 : index
    %c0_71 = arith.constant 0 : index
    %228 = vector.load %arg6[%c0_70, %c0_71] : memref<1x512xf32, #tpu.memory_space<vmem>>, vector<1x512xf32>
    %229 = vector.broadcast %228 : vector<1x512xf32> to vector<64x512xf32>
    %230 = arith.addf %227, %229 : vector<64x512xf32>
    %c0_72 = arith.constant 0 : index
    %c0_73 = arith.constant 0 : index
    %231 = vector.load %arg8[%c0_72, %c0_73] : memref<64x512xf32, #tpu.memory_space<vmem>>, vector<64x512xf32>
    tpu.vector_store %arg8[%c0_72, %c0_73], %230 {strides = array<i32>} : memref<64x512xf32, #tpu.memory_space<vmem>>, vector<64x512xf32>,
    %cst_74 = arith.constant 0.000000e+00 : f32
    %232 = vector.broadcast %cst_74 : f32 to vector<8x128xf32>
    %cst_75 = arith.constant 0.000000e+00 : f32
    %233 = vector.broadcast %cst_75 : f32 to vector<8x128xf32>
    %c0_i32_76 = arith.constant 0 : i32
    %c8_i32_77 = arith.constant 8 : i32
    %234 = arith.muli %c0_i32_76, %c8_i32_77 : i32
    %235 = tpu.assume_multiple %234, 8 : i32
    %236 = arith.index_cast %235 : i32 to index
    %c0_78 = arith.constant 0 : index
    %237 = vector.load %arg8[%236, %c0_78] : memref<64x512xf32, #tpu.memory_space<vmem>>, vector<8x512xf32>
    %238 = arith.truncf %232 : vector<8x128xf32> to vector<8x128xbf16>
    %c0_79 = arith.constant 0 : index
    %c0_80 = arith.constant 0 : index
    %239 = vector.load %arg5[%c0_79, %c0_80] : memref<128x512xbf16, #tpu.memory_space<vmem>>, vector<128x512xbf16>
    %cst_81 = arith.constant dense<0.000000e+00> : vector<8x512xf32>
    %240 = tpu.matmul %238, %239, %cst_81 {dimension_numbers = #tpu.dot_dimension_numbers<[1], [0], [0], [1], [0, 0, 1, 1], [], []>} : vector<8x128xbf16>, vector<128x512xbf16>, vector<8x512xf32> -> vector<8x512xf32>
    %241 = arith.addf %237, %240 : vector<8x512xf32>
    %242 = vector.extract_strided_slice %241 {offsets = [0, 0], sizes = [8, 384], strides = [1, 1]} : vector<8x512xf32> to vector<8x384xf32>
    %243 = arith.negf %242 : vector<8x384xf32>
    %244 = math.exp %243 : vector<8x384xf32>
    %cst_82 = arith.constant 1.000000e+00 : f32
    %245 = vector.broadcast %cst_82 : f32 to vector<8x384xf32>
    %246 = arith.addf %245, %244 : vector<8x384xf32>
    %247 = arith.divf %245, %246 : vector<8x384xf32>
    %248 = vector.extract_strided_slice %247 {offsets = [0, 0], sizes = [8, 128], strides = [1, 1]} : vector<8x384xf32> to vector<8x128xf32>
    %249 = vector.extract_strided_slice %247 {offsets = [0, 128], sizes = [8, 128], strides = [1, 1]} : vector<8x384xf32> to vector<8x128xf32>
    %250 = vector.extract_strided_slice %247 {offsets = [0, 256], sizes = [8, 128], strides = [1, 1]} : vector<8x384xf32> to vector<8x128xf32>
    %251 = vector.extract_strided_slice %241 {offsets = [0, 384], sizes = [8, 128], strides = [1, 1]} : vector<8x512xf32> to vector<8x128xf32>
    %252 = math.tanh %251 : vector<8x128xf32>
    %253 = arith.mulf %249, %233 : vector<8x128xf32>
    %254 = arith.mulf %248, %252 : vector<8x128xf32>
    %255 = arith.addf %253, %254 : vector<8x128xf32>
    %256 = math.tanh %255 : vector<8x128xf32>
    %257 = arith.mulf %250, %256 : vector<8x128xf32>
    %c1_i32_83 = arith.constant 1 : i32
    %c8_i32_84 = arith.constant 8 : i32
    %258 = arith.muli %c1_i32_83, %c8_i32_84 : i32
    %259 = tpu.assume_multiple %258, 8 : i32
    %260 = arith.index_cast %259 : i32 to index
    %c0_85 = arith.constant 0 : index
    %261 = vector.load %arg8[%260, %c0_85] : memref<64x512xf32, #tpu.memory_space<vmem>>, vector<8x512xf32>
    %262 = arith.truncf %257 : vector<8x128xf32> to vector<8x128xbf16>
    %c0_86 = arith.constant 0 : index
    %c0_87 = arith.constant 0 : index
    %263 = vector.load %arg5[%c0_86, %c0_87] : memref<128x512xbf16, #tpu.memory_space<vmem>>, vector<128x512xbf16>
    %cst_88 = arith.constant dense<0.000000e+00> : vector<8x512xf32>
    %264 = tpu.matmul %262, %263, %cst_88 {dimension_numbers = #tpu.dot_dimension_numbers<[1], [0], [0], [1], [0, 0, 1, 1], [], []>} : vector<8x128xbf16>, vector<128x512xbf16>, vector<8x512xf32> -> vector<8x512xf32>
    %265 = arith.addf %261, %264 : vector<8x512xf32>
    %266 = vector.extract_strided_slice %265 {offsets = [0, 0], sizes = [8, 384], strides = [1, 1]} : vector<8x512xf32> to vector<8x384xf32>
    %267 = arith.negf %266 : vector<8x384xf32>
    %268 = math.exp %267 : vector<8x384xf32>
    %cst_89 = arith.constant 1.000000e+00 : f32
    %269 = vector.broadcast %cst_89 : f32 to vector<8x384xf32>
    %270 = arith.addf %269, %268 : vector<8x384xf32>
    %271 = arith.divf %269, %270 : vector<8x384xf32>
    %272 = vector.extract_strided_slice %271 {offsets = [0, 0], sizes = [8, 128], strides = [1, 1]} : vector<8x384xf32> to vector<8x128xf32>
    %273 = vector.extract_strided_slice %271 {offsets = [0, 128], sizes = [8, 128], strides = [1, 1]} : vector<8x384xf32> to vector<8x128xf32>
    %274 = vector.extract_strided_slice %271 {offsets = [0, 256], sizes = [8, 128], strides = [1, 1]} : vector<8x384xf32> to vector<8x128xf32>
    %275 = vector.extract_strided_slice %265 {offsets = [0, 384], sizes = [8, 128], strides = [1, 1]} : vector<8x512xf32> to vector<8x128xf32>
    %276 = math.tanh %275 : vector<8x128xf32>
    %277 = arith.mulf %273, %255 : vector<8x128xf32>
    %278 = arith.mulf %272, %276 : vector<8x128xf32>
    %279 = arith.addf %277, %278 : vector<8x128xf32>
    %280 = math.tanh %279 : vector<8x128xf32>
    %281 = arith.mulf %274, %280 : vector<8x128xf32>
    %c2_i32_90 = arith.constant 2 : i32
    %c8_i32_91 = arith.constant 8 : i32
    %282 = arith.muli %c2_i32_90, %c8_i32_91 : i32
    %283 = tpu.assume_multiple %282, 8 : i32
    %284 = arith.index_cast %283 : i32 to index
    %c0_92 = arith.constant 0 : index
    %285 = vector.load %arg8[%284, %c0_92] : memref<64x512xf32, #tpu.memory_space<vmem>>, vector<8x512xf32>
    %286 = arith.truncf %281 : vector<8x128xf32> to vector<8x128xbf16>
    %c0_93 = arith.constant 0 : index
    %c0_94 = arith.constant 0 : index
    %287 = vector.load %arg5[%c0_93, %c0_94] : memref<128x512xbf16, #tpu.memory_space<vmem>>, vector<128x512xbf16>
    %cst_95 = arith.constant dense<0.000000e+00> : vector<8x512xf32>
    %288 = tpu.matmul %286, %287, %cst_95 {dimension_numbers = #tpu.dot_dimension_numbers<[1], [0], [0], [1], [0, 0, 1, 1], [], []>} : vector<8x128xbf16>, vector<128x512xbf16>, vector<8x512xf32> -> vector<8x512xf32>
    %289 = arith.addf %285, %288 : vector<8x512xf32>
    %290 = vector.extract_strided_slice %289 {offsets = [0, 0], sizes = [8, 384], strides = [1, 1]} : vector<8x512xf32> to vector<8x384xf32>
    %291 = arith.negf %290 : vector<8x384xf32>
    %292 = math.exp %291 : vector<8x384xf32>
    %cst_96 = arith.constant 1.000000e+00 : f32
    %293 = vector.broadcast %cst_96 : f32 to vector<8x384xf32>
    %294 = arith.addf %293, %292 : vector<8x384xf32>
    %295 = arith.divf %293, %294 : vector<8x384xf32>
    %296 = vector.extract_strided_slice %295 {offsets = [0, 0], sizes = [8, 128], strides = [1, 1]} : vector<8x384xf32> to vector<8x128xf32>
    %297 = vector.extract_strided_slice %295 {offsets = [0, 128], sizes = [8, 128], strides = [1, 1]} : vector<8x384xf32> to vector<8x128xf32>
    %298 = vector.extract_strided_slice %295 {offsets = [0, 256], sizes = [8, 128], strides = [1, 1]} : vector<8x384xf32> to vector<8x128xf32>
    %299 = vector.extract_strided_slice %289 {offsets = [0, 384], sizes = [8, 128], strides = [1, 1]} : vector<8x512xf32> to vector<8x128xf32>
    %300 = math.tanh %299 : vector<8x128xf32>
    %301 = arith.mulf %297, %279 : vector<8x128xf32>
    %302 = arith.mulf %296, %300 : vector<8x128xf32>
    %303 = arith.addf %301, %302 : vector<8x128xf32>
    %304 = math.tanh %303 : vector<8x128xf32>
    %305 = arith.mulf %298, %304 : vector<8x128xf32>
    %c3_i32_97 = arith.constant 3 : i32
    %c8_i32_98 = arith.constant 8 : i32
    %306 = arith.muli %c3_i32_97, %c8_i32_98 : i32
    %307 = tpu.assume_multiple %306, 8 : i32
    %308 = arith.index_cast %307 : i32 to index
    %c0_99 = arith.constant 0 : index
    %309 = vector.load %arg8[%308, %c0_99] : memref<64x512xf32, #tpu.memory_space<vmem>>, vector<8x512xf32>
    %310 = arith.truncf %305 : vector<8x128xf32> to vector<8x128xbf16>
    %c0_100 = arith.constant 0 : index
    %c0_101 = arith.constant 0 : index
    %311 = vector.load %arg5[%c0_100, %c0_101] : memref<128x512xbf16, #tpu.memory_space<vmem>>, vector<128x512xbf16>
    %cst_102 = arith.constant dense<0.000000e+00> : vector<8x512xf32>
    %312 = tpu.matmul %310, %311, %cst_102 {dimension_numbers = #tpu.dot_dimension_numbers<[1], [0], [0], [1], [0, 0, 1, 1], [], []>} : vector<8x128xbf16>, vector<128x512xbf16>, vector<8x512xf32> -> vector<8x512xf32>
    %313 = arith.addf %309, %312 : vector<8x512xf32>
    %314 = vector.extract_strided_slice %313 {offsets = [0, 0], sizes = [8, 384], strides = [1, 1]} : vector<8x512xf32> to vector<8x384xf32>
    %315 = arith.negf %314 : vector<8x384xf32>
    %316 = math.exp %315 : vector<8x384xf32>
    %cst_103 = arith.constant 1.000000e+00 : f32
    %317 = vector.broadcast %cst_103 : f32 to vector<8x384xf32>
    %318 = arith.addf %317, %316 : vector<8x384xf32>
    %319 = arith.divf %317, %318 : vector<8x384xf32>
    %320 = vector.extract_strided_slice %319 {offsets = [0, 0], sizes = [8, 128], strides = [1, 1]} : vector<8x384xf32> to vector<8x128xf32>
    %321 = vector.extract_strided_slice %319 {offsets = [0, 128], sizes = [8, 128], strides = [1, 1]} : vector<8x384xf32> to vector<8x128xf32>
    %322 = vector.extract_strided_slice %319 {offsets = [0, 256], sizes = [8, 128], strides = [1, 1]} : vector<8x384xf32> to vector<8x128xf32>
    %323 = vector.extract_strided_slice %313 {offsets = [0, 384], sizes = [8, 128], strides = [1, 1]} : vector<8x512xf32> to vector<8x128xf32>
    %324 = math.tanh %323 : vector<8x128xf32>
    %325 = arith.mulf %321, %303 : vector<8x128xf32>
    %326 = arith.mulf %320, %324 : vector<8x128xf32>
    %327 = arith.addf %325, %326 : vector<8x128xf32>
    %328 = math.tanh %327 : vector<8x128xf32>
    %329 = arith.mulf %322, %328 : vector<8x128xf32>
    %c4_i32_104 = arith.constant 4 : i32
    %c8_i32_105 = arith.constant 8 : i32
    %330 = arith.muli %c4_i32_104, %c8_i32_105 : i32
    %331 = tpu.assume_multiple %330, 8 : i32
    %332 = arith.index_cast %331 : i32 to index
    %c0_106 = arith.constant 0 : index
    %333 = vector.load %arg8[%332, %c0_106] : memref<64x512xf32, #tpu.memory_space<vmem>>, vector<8x512xf32>
    %334 = arith.truncf %329 : vector<8x128xf32> to vector<8x128xbf16>
    %c0_107 = arith.constant 0 : index
    %c0_108 = arith.constant 0 : index
    %335 = vector.load %arg5[%c0_107, %c0_108] : memref<128x512xbf16, #tpu.memory_space<vmem>>, vector<128x512xbf16>
    %cst_109 = arith.constant dense<0.000000e+00> : vector<8x512xf32>
    %336 = tpu.matmul %334, %335, %cst_109 {dimension_numbers = #tpu.dot_dimension_numbers<[1], [0], [0], [1], [0, 0, 1, 1], [], []>} : vector<8x128xbf16>, vector<128x512xbf16>, vector<8x512xf32> -> vector<8x512xf32>
    %337 = arith.addf %333, %336 : vector<8x512xf32>
    %338 = vector.extract_strided_slice %337 {offsets = [0, 0], sizes = [8, 384], strides = [1, 1]} : vector<8x512xf32> to vector<8x384xf32>
    %339 = arith.negf %338 : vector<8x384xf32>
    %340 = math.exp %339 : vector<8x384xf32>
    %cst_110 = arith.constant 1.000000e+00 : f32
    %341 = vector.broadcast %cst_110 : f32 to vector<8x384xf32>
    %342 = arith.addf %341, %340 : vector<8x384xf32>
    %343 = arith.divf %341, %342 : vector<8x384xf32>
    %344 = vector.extract_strided_slice %343 {offsets = [0, 0], sizes = [8, 128], strides = [1, 1]} : vector<8x384xf32> to vector<8x128xf32>
    %345 = vector.extract_strided_slice %343 {offsets = [0, 128], sizes = [8, 128], strides = [1, 1]} : vector<8x384xf32> to vector<8x128xf32>
    %346 = vector.extract_strided_slice %343 {offsets = [0, 256], sizes = [8, 128], strides = [1, 1]} : vector<8x384xf32> to vector<8x128xf32>
    %347 = vector.extract_strided_slice %337 {offsets = [0, 384], sizes = [8, 128], strides = [1, 1]} : vector<8x512xf32> to vector<8x128xf32>
    %348 = math.tanh %347 : vector<8x128xf32>
    %349 = arith.mulf %345, %327 : vector<8x128xf32>
    %350 = arith.mulf %344, %348 : vector<8x128xf32>
    %351 = arith.addf %349, %350 : vector<8x128xf32>
    %352 = math.tanh %351 : vector<8x128xf32>
    %353 = arith.mulf %346, %352 : vector<8x128xf32>
    %c5_i32_111 = arith.constant 5 : i32
    %c8_i32_112 = arith.constant 8 : i32
    %354 = arith.muli %c5_i32_111, %c8_i32_112 : i32
    %355 = tpu.assume_multiple %354, 8 : i32
    %356 = arith.index_cast %355 : i32 to index
    %c0_113 = arith.constant 0 : index
    %357 = vector.load %arg8[%356, %c0_113] : memref<64x512xf32, #tpu.memory_space<vmem>>, vector<8x512xf32>
    %358 = arith.truncf %353 : vector<8x128xf32> to vector<8x128xbf16>
    %c0_114 = arith.constant 0 : index
    %c0_115 = arith.constant 0 : index
    %359 = vector.load %arg5[%c0_114, %c0_115] : memref<128x512xbf16, #tpu.memory_space<vmem>>, vector<128x512xbf16>
    %cst_116 = arith.constant dense<0.000000e+00> : vector<8x512xf32>
    %360 = tpu.matmul %358, %359, %cst_116 {dimension_numbers = #tpu.dot_dimension_numbers<[1], [0], [0], [1], [0, 0, 1, 1], [], []>} : vector<8x128xbf16>, vector<128x512xbf16>, vector<8x512xf32> -> vector<8x512xf32>
    %361 = arith.addf %357, %360 : vector<8x512xf32>
    %362 = vector.extract_strided_slice %361 {offsets = [0, 0], sizes = [8, 384], strides = [1, 1]} : vector<8x512xf32> to vector<8x384xf32>
    %363 = arith.negf %362 : vector<8x384xf32>
    %364 = math.exp %363 : vector<8x384xf32>
    %cst_117 = arith.constant 1.000000e+00 : f32
    %365 = vector.broadcast %cst_117 : f32 to vector<8x384xf32>
    %366 = arith.addf %365, %364 : vector<8x384xf32>
    %367 = arith.divf %365, %366 : vector<8x384xf32>
    %368 = vector.extract_strided_slice %367 {offsets = [0, 0], sizes = [8, 128], strides = [1, 1]} : vector<8x384xf32> to vector<8x128xf32>
    %369 = vector.extract_strided_slice %367 {offsets = [0, 128], sizes = [8, 128], strides = [1, 1]} : vector<8x384xf32> to vector<8x128xf32>
    %370 = vector.extract_strided_slice %367 {offsets = [0, 256], sizes = [8, 128], strides = [1, 1]} : vector<8x384xf32> to vector<8x128xf32>
    %371 = vector.extract_strided_slice %361 {offsets = [0, 384], sizes = [8, 128], strides = [1, 1]} : vector<8x512xf32> to vector<8x128xf32>
    %372 = math.tanh %371 : vector<8x128xf32>
    %373 = arith.mulf %369, %351 : vector<8x128xf32>
    %374 = arith.mulf %368, %372 : vector<8x128xf32>
    %375 = arith.addf %373, %374 : vector<8x128xf32>
    %376 = math.tanh %375 : vector<8x128xf32>
    %377 = arith.mulf %370, %376 : vector<8x128xf32>
    %c6_i32_118 = arith.constant 6 : i32
    %c8_i32_119 = arith.constant 8 : i32
    %378 = arith.muli %c6_i32_118, %c8_i32_119 : i32
    %379 = tpu.assume_multiple %378, 8 : i32
    %380 = arith.index_cast %379 : i32 to index
    %c0_120 = arith.constant 0 : index
    %381 = vector.load %arg8[%380, %c0_120] : memref<64x512xf32, #tpu.memory_space<vmem>>, vector<8x512xf32>
    %382 = arith.truncf %377 : vector<8x128xf32> to vector<8x128xbf16>
    %c0_121 = arith.constant 0 : index
    %c0_122 = arith.constant 0 : index
    %383 = vector.load %arg5[%c0_121, %c0_122] : memref<128x512xbf16, #tpu.memory_space<vmem>>, vector<128x512xbf16>
    %cst_123 = arith.constant dense<0.000000e+00> : vector<8x512xf32>
    %384 = tpu.matmul %382, %383, %cst_123 {dimension_numbers = #tpu.dot_dimension_numbers<[1], [0], [0], [1], [0, 0, 1, 1], [], []>} : vector<8x128xbf16>, vector<128x512xbf16>, vector<8x512xf32> -> vector<8x512xf32>
    %385 = arith.addf %381, %384 : vector<8x512xf32>
    %386 = vector.extract_strided_slice %385 {offsets = [0, 0], sizes = [8, 384], strides = [1, 1]} : vector<8x512xf32> to vector<8x384xf32>
    %387 = arith.negf %386 : vector<8x384xf32>
    %388 = math.exp %387 : vector<8x384xf32>
    %cst_124 = arith.constant 1.000000e+00 : f32
    %389 = vector.broadcast %cst_124 : f32 to vector<8x384xf32>
    %390 = arith.addf %389, %388 : vector<8x384xf32>
    %391 = arith.divf %389, %390 : vector<8x384xf32>
    %392 = vector.extract_strided_slice %391 {offsets = [0, 0], sizes = [8, 128], strides = [1, 1]} : vector<8x384xf32> to vector<8x128xf32>
    %393 = vector.extract_strided_slice %391 {offsets = [0, 128], sizes = [8, 128], strides = [1, 1]} : vector<8x384xf32> to vector<8x128xf32>
    %394 = vector.extract_strided_slice %391 {offsets = [0, 256], sizes = [8, 128], strides = [1, 1]} : vector<8x384xf32> to vector<8x128xf32>
    %395 = vector.extract_strided_slice %385 {offsets = [0, 384], sizes = [8, 128], strides = [1, 1]} : vector<8x512xf32> to vector<8x128xf32>
    %396 = math.tanh %395 : vector<8x128xf32>
    %397 = arith.mulf %393, %375 : vector<8x128xf32>
    %398 = arith.mulf %392, %396 : vector<8x128xf32>
    %399 = arith.addf %397, %398 : vector<8x128xf32>
    %400 = math.tanh %399 : vector<8x128xf32>
    %401 = arith.mulf %394, %400 : vector<8x128xf32>
    %c7_i32_125 = arith.constant 7 : i32
    %c8_i32_126 = arith.constant 8 : i32
    %402 = arith.muli %c7_i32_125, %c8_i32_126 : i32
    %403 = tpu.assume_multiple %402, 8 : i32
    %404 = arith.index_cast %403 : i32 to index
    %c0_127 = arith.constant 0 : index
    %405 = vector.load %arg8[%404, %c0_127] : memref<64x512xf32, #tpu.memory_space<vmem>>, vector<8x512xf32>
    %406 = arith.truncf %401 : vector<8x128xf32> to vector<8x128xbf16>
    %c0_128 = arith.constant 0 : index
    %c0_129 = arith.constant 0 : index
    %407 = vector.load %arg5[%c0_128, %c0_129] : memref<128x512xbf16, #tpu.memory_space<vmem>>, vector<128x512xbf16>
    %cst_130 = arith.constant dense<0.000000e+00> : vector<8x512xf32>
    %408 = tpu.matmul %406, %407, %cst_130 {dimension_numbers = #tpu.dot_dimension_numbers<[1], [0], [0], [1], [0, 0, 1, 1], [], []>} : vector<8x128xbf16>, vector<128x512xbf16>, vector<8x512xf32> -> vector<8x512xf32>
    %409 = arith.addf %405, %408 : vector<8x512xf32>
    %410 = vector.extract_strided_slice %409 {offsets = [0, 0], sizes = [8, 384], strides = [1, 1]} : vector<8x512xf32> to vector<8x384xf32>
    %411 = arith.negf %410 : vector<8x384xf32>
    %412 = math.exp %411 : vector<8x384xf32>
    %cst_131 = arith.constant 1.000000e+00 : f32
    %413 = vector.broadcast %cst_131 : f32 to vector<8x384xf32>
    %414 = arith.addf %413, %412 : vector<8x384xf32>
    %415 = arith.divf %413, %414 : vector<8x384xf32>
    %416 = vector.extract_strided_slice %415 {offsets = [0, 0], sizes = [8, 128], strides = [1, 1]} : vector<8x384xf32> to vector<8x128xf32>
    %417 = vector.extract_strided_slice %415 {offsets = [0, 128], sizes = [8, 128], strides = [1, 1]} : vector<8x384xf32> to vector<8x128xf32>
    %418 = vector.extract_strided_slice %415 {offsets = [0, 256], sizes = [8, 128], strides = [1, 1]} : vector<8x384xf32> to vector<8x128xf32>
    %419 = vector.extract_strided_slice %409 {offsets = [0, 384], sizes = [8, 128], strides = [1, 1]} : vector<8x512xf32> to vector<8x128xf32>
    %420 = math.tanh %419 : vector<8x128xf32>
    %421 = arith.mulf %417, %399 : vector<8x128xf32>
    %422 = arith.mulf %416, %420 : vector<8x128xf32>
    %423 = arith.addf %421, %422 : vector<8x128xf32>
    %424 = math.tanh %423 : vector<8x128xf32>
    %425 = arith.mulf %418, %424 : vector<8x128xf32>
    %c8_i32_132 = arith.constant 8 : i32
    %c0_133 = arith.constant 0 : index
    %c0_134 = arith.constant 0 : index
    %426 = vector.load %arg7[%c0_133, %c0_134] : memref<8x128xf32, #tpu.memory_space<vmem>>, vector<8x128xf32>
    tpu.vector_store %arg7[%c0_133, %c0_134], %425 {strides = array<i32>} : memref<8x128xf32, #tpu.memory_space<vmem>>, vector<8x128xf32>,
    return
  }
}

</mosaic_0001>

<bundles_post_ra>
// kernel: lstm_model_forward.3
= control target key start
LH: loop header
LB: loop body
LE: loop exit
PB: predicated region body
PF: predicated region fallthrough
CT: control target
= control target key end

     0   :  { %s196_s1 = inlined_call_operand.vmem [shape: bf16[128,128], index: 1, kind: input, shape index: {}]   ;;  %s197_s2 = inlined_call_operand.vmem [shape: f32[1,128], index: 2, kind: input, shape index: {}]   ;;  %s198_s0 = inlined_call_operand.vmem [shape: f32[8,128], index: 0, kind: input, shape index: {}]   ;;  %s199_s3 = inlined_call_operand.vmem [shape: f32[8,128], index: 3, kind: output, shape index: {}]  }
   0x1   :  { %v141_v0 = vld [vmem:[%s196_s1 + $0x38] sm:$0xff]  ;;  %v140_v1 = vld [vmem:[%s196_s1 + $0x30] sm:$0xff]  ;;  %v139_v2 = vld [vmem:[%s196_s1 + $0x28] sm:$0xff] }
   0x2   :  { %84 = vmatpush.bf16.msra.mxu0 %v141_v0  ;;  %v138_v3 = vld [vmem:[%s196_s1 + $0x20] sm:$0xff]  ;;  %v137_v4 = vld [vmem:[%s196_s1 + $0x18] sm:$0xff]  ;;  %v136_v5 = vld [vmem:[%s196_s1 + $0x10] sm:$0xff] }
   0x3   :  { %v135_v6 = vld [vmem:[%s196_s1 + $0x8] sm:$0xff]  ;;  %v134_v7 = vld [vmem:[%s196_s1] sm:$0xff] }
   0x4   :  { %v14_v8 = vld [vmem:[%s198_s0] sm:$0xff] }
   0x5   :  { %v15_v9 = vpack.c.bf16 %v14_v8, %v14_v8  ;;  %v142_v10 = vld [vmem:[%s197_s2] ss:$0 sm:$0xff] }
   0x6   :  { %85 = vmatpush.bf16.msra.mxu0 %v140_v1 }
   0xa   :  { %86 = vmatpush.bf16.msra.mxu0 %v139_v2 }
   0xe   :  { %87 = vmatpush.bf16.msra.mxu0 %v138_v3 }
  0x12   :  { %88 = vmatpush.bf16.msra.mxu0 %v137_v4 }
  0x16   :  { %89 = vmatpush.bf16.msra.mxu0 %v136_v5 }
  0x1a   :  { %90 = vmatpush.bf16.msra.mxu0 %v135_v6 }
  0x1e   :  { %91 = vmatpush.bf16.msra.mxu0 %v134_v7 }
  0x21   :  { %92 = vmatmul.bf16.vlgmr.msra.gmra.mxu0 %v15_v9 }
  0x9e   :  { %v93_v11 = vpop.f32.mrf.mxu0 }
  0x9f   :  { %v94_v12 = vadd.f32 %v142_v10, %v93_v11 }
  0xa1   :  { %97 = vst [vmem:[%s199_s3] sm:$0xff] %v94_v12 }
  0xa6   :  { %v95_v13 = vpop.f32.mrf.mxu0 }

// kernel: lstm_model_forward.2
= control target key start
LH: loop header
LB: loop body
LE: loop exit
PB: predicated region body
PF: predicated region fallthrough
CT: control target
= control target key end

     0   :  { %12 = vsyncpa [#allocation5], 0  ;;  %s7818_s0 = inlined_call_operand.vmem [shape: bf16[64,128], index: 0, kind: input, shape index: {}]   ;;  %s7819_s1 = inlined_call_operand.vmem [shape: bf16[128,512], index: 1, kind: input, shape index: {}]   ;;  %s7820_s2 = inlined_call_operand.hbm [shape: bf16[128,512], index: 2, kind: input, shape index: {}]   ;;  %s7821_s3 = inlined_call_operand.vmem [shape: f32[1,512], index: 3, kind: input, shape index: {}]   ;;  %s7822_s4 = inlined_call_operand.hbm [shape: bf16[128,512], index: 4, kind: input, shape index: {}]   ;;  %s7823_s5 = inlined_call_operand.hbm [shape: bf16[128,512], index: 5, kind: input, shape index: {}]   ;;  %s7824_s6 = inlined_call_operand.vmem [shape: f32[1,512], index: 6, kind: input, shape index: {}]   ;;  %s7825_s7 = inlined_call_operand.vmem [shape: f32[8,128], index: 7, kind: output, shape index: {}]  }
   0x1   :  { %13 = vsyncpa [#allocation7], 0  ;;  %s37_s26 = sshll.u32 %s7822_s4, 4  ;;  %s6788_s27 = smov [#allocation6]   ;;  %s38_s26 = int_to_ptr.hbm [resolvable:$true] %s37_s26 }
   0x2   :  { %s39_s28 = sshll.u32 %s6788_s27, 4  ;;  %s22_s8 = sshll.u32 %s7820_s2, 4  ;;  %s40_s28 = int_to_ptr.vmem [resolvable:$true] %s39_s28  ;;  %s23_s8 = int_to_ptr.hbm [resolvable:$true] %s22_s8 }
   0x3   :  { %s6789_s9 = smov 256   ;;  %s6790_s10 = smov 16  }
   0x4   :  { %45 = dma.hbm_to_vmem [thread:$0]  %s38_s26, 4096, %s40_s28, [#allocation7], %s6789_s9, %s6789_s9, %s6790_s10  }
   0x5   :  { %s6791_s11 = smov [#allocation4]   ;;  %s50_s15 = sshll.u32 %s7823_s5, 4  ;;  %s51_s15 = int_to_ptr.hbm [resolvable:$true] %s50_s15 }
   0x6   :  { %s24_s12 = sshll.u32 %s6791_s11, 4  ;;  %s6792_s4 = smov [#allocation8]   ;;  %s25_s12 = int_to_ptr.vmem [resolvable:$true] %s24_s12 }
   0x7   :  { %30 = dma.hbm_to_vmem [thread:$0]  %s23_s8, 4096, %s25_s12, [#allocation5], %s6789_s9, %s6789_s9, %s6790_s10  }
   0x8   :  { %s52_s16 = sshll.u32 %s6792_s4, 4  ;;  %s53_s16 = int_to_ptr.vmem [resolvable:$true] %s52_s16 }
   0x9   :  { %58 = dma.hbm_to_vmem [thread:$0]  %s51_s15, 4096, %s53_s16, [#allocation7], %s6789_s9, %s6789_s9, %s6790_s10  }
   0xa   :  { %6784 = dma.done.wait [#allocation5], 4096  }
   0xb   :  { %6785 = vsyncadd [#allocation5], 4294963200 }
   0xc   :  { %6786 = dma.done.wait [#allocation7], 8192  }
   0xd   :  { %6787 = vsyncadd [#allocation7], 4294959104  ;;  %v4732_v0 = vld [vmem:[%s7819_s1 + $0xe0] sm:$0xf]  ;;  %v6124_v1 = vld [vmem:[%s7819_s1 + $0xec] sm:$0xf0] }
   0xe   :  { %v6122_v2 = vld [vmem:[%s7819_s1 + $0xe4] sm:$0xf]  ;;  %v4733_v3 = vor.u32 %v6124_v1, %v4732_v0  ;;  %v4734_v4 = vld [vmem:[%s7819_s1 + $0xf0] sm:$0xf0]  ;;  %v4740_v5 = vld [vmem:[%s7819_s1 + $0xe8] sm:$0xf] }
   0xf   :  { %v6125_v6 = vld [vmem:[%s7819_s1 + $0xf4] sm:$0xf0]  ;;  %v4737_v7 = vor.u32 %v6122_v2, %v4734_v4  ;;  %v6123_v9 = vld [vmem:[%s7819_s1 + $0xec] sm:$0xf]  ;;  %v4742_v10 = vld [vmem:[%s7819_s1 + $0xf8] sm:$0xf0] }
  0x10   :  { %v4741_v8 = vor.u32 %v6125_v6, %v4740_v5  ;;  %v4716_v11 = vld [vmem:[%s7819_s1 + $0xc0] sm:$0xf]  ;;  %308 = vmatpush.bf16.msra.mxu0 %v4733_v3  ;;  %v4745_v12 = vor.u32 %v6123_v9, %v4742_v10  ;;  %v6120_v13 = vld [vmem:[%s7819_s1 + $0xcc] sm:$0xf0]  ;;  %v6118_v14 = vld [vmem:[%s7819_s1 + $0xc4] sm:$0xf] }
  0x11   :  { %v4718_v15 = vld [vmem:[%s7819_s1 + $0xd0] sm:$0xf0]  ;;  %337 = vmatpush.bf16.msra.mxu1 %v4737_v7  ;;  %v4717_v16 = vor.u32 %v6120_v13, %v4716_v11  ;;  %v4724_v18 = vld [vmem:[%s7819_s1 + $0xc8] sm:$0xf]  ;;  %v6121_v19 = vld [vmem:[%s7819_s1 + $0xd4] sm:$0xf0] }
  0x12   :  { %366 = vmatpush.bf16.msra.mxu2 %v4741_v8  ;;  %v4721_v17 = vor.u32 %v6118_v14, %v4718_v15  ;;  %v6119_v20 = vld [vmem:[%s7819_s1 + $0xcc] sm:$0xf]  ;;  %395 = vmatpush.bf16.msra.mxu3 %v4745_v12  ;;  %v4725_v21 = vor.u32 %v6121_v19, %v4724_v18  ;;  %v4726_v22 = vld [vmem:[%s7819_s1 + $0xd8] sm:$0xf0]  ;;  %v4700_v23 = vld [vmem:[%s7819_s1 + $0xa0] sm:$0xf] }
  0x13   :  { %v6116_v24 = vld [vmem:[%s7819_s1 + $0xac] sm:$0xf0]  ;;  %v4729_v25 = vor.u32 %v6119_v20, %v4726_v22  ;;  %v6114_v26 = vld [vmem:[%s7819_s1 + $0xa4] sm:$0xf]  ;;  %v4702_v27 = vld [vmem:[%s7819_s1 + $0xb0] sm:$0xf0] }
  0x14   :  { %v4708_v28 = vld [vmem:[%s7819_s1 + $0xa8] sm:$0xf]  ;;  %309 = vmatpush.bf16.msra.mxu0 %v4717_v16  ;;  %v4701_v29 = vor.u32 %v6116_v24, %v4700_v23  ;;  %v6117_v30 = vld [vmem:[%s7819_s1 + $0xb4] sm:$0xf0]  ;;  %v6115_v31 = vld [vmem:[%s7819_s1 + $0xac] sm:$0xf]  ;;  %v4705_v33 = vor.u32 %v6114_v26, %v4702_v27 }
  0x15   :  { %v4710_v32 = vld [vmem:[%s7819_s1 + $0xb8] sm:$0xf0]  ;;  %338 = vmatpush.bf16.msra.mxu1 %v4721_v17  ;;  %v4709_v34 = vor.u32 %v6117_v30, %v4708_v28  ;;  %v4684_v35 = vld [vmem:[%s7819_s1 + $0x80] sm:$0xf]  ;;  %v6112_v36 = vld [vmem:[%s7819_s1 + $0x8c] sm:$0xf0] }
  0x16   :  { %367 = vmatpush.bf16.msra.mxu2 %v4725_v21  ;;  %v6110_v37 = vld [vmem:[%s7819_s1 + $0x84] sm:$0xf]  ;;  %396 = vmatpush.bf16.msra.mxu3 %v4729_v25  ;;  %v4713_v38 = vor.u32 %v6115_v31, %v4710_v32  ;;  %v4686_v39 = vld [vmem:[%s7819_s1 + $0x90] sm:$0xf0]  ;;  %v4692_v40 = vld [vmem:[%s7819_s1 + $0x88] sm:$0xf]  ;;  %v4685_v44 = vor.u32 %v6112_v36, %v4684_v35 }
  0x17   :  { %v6113_v41 = vld [vmem:[%s7819_s1 + $0x94] sm:$0xf0]  ;;  %v6111_v42 = vld [vmem:[%s7819_s1 + $0x8c] sm:$0xf]  ;;  %v4694_v43 = vld [vmem:[%s7819_s1 + $0x98] sm:$0xf0]  ;;  %v4689_v45 = vor.u32 %v6110_v37, %v4686_v39 }
  0x18   :  { %310 = vmatpush.bf16.msra.mxu0 %v4701_v29  ;;  %v4693_v46 = vor.u32 %v6113_v41, %v4692_v40  ;;  %v4668_v47 = vld [vmem:[%s7819_s1 + $0x60] sm:$0xf]  ;;  %v6108_v48 = vld [vmem:[%s7819_s1 + $0x6c] sm:$0xf0]  ;;  %v6106_v49 = vld [vmem:[%s7819_s1 + $0x64] sm:$0xf]  ;;  %v4697_v50 = vor.u32 %v6111_v42, %v4694_v43 }
  0x19   :  { %339 = vmatpush.bf16.msra.mxu1 %v4705_v33  ;;  %v4670_v51 = vld [vmem:[%s7819_s1 + $0x70] sm:$0xf0]  ;;  %v4676_v52 = vld [vmem:[%s7819_s1 + $0x68] sm:$0xf]  ;;  %v6109_v53 = vld [vmem:[%s7819_s1 + $0x74] sm:$0xf0]  ;;  %v4669_v56 = vor.u32 %v6108_v48, %v4668_v47 }
  0x1a   :  { %368 = vmatpush.bf16.msra.mxu2 %v4709_v34  ;;  %397 = vmatpush.bf16.msra.mxu3 %v4713_v38  ;;  %v6107_v54 = vld [vmem:[%s7819_s1 + $0x6c] sm:$0xf]  ;;  %v4678_v55 = vld [vmem:[%s7819_s1 + $0x78] sm:$0xf0]  ;;  %v4673_v57 = vor.u32 %v6106_v49, %v4670_v51  ;;  %v4677_v58 = vor.u32 %v6109_v53, %v4676_v52  ;;  %v4652_v59 = vld [vmem:[%s7819_s1 + $0x40] sm:$0xf] }
  0x1b   :  { %v6104_v60 = vld [vmem:[%s7819_s1 + $0x4c] sm:$0xf0]  ;;  %v6102_v61 = vld [vmem:[%s7819_s1 + $0x44] sm:$0xf]  ;;  %v4681_v62 = vor.u32 %v6107_v54, %v4678_v55  ;;  %v4654_v63 = vld [vmem:[%s7819_s1 + $0x50] sm:$0xf0] }
  0x1c   :  { %311 = vmatpush.bf16.msra.mxu0 %v4685_v44  ;;  %v4660_v0 = vld [vmem:[%s7819_s1 + $0x48] sm:$0xf]  ;;  %v6105_v1 = vld [vmem:[%s7819_s1 + $0x54] sm:$0xf0]  ;;  %v6103_v2 = vld [vmem:[%s7819_s1 + $0x4c] sm:$0xf]  ;;  %v4653_v4 = vor.u32 %v6104_v60, %v4652_v59  ;;  %v4657_v5 = vor.u32 %v6102_v61, %v4654_v63 }
  0x1d   :  { %340 = vmatpush.bf16.msra.mxu1 %v4689_v45  ;;  %v4662_v3 = vld [vmem:[%s7819_s1 + $0x58] sm:$0xf0]  ;;  %v4661_v6 = vor.u32 %v6105_v1, %v4660_v0  ;;  %v4636_v7 = vld [vmem:[%s7819_s1 + $0x20] sm:$0xf]  ;;  %v6100_v8 = vld [vmem:[%s7819_s1 + $0x2c] sm:$0xf0] }
  0x1e   :  { %369 = vmatpush.bf16.msra.mxu2 %v4693_v46  ;;  %398 = vmatpush.bf16.msra.mxu3 %v4697_v50  ;;  %v6098_v9 = vld [vmem:[%s7819_s1 + $0x24] sm:$0xf]  ;;  %v4665_v10 = vor.u32 %v6103_v2, %v4662_v3  ;;  %v4638_v11 = vld [vmem:[%s7819_s1 + $0x30] sm:$0xf0]  ;;  %v4644_v12 = vld [vmem:[%s7819_s1 + $0x28] sm:$0xf]  ;;  %v4637_v16 = vor.u32 %v6100_v8, %v4636_v7 }
  0x1f   :  { %v6101_v13 = vld [vmem:[%s7819_s1 + $0x34] sm:$0xf0]  ;;  %v6099_v14 = vld [vmem:[%s7819_s1 + $0x2c] sm:$0xf]  ;;  %v4646_v15 = vld [vmem:[%s7819_s1 + $0x38] sm:$0xf0]  ;;  %v4641_v18 = vor.u32 %v6098_v9, %v4638_v11 }
  0x20   :  { %312 = vmatpush.bf16.msra.mxu0 %v4669_v56  ;;  %v4620_v17 = vld [vmem:[%s7819_s1] sm:$0xf]  ;;  %v4645_v19 = vor.u32 %v6101_v13, %v4644_v12  ;;  %v6096_v20 = vld [vmem:[%s7819_s1 + $0xc] sm:$0xf0]  ;;  %v6094_v21 = vld [vmem:[%s7819_s1 + $0x4] sm:$0xf]  ;;  %v4649_v23 = vor.u32 %v6099_v14, %v4646_v15 }
  0x21   :  { %341 = vmatpush.bf16.msra.mxu1 %v4673_v57  ;;  %v4622_v22 = vld [vmem:[%s7819_s1 + $0x10] sm:$0xf0]  ;;  %v4628_v24 = vld [vmem:[%s7819_s1 + $0x8] sm:$0xf]  ;;  %v6097_v25 = vld [vmem:[%s7819_s1 + $0x14] sm:$0xf0]  ;;  %v4621_v30 = vor.u32 %v6096_v20, %v4620_v17 }
  0x22   :  { %370 = vmatpush.bf16.msra.mxu2 %v4677_v58  ;;  %399 = vmatpush.bf16.msra.mxu3 %v4681_v62  ;;  %v6095_v26 = vld [vmem:[%s7819_s1 + $0xc] sm:$0xf]  ;;  %v4630_v27 = vld [vmem:[%s7819_s1 + $0x18] sm:$0xf0]  ;;  %v4860_v28 = vld [vmem:[#allocation4 + $0xe0] sm:$0xf]  ;;  %v4625_v33 = vor.u32 %v6094_v21, %v4622_v22  ;;  %v4629_v34 = vor.u32 %v6097_v25, %v4628_v24 }
  0x23   :  { %v6156_v29 = vld [vmem:[#allocation4 + $0xec] sm:$0xf0]  ;;  %v6154_v31 = vld [vmem:[#allocation4 + $0xe4] sm:$0xf]  ;;  %v4862_v32 = vld [vmem:[#allocation4 + $0xf0] sm:$0xf0]  ;;  %v4633_v36 = vor.u32 %v6095_v26, %v4630_v27 }
  0x24   :  { %313 = vmatpush.bf16.msra.mxu0 %v4653_v4  ;;  %v6090_v35 = vld [vmem:[%s7818_s0] sm:$0xff]  ;;  %v4861_v37 = vor.u32 %v6156_v29, %v4860_v28  ;;  %v4868_v38 = vld [vmem:[#allocation4 + $0xe8] sm:$0xf]  ;;  %v6157_v39 = vld [vmem:[#allocation4 + $0xf4] sm:$0xf0]  ;;  %v4865_v41 = vor.u32 %v6154_v31, %v4862_v32 }
  0x25   :  { %342 = vmatpush.bf16.msra.mxu1 %v4657_v5  ;;  %v4844_v40 = vld [vmem:[#allocation4 + $0xc0] sm:$0xf]  ;;  %v6152_v42 = vld [vmem:[#allocation4 + $0xcc] sm:$0xf0]  ;;  %v6155_v43 = vld [vmem:[#allocation4 + $0xec] sm:$0xf]  ;;  %v4869_v47 = vor.u32 %v6157_v39, %v4868_v38 }
  0x26   :  { %371 = vmatpush.bf16.msra.mxu2 %v4661_v6  ;;  %400 = vmatpush.bf16.msra.mxu3 %v4665_v10  ;;  %v4870_v44 = vld [vmem:[#allocation4 + $0xf8] sm:$0xf0]  ;;  %v6150_v45 = vld [vmem:[#allocation4 + $0xc4] sm:$0xf]  ;;  %v4846_v46 = vld [vmem:[#allocation4 + $0xd0] sm:$0xf0]  ;;  %v4845_v48 = vor.u32 %v6152_v42, %v4844_v40 }
  0x27   :  { %v4852_v49 = vld [vmem:[#allocation4 + $0xc8] sm:$0xf]  ;;  %v6153_v50 = vld [vmem:[#allocation4 + $0xd4] sm:$0xf0]  ;;  %v4873_v51 = vor.u32 %v6155_v43, %v4870_v44  ;;  %v4828_v52 = vld [vmem:[#allocation4 + $0xa0] sm:$0xf]  ;;  %v4849_v53 = vor.u32 %v6150_v45, %v4846_v46 }
  0x28   :  { %314 = vmatpush.bf16.msra.mxu0 %v4637_v16  ;;  %v6148_v54 = vld [vmem:[#allocation4 + $0xac] sm:$0xf0]  ;;  %v6151_v55 = vld [vmem:[#allocation4 + $0xcc] sm:$0xf]  ;;  %v4854_v56 = vld [vmem:[#allocation4 + $0xd8] sm:$0xf0]  ;;  %v4853_v59 = vor.u32 %v6153_v50, %v4852_v49 }
  0x29   :  { %343 = vmatpush.bf16.msra.mxu1 %v4641_v18  ;;  %v6146_v57 = vld [vmem:[#allocation4 + $0xa4] sm:$0xf]  ;;  %v4830_v58 = vld [vmem:[#allocation4 + $0xb0] sm:$0xf0]  ;;  %v4829_v60 = vor.u32 %v6148_v54, %v4828_v52  ;;  %v4836_v61 = vld [vmem:[#allocation4 + $0xa8] sm:$0xf]  ;;  %v4857_v63 = vor.u32 %v6151_v55, %v4854_v56 }
  0x2a   :  { %372 = vmatpush.bf16.msra.mxu2 %v4645_v19  ;;  %401 = vmatpush.bf16.msra.mxu3 %v4649_v23  ;;  %v6149_v62 = vld [vmem:[#allocation4 + $0xb4] sm:$0xf0]  ;;  %v4812_v0 = vld [vmem:[#allocation4 + $0x80] sm:$0xf]  ;;  %v4833_v1 = vor.u32 %v6146_v57, %v4830_v58  ;;  %v6144_v2 = vld [vmem:[#allocation4 + $0x8c] sm:$0xf0] }
  0x2b   :  { %v6147_v3 = vld [vmem:[#allocation4 + $0xac] sm:$0xf]  ;;  %v4838_v4 = vld [vmem:[#allocation4 + $0xb8] sm:$0xf0]  ;;  %v6142_v5 = vld [vmem:[#allocation4 + $0x84] sm:$0xf]  ;;  %v4837_v7 = vor.u32 %v6149_v62, %v4836_v61  ;;  %v4813_v8 = vor.u32 %v6144_v2, %v4812_v0 }
  0x2c   :  { %315 = vmatpush.bf16.msra.mxu0 %v4621_v30  ;;  %v4814_v6 = vld [vmem:[#allocation4 + $0x90] sm:$0xf0]  ;;  %v4820_v9 = vld [vmem:[#allocation4 + $0x88] sm:$0xf]  ;;  %v6145_v10 = vld [vmem:[#allocation4 + $0x94] sm:$0xf0]  ;;  %v4841_v11 = vor.u32 %v6147_v3, %v4838_v4 }
  0x2d   :  { %344 = vmatpush.bf16.msra.mxu1 %v4625_v33  ;;  %v4796_v12 = vld [vmem:[#allocation4 + $0x60] sm:$0xf]  ;;  %v4817_v13 = vor.u32 %v6142_v5, %v4814_v6  ;;  %v6140_v14 = vld [vmem:[#allocation4 + $0x6c] sm:$0xf0]  ;;  %v6143_v15 = vld [vmem:[#allocation4 + $0x8c] sm:$0xf]  ;;  %v4821_v20 = vor.u32 %v6145_v10, %v4820_v9 }
  0x2e   :  { %373 = vmatpush.bf16.msra.mxu2 %v4629_v34  ;;  %402 = vmatpush.bf16.msra.mxu3 %v4633_v36  ;;  %v4822_v16 = vld [vmem:[#allocation4 + $0x98] sm:$0xf0]  ;;  %v6138_v17 = vld [vmem:[#allocation4 + $0x64] sm:$0xf]  ;;  %v4798_v18 = vld [vmem:[#allocation4 + $0x70] sm:$0xf0]  ;;  %v4797_v21 = vor.u32 %v6140_v14, %v4796_v12 }
  0x2f   :  { %316 = vmatmul.bf16.vlgmr.msra.gmra.mxu0 %v6090_v35  ;;  %v6091_v19 = vld [vmem:[%s7818_s0 + $0x8] sm:$0xff]  ;;  %v6141_v23 = vld [vmem:[#allocation4 + $0x74] sm:$0xf0]  ;;  %v4825_v24 = vor.u32 %v6143_v15, %v4822_v16  ;;  %v4780_v25 = vld [vmem:[#allocation4 + $0x40] sm:$0xf]  ;;  %v4801_v26 = vor.u32 %v6138_v17, %v4798_v18  ;;  %v6793_v4 = vmov 0  }
  0x30   :  { %655 = vmatpush.bf16.msrb.mxu0 %v4861_v37  ;;  %345 = vmatmul.bf16.vlgmr.msra.gmra.mxu1 %v6090_v35  ;;  %v4804_v22 = vld [vmem:[#allocation4 + $0x68] sm:$0xf]  ;;  %v6136_v27 = vld [vmem:[#allocation4 + $0x4c] sm:$0xf0]  ;;  %v6139_v28 = vld [vmem:[#allocation4 + $0x6c] sm:$0xf] }
  0x31   :  { %668 = vmatpush.bf16.msrb.mxu1 %v4865_v41  ;;  %374 = vmatmul.bf16.vlgmr.msra.gmra.mxu2 %v6090_v35  ;;  %v4806_v29 = vld [vmem:[#allocation4 + $0x78] sm:$0xf0]  ;;  %v6134_v30 = vld [vmem:[#allocation4 + $0x44] sm:$0xf]  ;;  %v4782_v31 = vld [vmem:[#allocation4 + $0x50] sm:$0xf0]  ;;  %v4805_v32 = vor.u32 %v6141_v23, %v4804_v22  ;;  %v4781_v33 = vor.u32 %v6136_v27, %v4780_v25 }
  0x32   :  { %403 = vmatmul.bf16.vlgmr.msra.gmra.mxu3 %v6090_v35  ;;  %681 = vmatpush.bf16.msrb.mxu2 %v4869_v47  ;;  %v4788_v34 = vld [vmem:[#allocation4 + $0x48] sm:$0xf]  ;;  %v6137_v35 = vld [vmem:[#allocation4 + $0x54] sm:$0xf0]  ;;  %v4809_v36 = vor.u32 %v6139_v28, %v4806_v29  ;;  %v4785_v37 = vor.u32 %v6134_v30, %v4782_v31  ;;  %v4764_v39 = vld [vmem:[#allocation4 + $0x20] sm:$0xf] }
  0x33   :  { %694 = vmatpush.bf16.msrb.mxu3 %v4873_v51  ;;  %v4789_v38 = vor.u32 %v6137_v35, %v4788_v34  ;;  %v6132_v40 = vld [vmem:[#allocation4 + $0x2c] sm:$0xf0]  ;;  %v6130_v41 = vld [vmem:[#allocation4 + $0x24] sm:$0xf]  ;;  %v4766_v43 = vld [vmem:[#allocation4 + $0x30] sm:$0xf0] }
  0x34   :  { %656 = vmatpush.bf16.msrb.mxu0 %v4845_v48  ;;  %v4765_v42 = vor.u32 %v6132_v40, %v4764_v39  ;;  %v4772_v44 = vld [vmem:[#allocation4 + $0x28] sm:$0xf]  ;;  %v6133_v45 = vld [vmem:[#allocation4 + $0x34] sm:$0xf0]  ;;  %v4769_v46 = vor.u32 %v6130_v41, %v4766_v43  ;;  %v6135_v47 = vld [vmem:[#allocation4 + $0x4c] sm:$0xf] }
  0x35   :  { %669 = vmatpush.bf16.msrb.mxu1 %v4849_v53  ;;  %v4790_v48 = vld [vmem:[#allocation4 + $0x58] sm:$0xf0]  ;;  %v4748_v49 = vld [vmem:[#allocation4] sm:$0xf]  ;;  %v6128_v51 = vld [vmem:[#allocation4 + $0xc] sm:$0xf0]  ;;  %v4773_v54 = vor.u32 %v6133_v45, %v4772_v44 }
  0x36   :  { %682 = vmatpush.bf16.msrb.mxu2 %v4853_v59  ;;  %v4793_v50 = vor.u32 %v6135_v47, %v4790_v48  ;;  %v6126_v52 = vld [vmem:[#allocation4 + $0x4] sm:$0xf]  ;;  %v4750_v53 = vld [vmem:[#allocation4 + $0x10] sm:$0xf0]  ;;  %v6131_v55 = vld [vmem:[#allocation4 + $0x2c] sm:$0xf]  ;;  %v4749_v57 = vor.u32 %v6128_v51, %v4748_v49 }
  0x37   :  { %695 = vmatpush.bf16.msrb.mxu3 %v4857_v63  ;;  %v4774_v56 = vld [vmem:[#allocation4 + $0x38] sm:$0xf0]  ;;  %v4756_v59 = vld [vmem:[#allocation4 + $0x8] sm:$0xf]  ;;  %v4753_v61 = vor.u32 %v6126_v52, %v4750_v53  ;;  %v6127_v62 = vld [vmem:[#allocation4 + $0xc] sm:$0xf] }
  0x38   :  { %657 = vmatpush.bf16.msrb.mxu0 %v4829_v60  ;;  %v4777_v58 = vor.u32 %v6131_v55, %v4774_v56  ;;  %v6129_v60 = vld [vmem:[#allocation4 + $0x14] sm:$0xf0]  ;;  %v4758_v63 = vld [vmem:[#allocation4 + $0x18] sm:$0xf0]  ;;  %v6092_v2 = vld [vmem:[%s7818_s0 + $0x10] sm:$0xff] }
  0x39   :  { %670 = vmatpush.bf16.msrb.mxu1 %v4833_v1  ;;  %v4757_v0 = vor.u32 %v6129_v60, %v4756_v59  ;;  %v4761_v1 = vor.u32 %v6127_v62, %v4758_v63  ;;  %v6093_v3 = vld [vmem:[%s7818_s0 + $0x18] sm:$0xff]  ;;  %v4991_v40 = vld [vmem:[#allocation4 + $0xe0] sm:$0xf]  ;;  %v6188_v41 = vld [vmem:[#allocation4 + $0xec] sm:$0xf0] }
  0x3a   :  { %683 = vmatpush.bf16.msrb.mxu2 %v4837_v7  ;;  %v4992_v44 = vor.u32 %v6188_v41, %v4991_v40  ;;  %v4993_v45 = vld [vmem:[#allocation4 + $0xf0] sm:$0xf0]  ;;  %v6189_v47 = vld [vmem:[#allocation4 + $0xf4] sm:$0xf0]  ;;  %v6187_v52 = vld [vmem:[#allocation4 + $0xec] sm:$0xf] }
  0x3b   :  { %696 = vmatpush.bf16.msrb.mxu3 %v4841_v11  ;;  %v114_v11 = vld [vmem:[%s7821_s3] sm:$0xf]  ;;  %v5001_v53 = vld [vmem:[#allocation4 + $0xf8] sm:$0xf0]  ;;  %v6184_v59 = vld [vmem:[#allocation4 + $0xcc] sm:$0xf0] }
  0x3c   :  { %658 = vmatpush.bf16.msrb.mxu0 %v4813_v8  ;;  %v7066_v12 = vperm.slane %v114_v11, 0  ;;  %v7070_v14 = vperm.slane %v114_v11, 1  ;;  %v5004_v56 = vor.u32 %v6187_v52, %v5001_v53  ;;  %v6182_v60 = vld [vmem:[#allocation4 + $0xc4] sm:$0xf]  ;;  %v4977_v62 = vld [vmem:[#allocation4 + $0xd0] sm:$0xf0] }
  0x3d   :  { %671 = vmatpush.bf16.msrb.mxu1 %v4817_v13  ;;  %v4983_v63 = vld [vmem:[#allocation4 + $0xc8] sm:$0xf]  ;;  %v6181_v40 = vld [vmem:[#allocation4 + $0xb4] sm:$0xf0]  ;;  %v4943_v53 = vld [vmem:[#allocation4 + $0x80] sm:$0xf] }
  0x3e   :  { %684 = vmatpush.bf16.msrb.mxu2 %v4821_v20  ;;  %v7080_v20 = vperm.slane %v114_v11, 2 }
  0x3f   :  { %697 = vmatpush.bf16.msrb.mxu3 %v4825_v24  ;;  %321 = vmatmul.bf16.gmra.mxu0 %v6091_v19 }
  0x40   :  { %659 = vmatpush.bf16.msrb.mxu0 %v4797_v21  ;;  %350 = vmatmul.bf16.gmra.mxu1 %v6091_v19  ;;  %v7082_v21 = vperm.slane %v114_v11, 3  ;;  %v4985_v11 = vld [vmem:[#allocation4 + $0xd8] sm:$0xf0] }
  0x41   :  { %672 = vmatpush.bf16.msrb.mxu1 %v4801_v26  ;;  %379 = vmatmul.bf16.gmra.mxu2 %v6091_v19 }
  0x42   :  { %408 = vmatmul.bf16.gmra.mxu3 %v6091_v19  ;;  %685 = vmatpush.bf16.msrb.mxu2 %v4805_v32 }
  0x43   :  { %698 = vmatpush.bf16.msrb.mxu3 %v4809_v36 }
  0x44   :  { %660 = vmatpush.bf16.msrb.mxu0 %v4781_v33 }
  0x45   :  { %673 = vmatpush.bf16.msrb.mxu1 %v4785_v37 }
  0x46   :  { %686 = vmatpush.bf16.msrb.mxu2 %v4789_v38 }
  0x47   :  { %699 = vmatpush.bf16.msrb.mxu3 %v4793_v50 }
  0x48   :  { %661 = vmatpush.bf16.msrb.mxu0 %v4765_v42  ;;  %v6186_v42 = vld [vmem:[#allocation4 + $0xe4] sm:$0xf] }
  0x49   :  { %674 = vmatpush.bf16.msrb.mxu1 %v4769_v46  ;;  %v4999_v46 = vld [vmem:[#allocation4 + $0xe8] sm:$0xf]  ;;  %v4996_v50 = vor.u32 %v6186_v42, %v4993_v45 }
  0x4a   :  { %687 = vmatpush.bf16.msrb.mxu2 %v4773_v54  ;;  %v5000_v51 = vor.u32 %v6189_v47, %v4999_v46  ;;  %v6179_v47 = vld [vmem:[#allocation4 + $0xac] sm:$0xf] }
  0x4b   :  { %700 = vmatpush.bf16.msrb.mxu3 %v4777_v58  ;;  %v4975_v58 = vld [vmem:[#allocation4 + $0xc0] sm:$0xf] }
  0x4c   :  { %662 = vmatpush.bf16.msrb.mxu0 %v4749_v57 }
  0x4d   :  { %675 = vmatpush.bf16.msrb.mxu1 %v4753_v61  ;;  %v4976_v61 = vor.u32 %v6184_v59, %v4975_v58  ;;  %v4945_v59 = vld [vmem:[#allocation4 + $0x90] sm:$0xf0] }
  0x4e   :  { %688 = vmatpush.bf16.msrb.mxu2 %v4757_v0  ;;  %v6185_v0 = vld [vmem:[#allocation4 + $0xd4] sm:$0xf0] }
  0x4f   :  { %701 = vmatpush.bf16.msrb.mxu3 %v4761_v1  ;;  %326 = vmatmul.bf16.gmra.mxu0 %v6092_v2  ;;  %v4980_v1 = vor.u32 %v6182_v60, %v4977_v62  ;;  %v4951_v60 = vld [vmem:[#allocation4 + $0x88] sm:$0xf] }
  0x50   :  { %355 = vmatmul.bf16.gmra.mxu1 %v6092_v2  ;;  %975 = vmatpush.bf16.msra.mxu0 %v4992_v44 }
  0x51   :  { %384 = vmatmul.bf16.gmra.mxu2 %v6092_v2  ;;  %988 = vmatpush.bf16.msra.mxu1 %v4996_v50 }
  0x52   :  { %413 = vmatmul.bf16.gmra.mxu3 %v6092_v2  ;;  %1001 = vmatpush.bf16.msra.mxu2 %v5000_v51  ;;  %v4984_v2 = vor.u32 %v6185_v0, %v4983_v63  ;;  %v6175_v0 = vld [vmem:[#allocation4 + $0x8c] sm:$0xf] }
  0x53   :  { %1014 = vmatpush.bf16.msra.mxu3 %v5004_v56  ;;  %v6174_v56 = vld [vmem:[#allocation4 + $0x84] sm:$0xf] }
  0x54   :  { %976 = vmatpush.bf16.msra.mxu0 %v4976_v61  ;;  %v6177_v61 = vld [vmem:[#allocation4 + $0x94] sm:$0xf0]  ;;  %v4948_v62 = vor.u32 %v6174_v56, %v4945_v59  ;;  %v4911_v56 = vld [vmem:[#allocation4 + $0x40] sm:$0xf]  ;;  %v6166_v59 = vld [vmem:[#allocation4 + $0x44] sm:$0xf] }
  0x55   :  { %989 = vmatpush.bf16.msra.mxu1 %v4980_v1  ;;  %v4952_v63 = vor.u32 %v6177_v61, %v4951_v60  ;;  %v4953_v1 = vld [vmem:[#allocation4 + $0x98] sm:$0xf0]  ;;  %v4913_v61 = vld [vmem:[#allocation4 + $0x50] sm:$0xf0] }
  0x56   :  { %1002 = vmatpush.bf16.msra.mxu2 %v4984_v2  ;;  %v4956_v2 = vor.u32 %v6175_v0, %v4953_v1  ;;  %v4916_v0 = vor.u32 %v6166_v59, %v4913_v61  ;;  %v6169_v1 = vld [vmem:[#allocation4 + $0x54] sm:$0xf0]  ;;  %v6160_v59 = vld [vmem:[#allocation4 + $0xc] sm:$0xf0] }
  0x5f   :  { %331 = vmatmul.bf16.gmra.mxu0 %v6093_v3 }
  0x60   :  { %360 = vmatmul.bf16.gmra.mxu1 %v6093_v3 }
  0x61   :  { %389 = vmatmul.bf16.gmra.mxu2 %v6093_v3 }
  0x62   :  { %418 = vmatmul.bf16.gmra.mxu3 %v6093_v3  ;;  %v6183_v3 = vld [vmem:[#allocation4 + $0xcc] sm:$0xf] }
  0x6f   :  { %663 = vmatmul.bf16.vlgmr.msrb.gmra.mxu0 %v6793_v4 }
  0x70   :  { %676 = vmatmul.bf16.vlgmr.msrb.gmra.mxu1 %v6793_v4 }
  0x71   :  { %689 = vmatmul.bf16.vlgmr.msrb.gmra.mxu2 %v6793_v4 }
  0x72   :  { %702 = vmatmul.bf16.vlgmr.msrb.gmra.mxu3 %v6793_v4 }
  0xac   :  { %v7051_v5 = vpop.f32.mrf.mxu0 }
  0xad   :  { %v7053_v6 = vpop.f32.mrf.mxu1 }
  0xb4   :  { %v7055_v7 = vpop.f32.mrf.mxu2  ;;  %v7059_v9 = vpop.f32.mrf.mxu0 }
  0xb5   :  { %v7057_v8 = vpop.f32.mrf.mxu3  ;;  %v7061_v10 = vpop.f32.mrf.mxu1 }
  0xbc   :  { %v7068_v13 = vpop.f32.mrf.mxu2  ;;  %v322_v16 = vpop.f32.mrf.mxu0 }
  0xbd   :  { %v7072_v15 = vpop.f32.mrf.mxu3  ;;  %v7075_v17 = vadd.f32 %v322_v16, %v7066_v12  ;;  %v351_v18 = vpop.f32.mrf.mxu1  ;;  %v4988_v16 = vor.u32 %v6183_v3, %v4985_v11  ;;  %v4927_v3 = vld [vmem:[#allocation4 + $0x60] sm:$0xf]  ;;  %v6172_v11 = vld [vmem:[#allocation4 + $0x6c] sm:$0xf0] }
  0xbe   :  { %v7078_v19 = vadd.f32 %v351_v18, %v7070_v14  ;;  %v4959_v18 = vld [vmem:[#allocation4 + $0xa0] sm:$0xf] }
  0xbf   :  { %1015 = vmatpush.bf16.msra.mxu3 %v4988_v16  ;;  %v6170_v16 = vld [vmem:[#allocation4 + $0x64] sm:$0xf] }
  0xc4   :  { %v380_v22 = vpop.f32.mrf.mxu2  ;;  %v7087_v25 = vpop.f32.mrf.mxu0 }
  0xc5   :  { %v7085_v23 = vadd.f32 %v380_v22, %v7080_v20  ;;  %v409_v24 = vpop.f32.mrf.mxu3  ;;  %v7092_v27 = vpop.f32.mrf.mxu1  ;;  %v6180_v22 = vld [vmem:[#allocation4 + $0xac] sm:$0xf0] }
  0xc6   :  { %v7090_v26 = vadd.f32 %v409_v24, %v7082_v21  ;;  %v6178_v24 = vld [vmem:[#allocation4 + $0xa4] sm:$0xf] }
  0xcc   :  { %v7094_v28 = vpop.f32.mrf.mxu2  ;;  %v327_v30 = vpop.f32.mrf.mxu0 }
  0xcd   :  { %v7096_v29 = vpop.f32.mrf.mxu3  ;;  %v7099_v31 = vadd.f32 %v327_v30, %v7066_v12  ;;  %v356_v32 = vpop.f32.mrf.mxu1 }
  0xce   :  { %v7102_v33 = vadd.f32 %v356_v32, %v7070_v14  ;;  %v4960_v32 = vor.u32 %v6180_v22, %v4959_v18  ;;  %v318_v18 = vadd.f32 %v7051_v5, %v7066_v12 }
  0xd0   :  { %977 = vmatpush.bf16.msra.mxu0 %v4960_v32  ;;  %v4935_v32 = vld [vmem:[#allocation4 + $0x68] sm:$0xf] }
  0xd4   :  { %v385_v34 = vpop.f32.mrf.mxu2  ;;  %v7107_v37 = vpop.f32.mrf.mxu0 }
  0xd5   :  { %v7105_v35 = vadd.f32 %v385_v34, %v7080_v20  ;;  %v414_v36 = vpop.f32.mrf.mxu3  ;;  %v7112_v39 = vpop.f32.mrf.mxu1  ;;  %v4961_v34 = vld [vmem:[#allocation4 + $0xb0] sm:$0xf0] }
  0xd6   :  { %v7110_v38 = vadd.f32 %v414_v36, %v7082_v21  ;;  %v4967_v36 = vld [vmem:[#allocation4 + $0xa8] sm:$0xf]  ;;  %v4964_v45 = vor.u32 %v6178_v24, %v4961_v34  ;;  %v4928_v24 = vor.u32 %v6172_v11, %v4927_v3  ;;  %v6173_v34 = vld [vmem:[#allocation4 + $0x74] sm:$0xf0]  ;;  %v4921_v11 = vld [vmem:[#allocation4 + $0x58] sm:$0xf0] }
  0xd7   :  { %v4968_v46 = vor.u32 %v6181_v40, %v4967_v36  ;;  %v347_v36 = vadd.f32 %v7053_v6, %v7070_v14 }
  0xd8   :  { %990 = vmatpush.bf16.msra.mxu1 %v4964_v45 }
  0xd9   :  { %1003 = vmatpush.bf16.msra.mxu2 %v4968_v46  ;;  %v4936_v46 = vor.u32 %v6173_v34, %v4935_v32  ;;  %v6162_v34 = vld [vmem:[#allocation4 + $0x24] sm:$0xf] }
  0xdc   :  { %v7114_v43 = vpop.f32.mrf.mxu2  ;;  %v332_v49 = vpop.f32.mrf.mxu0  ;;  %991 = vmatpush.bf16.msra.mxu1 %v4948_v62  ;;  %v4919_v62 = vld [vmem:[#allocation4 + $0x48] sm:$0xf] }
  0xdd   :  { %v7116_v48 = vpop.f32.mrf.mxu3  ;;  %v7119_v54 = vadd.f32 %v332_v49, %v7066_v12  ;;  %v361_v55 = vpop.f32.mrf.mxu1  ;;  %v4969_v49 = vld [vmem:[#allocation4 + $0xb8] sm:$0xf0]  ;;  %1004 = vmatpush.bf16.msra.mxu2 %v4952_v63  ;;  %v4920_v3 = vor.u32 %v6169_v1, %v4919_v62  ;;  %v4881_v62 = vld [vmem:[#allocation4 + $0x10] sm:$0xf0] }
  0xde   :  { %v7122_v57 = vadd.f32 %v361_v55, %v7070_v14  ;;  %v4972_v52 = vor.u32 %v6179_v47, %v4969_v49  ;;  %v6176_v55 = vld [vmem:[#allocation4 + $0x8c] sm:$0xf0]  ;;  %v6171_v47 = vld [vmem:[#allocation4 + $0x6c] sm:$0xf]  ;;  %v4937_v49 = vld [vmem:[#allocation4 + $0x78] sm:$0xf0] }
  0xdf   :  { %v4944_v58 = vor.u32 %v6176_v55, %v4943_v53  ;;  %v4940_v5 = vor.u32 %v6171_v47, %v4937_v49  ;;  %v6165_v47 = vld [vmem:[#allocation4 + $0x34] sm:$0xf0]  ;;  %v6163_v49 = vld [vmem:[#allocation4 + $0x2c] sm:$0xf] }
  0xe0   :  { %1016 = vmatpush.bf16.msra.mxu3 %v4972_v52 }
  0xe1   :  { %978 = vmatpush.bf16.msra.mxu0 %v4944_v58  ;;  %1005 = vmatpush.bf16.msra.mxu2 %v4936_v46  ;;  %v6168_v58 = vld [vmem:[#allocation4 + $0x4c] sm:$0xf0] }
  0xe2   :  { %v4912_v6 = vor.u32 %v6168_v58, %v4911_v56 }
  0xe4   :  { %v390_v30 = vpop.f32.mrf.mxu2  ;;  %v7127_v44 = vpop.f32.mrf.mxu0  ;;  %1017 = vmatpush.bf16.msra.mxu3 %v4956_v2  ;;  %v6167_v2 = vld [vmem:[#allocation4 + $0x4c] sm:$0xf] }
  0xe5   :  { %v7125_v41 = vadd.f32 %v390_v30, %v7080_v20  ;;  %v419_v42 = vpop.f32.mrf.mxu3  ;;  %v7132_v51 = vpop.f32.mrf.mxu1  ;;  %v4929_v30 = vld [vmem:[#allocation4 + $0x70] sm:$0xf0]  ;;  %979 = vmatpush.bf16.msra.mxu0 %v4928_v24  ;;  %v376_v24 = vadd.f32 %v7055_v7, %v7080_v20  ;;  %1006 = vmatpush.bf16.msra.mxu2 %v4920_v3  ;;  %v4879_v7 = vld [vmem:[#allocation4] sm:$0xf]  ;;  %v6159_v3 = vld [vmem:[#allocation4 + $0xc] sm:$0xf] }
  0xe6   :  { %v7130_v50 = vadd.f32 %v419_v42, %v7082_v21  ;;  %v4932_v45 = vor.u32 %v6170_v16, %v4929_v30  ;;  %v4895_v16 = vld [vmem:[#allocation4 + $0x20] sm:$0xf]  ;;  %v4924_v30 = vor.u32 %v6167_v2, %v4921_v11  ;;  %v4880_v61 = vor.u32 %v6160_v59, %v4879_v7  ;;  %v4889_v11 = vld [vmem:[#allocation4 + $0x18] sm:$0xf0] }
  0xe8   :  { %992 = vmatpush.bf16.msra.mxu1 %v4932_v45  ;;  %1018 = vmatpush.bf16.msra.mxu3 %v4940_v5 }
  0xe9   :  { %980 = vmatpush.bf16.msra.mxu0 %v4912_v6 }
  0xec   :  { %v7136_v22 = vpop.f32.mrf.mxu2  ;;  %v664_v42 = vpop.f32.mrf.mxu0  ;;  %993 = vmatpush.bf16.msra.mxu1 %v4916_v0  ;;  %1019 = vmatpush.bf16.msra.mxu3 %v4924_v30  ;;  %v6161_v0 = vld [vmem:[#allocation4 + $0x14] sm:$0xf0] }
  0xed   :  { %v7140_v40 = vpop.f32.mrf.mxu3  ;;  %v707_v52 = vadd.f32 %v664_v42, %v318_v18  ;;  %v677_v53 = vpop.f32.mrf.mxu1  ;;  %v6164_v18 = vld [vmem:[#allocation4 + $0x2c] sm:$0xf0]  ;;  %v4903_v42 = vld [vmem:[#allocation4 + $0x28] sm:$0xf] }
  0xee   :  { %v708_v55 = vadd.f32 %v677_v53, %v347_v36  ;;  %v4896_v32 = vor.u32 %v6164_v18, %v4895_v16  ;;  %v4897_v36 = vld [vmem:[#allocation4 + $0x30] sm:$0xf0]  ;;  %v4904_v56 = vor.u32 %v6165_v47, %v4903_v42 }
  0xef   :  { %v4874_v60 = vmul.f32 -1.442695, %v707_v52  ;;  %v4900_v46 = vor.u32 %v6162_v34, %v4897_v36  ;;  %v4905_v52 = vld [vmem:[#allocation4 + $0x38] sm:$0xf0]  ;;  %v4892_v34 = vor.u32 %v6159_v3, %v4889_v11 }
  0xf0   :  { %v4875_v63 = vmul.f32 -1.442695, %v708_v55  ;;  %v4908_v58 = vor.u32 %v6163_v49, %v4905_v52  ;;  %981 = vmatpush.bf16.msra.mxu0 %v4896_v32  ;;  %1007 = vmatpush.bf16.msra.mxu2 %v4904_v56 }
  0xf1   :  { %6456 = vpow2.f32 %v4874_v60  ;;  %v6158_v60 = vld [vmem:[#allocation4 + $0x4] sm:$0xf]  ;;  %994 = vmatpush.bf16.msra.mxu1 %v4900_v46  ;;  %v405_v46 = vadd.f32 %v7057_v8, %v7082_v21 }
  0xf2   :  { %6458 = vpow2.f32 %v4875_v63  ;;  %v4887_v63 = vld [vmem:[#allocation4 + $0x8] sm:$0xf]  ;;  %v4884_v2 = vor.u32 %v6158_v60, %v4881_v62  ;;  %1020 = vmatpush.bf16.msra.mxu3 %v4908_v58 }
  0xf3   :  { %v4888_v18 = vor.u32 %v6161_v0, %v4887_v63 }
  0xf4   :  { %v690_v45 = vpop.f32.mrf.mxu2  ;;  %v666_v55 = vpop.f32.mrf.mxu0  ;;  %982 = vmatpush.bf16.msra.mxu0 %v4880_v61 }
  0xf5   :  { %v709_v53 = vadd.f32 %v690_v45, %v376_v24  ;;  %v703_v5 = vpop.f32.mrf.mxu3  ;;  %v679_v6 = vpop.f32.mrf.mxu1  ;;  %995 = vmatpush.bf16.msra.mxu1 %v4884_v2  ;;  %1008 = vmatpush.bf16.msra.mxu2 %v4888_v18 }
  0xf6   :  { %1021 = vmatpush.bf16.msra.mxu3 %v4892_v34  ;;  %v710_v52 = vadd.f32 %v703_v5, %v405_v46 }
  0xf7   :  { %v4876_v1 = vmul.f32 -1.442695, %v709_v53  ;;  %v6457_v16 = vpop.eup %6456 }
  0xf8   :  { %v6459_v24 = vpop.eup %6458  ;;  %v720_v30 = vadd.f32 1.0, %v6457_v16 }
  0xf9   :  { %6460 = vpow2.f32 %v4876_v1  ;;  %v721_v36 = vadd.f32 1.0, %v6459_v24 }
  0xfa   :  { %6462 = vrcp.f32 %v720_v30  ;;  %v734_v59 = vand.u32 2147483648, %v720_v30  ;;  %v732_v61 = vand.u32 2147483647, %v720_v30  ;;  %vm728_vm2 = vweird.f32 %v720_v30 }
  0xfb   :  { %6464 = vrcp.f32 %v721_v36  ;;  %v749_v60 = vand.u32 2147483648, %v721_v36  ;;  %v747_v63 = vand.u32 2147483647, %v721_v36  ;;  %vm743_vm3 = vweird.f32 %v721_v36 }
  0xfc   :  { %v692_v32 = vpop.f32.mrf.mxu2  ;;  %v735_v1 = vor.u32 1.1754944e-38, %v734_v59  ;;  %vm733_vm5 = vcmp.eq.f32.partialorder %v732_v61, 8.507059e+37  ;;  %v6218_v61 = vld [vmem:[#allocation4 + $0xe4] sm:$0xf] }
  0xfd   :  { %v705_v42 = vpop.f32.mrf.mxu3  ;;  %v750_v3 = vor.u32 1.1754944e-38, %v749_v60  ;;  %vm748_vm7 = vcmp.eq.f32.partialorder %v747_v63, 8.507059e+37  ;;  %v5122_v60 = vld [vmem:[#allocation4 + $0xe0] sm:$0xf]  ;;  %v5124_v63 = vld [vmem:[#allocation4 + $0xf0] sm:$0xf0] }
  0xff   :  { %v6461_v45 = vpop.eup %6460 }
 0x100   :  { %v722_v47 = vadd.f32 1.0, %v6461_v45  ;;  %v6463_v49 = vpop.eup %6462 }
 0x101   :  { %v6465_v53 = vpop.eup %6464  ;;  %v724_v55 = vmul.f32 %v6463_v49, %v720_v30  ;;  %vm729_vm0 = vweird.f32 %v6463_v49 }
 0x102   :  { %6466 = vrcp.f32 %v722_v47  ;;  %v739_v56 = vmul.f32 %v6465_v53, %v721_v36  ;;  %vm744_vm1 = vweird.f32 %v6465_v53  ;;  %vm730_vm4 = vmor %vm728_vm2, %vm729_vm0  ;;  %v764_v36 = vand.u32 2147483648, %v722_v47 }
 0x103   :  { %v725_v58 = vsub.f32 1.0, %v724_v55  ;;  %6468 = vtanh.f32 %v710_v52  ;;  %vm745_vm6 = vmor %vm743_vm3, %vm744_vm1  ;;  %vm758_vm9 = vweird.f32 %v722_v47 }
 0x104   :  { %v740_v7 = vsub.f32 1.0, %v739_v56  ;;  %v765_v56 = vor.u32 1.1754944e-38, %v764_v36  ;;  %v5116_v36 = vld [vmem:[#allocation4 + $0xd8] sm:$0xf0] }
 0x105   :  { %v726_v6 = vmul.f32 %v6463_v49, %v725_v58 }
 0x106   :  { %v741_v62 = vmul.f32 %v6465_v53, %v740_v7 }
 0x107   :  { %v727_v8 = vadd.f32 %v6463_v49, %v726_v6  ;;  %v6220_v6 = vld [vmem:[#allocation4 + $0xec] sm:$0xf0] }
 0x108   :  { %v6467_v0 = vpop.eup %6466  ;;  %v742_v2 = vadd.f32 %v6465_v53, %v741_v62  ;;  %v5123_v62 = vor.u32 %v6220_v6, %v5122_v60  ;;  %v6213_v60 = vld [vmem:[#allocation4 + $0xb4] sm:$0xf0] }
 0x109   :  { %v754_v5 = vmul.f32 %v6467_v0, %v722_v47  ;;  %v731_v11 = vsel %vm730_vm4, %v6463_v49, %v727_v8  ;;  %v6469_v16 = vpop.eup %6468  ;;  %vm759_vm8 = vweird.f32 %v6467_v0  ;;  %v762_v49 = vand.u32 2147483647, %v722_v47  ;;  %v5130_v8 = vld [vmem:[#allocation4 + $0xe8] sm:$0xf]  ;;  %v6221_v47 = vld [vmem:[#allocation4 + $0xf4] sm:$0xf0] }
 0x10a   :  { %v736_v24 = vsel %vm733_vm5, %v735_v1, %v731_v11  ;;  %v746_v34 = vsel %vm745_vm6, %v6465_v53, %v742_v2  ;;  %vm760_vm10 = vmor %vm758_vm9, %vm759_vm8  ;;  %v6219_v1 = vld [vmem:[#allocation4 + $0xec] sm:$0xf]  ;;  %v5132_v2 = vld [vmem:[#allocation4 + $0xf8] sm:$0xf0]  ;;  %1296 = vmatpush.bf16.msrb.mxu0 %v5123_v62 }
 0x10b   :  { %v755_v18 = vsub.f32 1.0, %v754_v5  ;;  %v751_v32 = vsel %vm748_vm7, %v750_v3, %v746_v34  ;;  %v770_v42 = vmul.f32 %v6469_v16, %v736_v24  ;;  %vm763_vm11 = vcmp.eq.f32.partialorder %v762_v49, 8.507059e+37  ;;  %v5106_v11 = vld [vmem:[#allocation4 + $0xc0] sm:$0xf]  ;;  %v6216_v16 = vld [vmem:[#allocation4 + $0xcc] sm:$0xf0] }
 0x10c   :  { %v769_v46 = vmul.f32 0.0, %v751_v32  ;;  %v5127_v5 = vor.u32 %v6218_v61, %v5124_v63  ;;  %v5135_v3 = vor.u32 %v6219_v1, %v5132_v2  ;;  %v5107_v24 = vor.u32 %v6216_v16, %v5106_v11  ;;  %v5108_v34 = vld [vmem:[#allocation4 + $0xd0] sm:$0xf0]  ;;  %v5114_v32 = vld [vmem:[#allocation4 + $0xc8] sm:$0xf] }
 0x10d   :  { %v756_v45 = vmul.f32 %v6467_v0, %v755_v18  ;;  %v6214_v18 = vld [vmem:[#allocation4 + $0xc4] sm:$0xf]  ;;  %v6211_v62 = vld [vmem:[#allocation4 + $0xac] sm:$0xf]  ;;  %v5100_v63 = vld [vmem:[#allocation4 + $0xb8] sm:$0xf0] }
 0x10e   :  { %v7146_v52 = vadd.f32 %v770_v42, %v769_v46  ;;  %1309 = vmatpush.bf16.msrb.mxu1 %v5127_v5  ;;  %1335 = vmatpush.bf16.msrb.mxu3 %v5135_v3  ;;  %v6217_v42 = vld [vmem:[#allocation4 + $0xd4] sm:$0xf0]  ;;  %v6208_v5 = vld [vmem:[#allocation4 + $0x8c] sm:$0xf0]  ;;  %v5076_v2 = vld [vmem:[#allocation4 + $0x90] sm:$0xf0] }
 0x10f   :  { %v757_v30 = vadd.f32 %v6467_v0, %v756_v45  ;;  %v5111_v45 = vor.u32 %v6214_v18, %v5108_v34  ;;  %v5115_v46 = vor.u32 %v6217_v42, %v5114_v32  ;;  %1297 = vmatpush.bf16.msrb.mxu0 %v5107_v24  ;;  %v5082_v3 = vld [vmem:[#allocation4 + $0x88] sm:$0xf]  ;;  %v6209_v11 = vld [vmem:[#allocation4 + $0x94] sm:$0xf0]  ;;  %v6207_v24 = vld [vmem:[#allocation4 + $0x8c] sm:$0xf] }
 0x110   :  { %6470 = vtanh.f32 %v7146_v52  ;;  %v5083_v18 = vor.u32 %v6209_v11, %v5082_v3  ;;  %v5084_v34 = vld [vmem:[#allocation4 + $0x98] sm:$0xf0]  ;;  %v5058_v42 = vld [vmem:[#allocation4 + $0x60] sm:$0xf]  ;;  %v5050_v11 = vld [vmem:[#allocation4 + $0x48] sm:$0xf] }
 0x111   :  { %v761_v55 = vsel %vm760_vm10, %v6467_v0, %v757_v30  ;;  %v5131_v0 = vor.u32 %v6221_v47, %v5130_v8  ;;  %v6215_v30 = vld [vmem:[#allocation4 + $0xcc] sm:$0xf]  ;;  %v5103_v8 = vor.u32 %v6211_v62, %v5100_v63  ;;  %v5074_v47 = vld [vmem:[#allocation4 + $0x80] sm:$0xf]  ;;  %v5087_v32 = vor.u32 %v6207_v24, %v5084_v34  ;;  %v5052_v34 = vld [vmem:[#allocation4 + $0x58] sm:$0xf0] }
 0x112   :  { %v766_v53 = vsel %vm763_vm11, %v765_v56, %v761_v55  ;;  %v5119_v49 = vor.u32 %v6215_v30, %v5116_v36  ;;  %1310 = vmatpush.bf16.msrb.mxu1 %v5111_v45  ;;  %v5090_v55 = vld [vmem:[#allocation4 + $0xa0] sm:$0xf]  ;;  %v6212_v56 = vld [vmem:[#allocation4 + $0xac] sm:$0xf0]  ;;  %v5075_v1 = vor.u32 %v6208_v5, %v5074_v47  ;;  %v320_v30 = vadd.f32 %v7059_v9, %v7066_v12 }
 0x113   :  { %1322 = vmatpush.bf16.msrb.mxu2 %v5131_v0  ;;  %v6206_v0 = vld [vmem:[#allocation4 + $0x84] sm:$0xf]  ;;  %v6204_v45 = vld [vmem:[#allocation4 + $0x6c] sm:$0xf0]  ;;  %v349_v36 = vadd.f32 %v7061_v10, %v7070_v14  ;;  %v5042_v9 = vld [vmem:[#allocation4 + $0x40] sm:$0xf] }
 0x114   :  { %1336 = vmatpush.bf16.msrb.mxu3 %v5119_v49  ;;  %v5079_v16 = vor.u32 %v6206_v0, %v5076_v2  ;;  %v5059_v49 = vor.u32 %v6204_v45, %v5058_v42  ;;  %v6200_v47 = vld [vmem:[#allocation4 + $0x4c] sm:$0xf0]  ;;  %v6198_v10 = vld [vmem:[#allocation4 + $0x44] sm:$0xf]  ;;  %v5044_v2 = vld [vmem:[#allocation4 + $0x50] sm:$0xf0]  ;;  %v378_v45 = vadd.f32 %v7068_v13, %v7080_v20 }
 0x115   :  { %v5047_v3 = vor.u32 %v6198_v10, %v5044_v2  ;;  %v6196_v42 = vld [vmem:[#allocation4 + $0x2c] sm:$0xf0] }
 0x116   :  { %v6471_v58 = vpop.eup %6470 }
 0x117   :  { %v773_v7 = vmul.f32 %v6471_v58, %v766_v53  ;;  %1323 = vmatpush.bf16.msrb.mxu2 %v5115_v46  ;;  %v6210_v58 = vld [vmem:[#allocation4 + $0xa4] sm:$0xf]  ;;  %v5091_v53 = vor.u32 %v6212_v56, %v5090_v55  ;;  %v5060_v55 = vld [vmem:[#allocation4 + $0x70] sm:$0xf0]  ;;  %v5066_v56 = vld [vmem:[#allocation4 + $0x68] sm:$0xf] }
 0x118   :  { %1337 = vmatpush.bf16.msrb.mxu3 %v5103_v8  ;;  %v6202_v46 = vld [vmem:[#allocation4 + $0x64] sm:$0xf] }
 0x119   :  { %v774_v59 = vpack.c.bf16 %v773_v7, %v773_v7  ;;  %v5092_v7 = vld [vmem:[#allocation4 + $0xb0] sm:$0xf0]  ;;  %1298 = vmatpush.bf16.msrb.mxu0 %v5091_v53 }
 0x11a   :  { %v5095_v6 = vor.u32 %v6210_v58, %v5092_v7  ;;  %v6205_v58 = vld [vmem:[#allocation4 + $0x74] sm:$0xf0] }
 0x11b   :  { %775 = vst [vmem:[#allocation3] sm:$0xf] %v774_v59  ;;  %983 = vmatmul.bf16.vlgmr.msra.gmra.mxu0 %v774_v59  ;;  %996 = vmatmul.bf16.vlgmr.msra.gmra.mxu1 %v774_v59 }
 0x11c   :  { %1009 = vmatmul.bf16.vlgmr.msra.gmra.mxu2 %v774_v59  ;;  %1022 = vmatmul.bf16.vlgmr.msra.gmra.mxu3 %v774_v59  ;;  %v5098_v59 = vld [vmem:[#allocation4 + $0xa8] sm:$0xf] }
 0x11d   :  { %v5099_v61 = vor.u32 %v6213_v60, %v5098_v59  ;;  %1311 = vmatpush.bf16.msrb.mxu1 %v5095_v6  ;;  %1299 = vmatpush.bf16.msrb.mxu0 %v5075_v1  ;;  %v5063_v59 = vor.u32 %v6202_v46, %v5060_v55  ;;  %v5067_v60 = vor.u32 %v6205_v58, %v5066_v56  ;;  %v6203_v6 = vld [vmem:[#allocation4 + $0x6c] sm:$0xf]  ;;  %v5034_v55 = vld [vmem:[#allocation4 + $0x28] sm:$0xf] }
 0x11e   :  { %1338 = vmatpush.bf16.msrb.mxu3 %v5087_v32  ;;  %v5043_v1 = vor.u32 %v6200_v47, %v5042_v9  ;;  %v5026_v32 = vld [vmem:[#allocation4 + $0x20] sm:$0xf]  ;;  %v6192_v9 = vld [vmem:[#allocation4 + $0xc] sm:$0xf0]  ;;  %v6190_v47 = vld [vmem:[#allocation4 + $0x4] sm:$0xf] }
 0x11f   :  { %1324 = vmatpush.bf16.msrb.mxu2 %v5099_v61  ;;  %v5068_v61 = vld [vmem:[#allocation4 + $0x78] sm:$0xf0] }
 0x120   :  { %v5071_v8 = vor.u32 %v6203_v6, %v5068_v61 }
 0x121   :  { %1312 = vmatpush.bf16.msrb.mxu1 %v5079_v16  ;;  %1300 = vmatpush.bf16.msrb.mxu0 %v5059_v49  ;;  %v6201_v16 = vld [vmem:[#allocation4 + $0x54] sm:$0xf0]  ;;  %v5028_v49 = vld [vmem:[#allocation4 + $0x30] sm:$0xf0] }
 0x122   :  { %1339 = vmatpush.bf16.msrb.mxu3 %v5071_v8  ;;  %v5051_v24 = vor.u32 %v6201_v16, %v5050_v11  ;;  %v5010_v8 = vld [vmem:[#allocation4] sm:$0xf]  ;;  %v6191_v11 = vld [vmem:[#allocation4 + $0xc] sm:$0xf]  ;;  %v5020_v16 = vld [vmem:[#allocation4 + $0x18] sm:$0xf0] }
 0x123   :  { %1325 = vmatpush.bf16.msrb.mxu2 %v5083_v18  ;;  %v6199_v18 = vld [vmem:[#allocation4 + $0x4c] sm:$0xf]  ;;  %v5011_v10 = vor.u32 %v6192_v9, %v5010_v8 }
 0x124   :  { %v5055_v46 = vor.u32 %v6199_v18, %v5052_v34 }
 0x125   :  { %1313 = vmatpush.bf16.msrb.mxu1 %v5063_v59  ;;  %1301 = vmatpush.bf16.msrb.mxu0 %v5043_v1  ;;  %v6195_v59 = vld [vmem:[#allocation4 + $0x2c] sm:$0xf]  ;;  %v6193_v1 = vld [vmem:[#allocation4 + $0x14] sm:$0xf0] }
 0x126   :  { %1340 = vmatpush.bf16.msrb.mxu3 %v5055_v46 }
 0x127   :  { %1326 = vmatpush.bf16.msrb.mxu2 %v5067_v60  ;;  %v5036_v60 = vld [vmem:[#allocation4 + $0x38] sm:$0xf0] }
 0x128   :  { %v5039_v13 = vor.u32 %v6195_v59, %v5036_v60 }
 0x129   :  { %1314 = vmatpush.bf16.msrb.mxu1 %v5047_v3 }
 0x12a   :  { %1341 = vmatpush.bf16.msrb.mxu3 %v5039_v13 }
 0x12b   :  { %1327 = vmatpush.bf16.msrb.mxu2 %v5051_v24 }
 0x198   :  { %v984_v53 = vpop.f32.mrf.mxu0  ;;  %v997_v7 = vpop.f32.mrf.mxu1 }
 0x199   :  { %v1027_v62 = vadd.f32 %v984_v53, %v320_v30  ;;  %v1028_v63 = vadd.f32 %v997_v7, %v349_v36  ;;  %v5027_v30 = vor.u32 %v6196_v42, %v5026_v32  ;;  %v6194_v36 = vld [vmem:[#allocation4 + $0x24] sm:$0xf]  ;;  %v6197_v7 = vld [vmem:[#allocation4 + $0x34] sm:$0xf0]  ;;  %v5023_v42 = vor.u32 %v6191_v11, %v5020_v16 }
 0x19a   :  { %v5031_v53 = vor.u32 %v6194_v36, %v5028_v49  ;;  %v407_v49 = vadd.f32 %v7072_v15, %v7082_v21 }
 0x19b   :  { %v5005_v5 = vmul.f32 -1.442695, %v1027_v62  ;;  %v5006_v0 = vmul.f32 -1.442695, %v1028_v63  ;;  %v5035_v63 = vor.u32 %v6197_v7, %v5034_v55  ;;  %1302 = vmatpush.bf16.msrb.mxu0 %v5027_v30  ;;  %1342 = vmatpush.bf16.msrb.mxu3 %v5023_v42 }
 0x19c   :  { %1315 = vmatpush.bf16.msrb.mxu1 %v5031_v53 }
 0x19d   :  { %6472 = vpow2.f32 %v5005_v5  ;;  %v5012_v5 = vld [vmem:[#allocation4 + $0x10] sm:$0xf0]  ;;  %1328 = vmatpush.bf16.msrb.mxu2 %v5035_v63 }
 0x19e   :  { %6474 = vpow2.f32 %v5006_v0  ;;  %v5018_v0 = vld [vmem:[#allocation4 + $0x8] sm:$0xf]  ;;  %v5015_v3 = vor.u32 %v6190_v47, %v5012_v5 }
 0x19f   :  { %v1010_v56 = vpop.f32.mrf.mxu2  ;;  %v1023_v58 = vpop.f32.mrf.mxu3  ;;  %v5019_v24 = vor.u32 %v6193_v1, %v5018_v0  ;;  %1303 = vmatpush.bf16.msrb.mxu0 %v5011_v10 }
 0x1a0   :  { %v1029_v6 = vadd.f32 %v1010_v56, %v378_v45  ;;  %v986_v61 = vpop.f32.mrf.mxu0  ;;  %v999_v62 = vpop.f32.mrf.mxu1  ;;  %1316 = vmatpush.bf16.msrb.mxu1 %v5015_v3  ;;  %v1030_v53 = vadd.f32 %v1023_v58, %v407_v49 }
 0x1a1   :  { %1329 = vmatpush.bf16.msrb.mxu2 %v5019_v24 }
 0x1a2   :  { %v5007_v2 = vmul.f32 -1.442695, %v1029_v6 }
 0x1a3   :  { %v6473_v18 = vpop.eup %6472 }
 0x1a4   :  { %v6475_v34 = vpop.eup %6474  ;;  %v1040_v32 = vadd.f32 1.0, %v6473_v18  ;;  %6476 = vpow2.f32 %v5007_v2 }
 0x1a5   :  { %v1041_v45 = vadd.f32 1.0, %v6475_v34 }
 0x1a6   :  { %6478 = vrcp.f32 %v1040_v32  ;;  %v1054_v62 = vand.u32 2147483648, %v1040_v32  ;;  %v1052_v8 = vand.u32 2147483647, %v1040_v32  ;;  %vm1048_vm14 = vweird.f32 %v1040_v32 }
 0x1a7   :  { %6480 = vrcp.f32 %v1041_v45  ;;  %v1012_v46 = vpop.f32.mrf.mxu2  ;;  %v1025_v30 = vpop.f32.mrf.mxu3  ;;  %v1069_v63 = vand.u32 2147483648, %v1041_v45  ;;  %v1067_v47 = vand.u32 2147483647, %v1041_v45  ;;  %vm1063_vm15 = vweird.f32 %v1041_v45 }
 0x1a8   :  { %v1055_v5 = vor.u32 1.1754944e-38, %v1054_v62  ;;  %vm1053_vm2 = vcmp.eq.f32.partialorder %v1052_v8, 8.507059e+37 }
 0x1a9   :  { %v1070_v1 = vor.u32 1.1754944e-38, %v1069_v63  ;;  %vm1068_vm3 = vcmp.eq.f32.partialorder %v1067_v47, 8.507059e+37  ;;  %v5255_v63 = vld [vmem:[#allocation4 + $0xf0] sm:$0xf0]  ;;  %v6251_v47 = vld [vmem:[#allocation4 + $0xec] sm:$0xf] }
 0x1aa   :  { %v6477_v36 = vpop.eup %6476 }
 0x1ab   :  { %v1042_v55 = vadd.f32 1.0, %v6477_v36 }
 0x1ac   :  { %v6479_v56 = vpop.eup %6478 }
 0x1ad   :  { %v6481_v7 = vpop.eup %6480  ;;  %v1044_v59 = vmul.f32 %v6479_v56, %v1040_v32  ;;  %6482 = vrcp.f32 %v1042_v55  ;;  %vm1049_vm12 = vweird.f32 %v6479_v56  ;;  %v1084_v30 = vand.u32 2147483648, %v1042_v55 }
 0x1ae   :  { %v1059_v60 = vmul.f32 %v6481_v7, %v1041_v45  ;;  %6484 = vtanh.f32 %v1030_v53  ;;  %vm1064_vm13 = vweird.f32 %v6481_v7  ;;  %vm1050_vm0 = vmor %vm1048_vm14, %vm1049_vm12  ;;  %vm1078_vm5 = vweird.f32 %v1042_v55 }
 0x1af   :  { %v1045_v6 = vsub.f32 1.0, %v1044_v59  ;;  %vm1065_vm1 = vmor %vm1063_vm15, %vm1064_vm13  ;;  %v1082_v36 = vand.u32 2147483647, %v1042_v55 }
 0x1b0   :  { %v1060_v61 = vsub.f32 1.0, %v1059_v60 }
 0x1b1   :  { %v1046_v13 = vmul.f32 %v6479_v56, %v1045_v6  ;;  %vm1083_vm7 = vcmp.eq.f32.partialorder %v1082_v36, 8.507059e+37  ;;  %v6252_v6 = vld [vmem:[#allocation4 + $0xec] sm:$0xf0] }
 0x1b2   :  { %v1061_v9 = vmul.f32 %v6481_v7, %v1060_v61  ;;  %v6250_v61 = vld [vmem:[#allocation4 + $0xe4] sm:$0xf] }
 0x1b3   :  { %v6483_v10 = vpop.eup %6482  ;;  %v1047_v15 = vadd.f32 %v6479_v56, %v1046_v13  ;;  %v5261_v13 = vld [vmem:[#allocation4 + $0xe8] sm:$0xf]  ;;  %v5258_v8 = vor.u32 %v6250_v61, %v5255_v63  ;;  %v5205_v61 = vld [vmem:[#allocation4 + $0x80] sm:$0xf]  ;;  %v6238_v63 = vld [vmem:[#allocation4 + $0x84] sm:$0xf] }
 0x1b4   :  { %v1074_v58 = vmul.f32 %v6483_v10, %v1042_v55  ;;  %v1062_v0 = vadd.f32 %v6481_v7, %v1061_v9  ;;  %v6485_v3 = vpop.eup %6484  ;;  %vm1079_vm4 = vweird.f32 %v6483_v10  ;;  %v6253_v55 = vld [vmem:[#allocation4 + $0xf4] sm:$0xf0] }
 0x1b5   :  { %v1051_v2 = vsel %vm1050_vm0, %v6479_v56, %v1047_v15  ;;  %vm1080_vm6 = vmor %vm1078_vm5, %vm1079_vm4  ;;  %v1085_v56 = vor.u32 1.1754944e-38, %v1084_v30  ;;  %v5262_v9 = vor.u32 %v6253_v55, %v5261_v13  ;;  %1630 = vmatpush.bf16.msra.mxu1 %v5258_v8  ;;  %v6242_v30 = vld [vmem:[#allocation4 + $0xa4] sm:$0xf]  ;;  %v5207_v55 = vld [vmem:[#allocation4 + $0x90] sm:$0xf0] }
 0x1b6   :  { %v1075_v11 = vsub.f32 1.0, %v1074_v58  ;;  %v1056_v16 = vsel %vm1053_vm2, %v1055_v5, %v1051_v2  ;;  %v1066_v18 = vsel %vm1065_vm1, %v6481_v7, %v1062_v0  ;;  %v5237_v58 = vld [vmem:[#allocation4 + $0xc0] sm:$0xf]  ;;  %v6248_v5 = vld [vmem:[#allocation4 + $0xcc] sm:$0xf0] }
 0x1b7   :  { %v1071_v24 = vsel %vm1068_vm3, %v1070_v1, %v1066_v18  ;;  %v1090_v34 = vmul.f32 %v6485_v3, %v1056_v16  ;;  %1643 = vmatpush.bf16.msra.mxu2 %v5262_v9  ;;  %v6246_v0 = vld [vmem:[#allocation4 + $0xc4] sm:$0xf]  ;;  %v5238_v1 = vor.u32 %v6248_v5, %v5237_v58  ;;  %v5239_v2 = vld [vmem:[#allocation4 + $0xd0] sm:$0xf0]  ;;  %v5245_v3 = vld [vmem:[#allocation4 + $0xc8] sm:$0xf] }
 0x1b8   :  { %v1076_v42 = vmul.f32 %v6483_v10, %v1075_v11  ;;  %v1089_v46 = vmul.f32 %v1071_v24, %v7146_v52  ;;  %v5253_v52 = vld [vmem:[#allocation4 + $0xe0] sm:$0xf]  ;;  %v6249_v11 = vld [vmem:[#allocation4 + $0xd4] sm:$0xf0]  ;;  %v5242_v16 = vor.u32 %v6246_v0, %v5239_v2  ;;  %v6247_v24 = vld [vmem:[#allocation4 + $0xcc] sm:$0xf] }
 0x1b9   :  { %v5254_v62 = vor.u32 %v6252_v6, %v5253_v52  ;;  %v5246_v18 = vor.u32 %v6249_v11, %v5245_v3  ;;  %v5231_v52 = vld [vmem:[#allocation4 + $0xb8] sm:$0xf0]  ;;  %v5213_v8 = vld [vmem:[#allocation4 + $0x88] sm:$0xf]  ;;  %v6241_v9 = vld [vmem:[#allocation4 + $0x94] sm:$0xf0] }
 0x1ba   :  { %v7158_v32 = vadd.f32 %v1090_v34, %v1089_v46  ;;  %v1077_v45 = vadd.f32 %v6483_v10, %v1076_v42  ;;  %v5247_v34 = vld [vmem:[#allocation4 + $0xd8] sm:$0xf0]  ;;  %1631 = vmatpush.bf16.msra.mxu1 %v5242_v16  ;;  %v5221_v46 = vld [vmem:[#allocation4 + $0xa0] sm:$0xf]  ;;  %v6234_v2 = vld [vmem:[#allocation4 + $0x64] sm:$0xf] }
 0x1bb   :  { %1617 = vmatpush.bf16.msra.mxu0 %v5254_v62  ;;  %v5250_v42 = vor.u32 %v6247_v24, %v5247_v34  ;;  %1644 = vmatpush.bf16.msra.mxu2 %v5246_v18  ;;  %v6240_v62 = vld [vmem:[#allocation4 + $0x8c] sm:$0xf0]  ;;  %v5215_v58 = vld [vmem:[#allocation4 + $0x98] sm:$0xf0]  ;;  %v5189_v0 = vld [vmem:[#allocation4 + $0x60] sm:$0xf] }
 0x1bc   :  { %6486 = vtanh.f32 %v7158_v32  ;;  %v1081_v49 = vsel %vm1080_vm6, %v6483_v10, %v1077_v45  ;;  %v5263_v10 = vld [vmem:[#allocation4 + $0xf8] sm:$0xf0]  ;;  %v6244_v45 = vld [vmem:[#allocation4 + $0xac] sm:$0xf0]  ;;  %v5206_v13 = vor.u32 %v6240_v62, %v5205_v61  ;;  %v5191_v11 = vld [vmem:[#allocation4 + $0x70] sm:$0xf0] }
 0x1bd   :  { %v1086_v7 = vsel %vm1083_vm7, %v1085_v56, %v1081_v49  ;;  %v5266_v15 = vor.u32 %v6251_v47, %v5263_v10  ;;  %v5222_v36 = vor.u32 %v6244_v45, %v5221_v46  ;;  %v5223_v49 = vld [vmem:[#allocation4 + $0xb0] sm:$0xf0]  ;;  %v5229_v56 = vld [vmem:[#allocation4 + $0xa8] sm:$0xf]  ;;  %v5210_v47 = vor.u32 %v6238_v63, %v5207_v55  ;;  %v6237_v18 = vld [vmem:[#allocation4 + $0x74] sm:$0xf0] }
 0x1be   :  { %v5214_v10 = vor.u32 %v6241_v9, %v5213_v8  ;;  %v5197_v16 = vld [vmem:[#allocation4 + $0x68] sm:$0xf]  ;;  %v6235_v45 = vld [vmem:[#allocation4 + $0x6c] sm:$0xf]  ;;  %v5175_v61 = vld [vmem:[#allocation4 + $0x50] sm:$0xf0] }
 0x1bf   :  { %1656 = vmatpush.bf16.msra.mxu3 %v5266_v15  ;;  %1618 = vmatpush.bf16.msra.mxu0 %v5238_v1  ;;  %v6239_v15 = vld [vmem:[#allocation4 + $0x8c] sm:$0xf]  ;;  %v6236_v1 = vld [vmem:[#allocation4 + $0x6c] sm:$0xf0]  ;;  %v5198_v46 = vor.u32 %v6237_v18, %v5197_v16  ;;  %v5181_v63 = vld [vmem:[#allocation4 + $0x48] sm:$0xf] }
 0x1c0   :  { %v5218_v5 = vor.u32 %v6239_v15, %v5215_v58  ;;  %v5190_v3 = vor.u32 %v6236_v1, %v5189_v0  ;;  %v6231_v55 = vld [vmem:[#allocation4 + $0x4c] sm:$0xf]  ;;  %v5157_v8 = vld [vmem:[#allocation4 + $0x20] sm:$0xf]  ;;  %v6228_v9 = vld [vmem:[#allocation4 + $0x2c] sm:$0xf0] }
 0x1c1   :  { %v6226_v15 = vld [vmem:[#allocation4 + $0x24] sm:$0xf]  ;;  %v5159_v58 = vld [vmem:[#allocation4 + $0x30] sm:$0xf0]  ;;  %v5167_v16 = vld [vmem:[#allocation4 + $0x38] sm:$0xf0] }
 0x1c2   :  { %v6487_v53 = vpop.eup %6486 }
 0x1c3   :  { %v1093_v59 = vmul.f32 %v6487_v53, %v1086_v7  ;;  %1657 = vmatpush.bf16.msra.mxu3 %v5250_v42  ;;  %v6245_v53 = vld [vmem:[#allocation4 + $0xb4] sm:$0xf0]  ;;  %v5226_v7 = vor.u32 %v6242_v30, %v5223_v49  ;;  %1619 = vmatpush.bf16.msra.mxu0 %v5222_v36  ;;  %v5194_v42 = vor.u32 %v6234_v2, %v5191_v11  ;;  %v5199_v30 = vld [vmem:[#allocation4 + $0x78] sm:$0xf0]  ;;  %v6227_v11 = vld [vmem:[#allocation4 + $0x2c] sm:$0xf] }
 0x1c4   :  { %v5162_v2 = vor.u32 %v6226_v15, %v5159_v58 }
 0x1c5   :  { %v1094_v60 = vpack.c.bf16 %v1093_v59, %v1093_v59  ;;  %v5230_v59 = vor.u32 %v6245_v53, %v5229_v56  ;;  %1632 = vmatpush.bf16.msra.mxu1 %v5226_v7  ;;  %v5202_v56 = vor.u32 %v6235_v45, %v5199_v30  ;;  %v5173_v53 = vld [vmem:[#allocation4 + $0x40] sm:$0xf]  ;;  %v6232_v7 = vld [vmem:[#allocation4 + $0x4c] sm:$0xf0] }
 0x1c6   :  { %v5141_v45 = vld [vmem:[#allocation4] sm:$0xf]  ;;  %v6224_v30 = vld [vmem:[#allocation4 + $0xc] sm:$0xf0] }
 0x1c7   :  { %1096 = vst [vmem:[#allocation3 + $0x4] sm:$0xf] %v1094_v60  ;;  %1304 = vmatmul.bf16.vlgmr.msrb.gmra.mxu0 %v1094_v60  ;;  %1317 = vmatmul.bf16.vlgmr.msrb.gmra.mxu1 %v1094_v60 }
 0x1c8   :  { %1330 = vmatmul.bf16.vlgmr.msrb.gmra.mxu2 %v1094_v60  ;;  %1343 = vmatmul.bf16.vlgmr.msrb.gmra.mxu3 %v1094_v60  ;;  %v6243_v60 = vld [vmem:[#allocation4 + $0xac] sm:$0xf] }
 0x1c9   :  { %v5234_v6 = vor.u32 %v6243_v60, %v5231_v52  ;;  %1645 = vmatpush.bf16.msra.mxu2 %v5230_v59  ;;  %1620 = vmatpush.bf16.msra.mxu0 %v5206_v13  ;;  %v6230_v59 = vld [vmem:[#allocation4 + $0x44] sm:$0xf]  ;;  %v6233_v13 = vld [vmem:[#allocation4 + $0x54] sm:$0xf0] }
 0x1ca   :  { %1633 = vmatpush.bf16.msra.mxu1 %v5210_v47  ;;  %v5178_v62 = vor.u32 %v6230_v59, %v5175_v61 }
 0x1cb   :  { %1658 = vmatpush.bf16.msra.mxu3 %v5234_v6  ;;  %v5174_v6 = vor.u32 %v6232_v7, %v5173_v53  ;;  %v5149_v53 = vld [vmem:[#allocation4 + $0x8] sm:$0xf]  ;;  %v6225_v7 = vld [vmem:[#allocation4 + $0x14] sm:$0xf0] }
 0x1cd   :  { %1646 = vmatpush.bf16.msra.mxu2 %v5214_v10  ;;  %1621 = vmatpush.bf16.msra.mxu0 %v5190_v3  ;;  %v5158_v10 = vor.u32 %v6228_v9, %v5157_v8  ;;  %v6229_v3 = vld [vmem:[#allocation4 + $0x34] sm:$0xf0] }
 0x1ce   :  { %1634 = vmatpush.bf16.msra.mxu1 %v5194_v42 }
 0x1cf   :  { %1659 = vmatpush.bf16.msra.mxu3 %v5218_v5  ;;  %v5165_v5 = vld [vmem:[#allocation4 + $0x28] sm:$0xf] }
 0x1d0   :  { %v5166_v42 = vor.u32 %v6229_v3, %v5165_v5 }
 0x1d1   :  { %1647 = vmatpush.bf16.msra.mxu2 %v5198_v46  ;;  %1622 = vmatpush.bf16.msra.mxu0 %v5174_v6  ;;  %v5170_v46 = vor.u32 %v6227_v11, %v5167_v16  ;;  %v5151_v6 = vld [vmem:[#allocation4 + $0x18] sm:$0xf0] }
 0x1d2   :  { %1635 = vmatpush.bf16.msra.mxu1 %v5178_v62 }
 0x1d3   :  { %1660 = vmatpush.bf16.msra.mxu3 %v5202_v56  ;;  %v5143_v56 = vld [vmem:[#allocation4 + $0x10] sm:$0xf0] }
 0x1d5   :  { %1623 = vmatpush.bf16.msra.mxu0 %v5158_v10 }
 0x1d6   :  { %1636 = vmatpush.bf16.msra.mxu1 %v5162_v2 }
 0x244   :  { %v1305_v24 = vpop.f32.mrf.mxu0  ;;  %v1318_v34 = vpop.f32.mrf.mxu1 }
 0x245   :  { %v1348_v36 = vadd.f32 %v1305_v24, %v7075_v17  ;;  %v1349_v49 = vadd.f32 %v1318_v34, %v7078_v19  ;;  %v5182_v17 = vor.u32 %v6233_v13, %v5181_v63  ;;  %v5183_v19 = vld [vmem:[#allocation4 + $0x58] sm:$0xf0] }
 0x246   :  { %v5186_v47 = vor.u32 %v6231_v55, %v5183_v19 }
 0x247   :  { %v5136_v60 = vmul.f32 -1.442695, %v1348_v36  ;;  %v5137_v52 = vmul.f32 -1.442695, %v1349_v49  ;;  %1648 = vmatpush.bf16.msra.mxu2 %v5182_v17  ;;  %v6222_v36 = vld [vmem:[#allocation4 + $0x4] sm:$0xf]  ;;  %v5142_v49 = vor.u32 %v6224_v30, %v5141_v45 }
 0x248   :  { %1661 = vmatpush.bf16.msra.mxu3 %v5186_v47 }
 0x249   :  { %6488 = vpow2.f32 %v5136_v60  ;;  %v5146_v60 = vor.u32 %v6222_v36, %v5143_v56  ;;  %1624 = vmatpush.bf16.msra.mxu0 %v5142_v49 }
 0x24a   :  { %6490 = vpow2.f32 %v5137_v52  ;;  %v6223_v52 = vld [vmem:[#allocation4 + $0xc] sm:$0xf] }
 0x24b   :  { %v1331_v0 = vpop.f32.mrf.mxu2  ;;  %v1344_v1 = vpop.f32.mrf.mxu3  ;;  %1649 = vmatpush.bf16.msra.mxu2 %v5166_v42  ;;  %v5154_v13 = vor.u32 %v6223_v52, %v5151_v6  ;;  %1637 = vmatpush.bf16.msra.mxu1 %v5146_v60 }
 0x24c   :  { %v1350_v18 = vadd.f32 %v1331_v0, %v7085_v23  ;;  %v1307_v24 = vpop.f32.mrf.mxu0  ;;  %v1320_v34 = vpop.f32.mrf.mxu1  ;;  %v5150_v23 = vor.u32 %v6225_v7, %v5149_v53  ;;  %1662 = vmatpush.bf16.msra.mxu3 %v5170_v46  ;;  %v1351_v10 = vadd.f32 %v1344_v1, %v7090_v26 }
 0x24e   :  { %v5138_v59 = vmul.f32 -1.442695, %v1350_v18 }
 0x24f   :  { %v6489_v61 = vpop.eup %6488  ;;  %1650 = vmatpush.bf16.msra.mxu2 %v5150_v23 }
 0x250   :  { %v6491_v62 = vpop.eup %6490  ;;  %v1361_v63 = vadd.f32 1.0, %v6489_v61  ;;  %6492 = vpow2.f32 %v5138_v59  ;;  %1663 = vmatpush.bf16.msra.mxu3 %v5154_v13 }
 0x251   :  { %v1362_v55 = vadd.f32 1.0, %v6491_v62 }
 0x252   :  { %6494 = vrcp.f32 %v1361_v63  ;;  %v1375_v3 = vand.u32 2147483648, %v1361_v63  ;;  %v1373_v18 = vand.u32 2147483647, %v1361_v63  ;;  %vm1369_vm10 = vweird.f32 %v1361_v63 }
 0x253   :  { %6496 = vrcp.f32 %v1362_v55  ;;  %v1333_v17 = vpop.f32.mrf.mxu2  ;;  %v1346_v19 = vpop.f32.mrf.mxu3  ;;  %v1390_v11 = vand.u32 2147483648, %v1362_v55  ;;  %v1388_v34 = vand.u32 2147483647, %v1362_v55  ;;  %vm1384_vm11 = vweird.f32 %v1362_v55 }
 0x254   :  { %v1376_v1 = vor.u32 1.1754944e-38, %v1375_v3  ;;  %vm1374_vm14 = vcmp.eq.f32.partialorder %v1373_v18, 8.507059e+37 }
 0x255   :  { %v1391_v30 = vor.u32 1.1754944e-38, %v1390_v11  ;;  %vm1389_vm15 = vcmp.eq.f32.partialorder %v1388_v34, 8.507059e+37  ;;  %v6283_v11 = vld [vmem:[#allocation4 + $0xec] sm:$0xf]  ;;  %v6280_v34 = vld [vmem:[#allocation4 + $0xcc] sm:$0xf0] }
 0x256   :  { %v6493_v8 = vpop.eup %6492 }
 0x257   :  { %v1363_v9 = vadd.f32 1.0, %v6493_v8 }
 0x258   :  { %v6495_v47 = vpop.eup %6494 }
 0x259   :  { %v6497_v15 = vpop.eup %6496  ;;  %v1365_v58 = vmul.f32 %v6495_v47, %v1361_v63  ;;  %6498 = vrcp.f32 %v1363_v9  ;;  %vm1370_vm8 = vweird.f32 %v6495_v47  ;;  %v1405_v62 = vand.u32 2147483648, %v1363_v9 }
 0x25a   :  { %v1380_v5 = vmul.f32 %v6497_v15, %v1362_v55  ;;  %6500 = vtanh.f32 %v1351_v10  ;;  %vm1385_vm9 = vweird.f32 %v6497_v15  ;;  %vm1371_vm12 = vmor %vm1369_vm10, %vm1370_vm8  ;;  %vm1399_vm1 = vweird.f32 %v1363_v9  ;;  %v6284_v10 = vld [vmem:[#allocation4 + $0xec] sm:$0xf0] }
 0x25b   :  { %v1366_v0 = vsub.f32 1.0, %v1365_v58  ;;  %vm1386_vm13 = vmor %vm1384_vm11, %vm1385_vm9  ;;  %v1403_v63 = vand.u32 2147483647, %v1363_v9  ;;  %v1406_v55 = vor.u32 1.1754944e-38, %v1405_v62  ;;  %v6277_v62 = vld [vmem:[#allocation4 + $0xb4] sm:$0xf0] }
 0x25c   :  { %v1381_v2 = vsub.f32 1.0, %v1380_v5  ;;  %v5386_v5 = vld [vmem:[#allocation4 + $0xf0] sm:$0xf0] }
 0x25d   :  { %v1367_v16 = vmul.f32 %v6495_v47, %v1366_v0  ;;  %vm1404_vm3 = vcmp.eq.f32.partialorder %v1403_v63, 8.507059e+37  ;;  %v5392_v0 = vld [vmem:[#allocation4 + $0xe8] sm:$0xf] }
 0x25e   :  { %v1382_v24 = vmul.f32 %v6497_v15, %v1381_v2 }
 0x25f   :  { %v6499_v42 = vpop.eup %6498  ;;  %v1368_v46 = vadd.f32 %v6495_v47, %v1367_v16  ;;  %v5394_v16 = vld [vmem:[#allocation4 + $0xf8] sm:$0xf0] }
 0x260   :  { %v1395_v26 = vmul.f32 %v6499_v42, %v1363_v9  ;;  %v1383_v45 = vadd.f32 %v6497_v15, %v1382_v24  ;;  %v6501_v49 = vpop.eup %6500  ;;  %vm1400_vm0 = vweird.f32 %v6499_v42  ;;  %v6285_v9 = vld [vmem:[#allocation4 + $0xf4] sm:$0xf0]  ;;  %v5397_v18 = vor.u32 %v6283_v11, %v5394_v16  ;;  %v5368_v24 = vld [vmem:[#allocation4 + $0xc0] sm:$0xf] }
 0x261   :  { %v1372_v36 = vsel %vm1371_vm12, %v6495_v47, %v1368_v46  ;;  %vm1401_vm2 = vmor %vm1399_vm1, %vm1400_vm0  ;;  %v5393_v3 = vor.u32 %v6285_v9, %v5392_v0  ;;  %v5369_v46 = vor.u32 %v6280_v34, %v5368_v24  ;;  %v5320_v16 = vld [vmem:[#allocation4 + $0x60] sm:$0xf]  ;;  %v6266_v24 = vld [vmem:[#allocation4 + $0x64] sm:$0xf]  ;;  %v325_v34 = vadd.f32 %v7087_v25, %v7066_v12 }
 0x262   :  { %v1396_v56 = vsub.f32 1.0, %v1395_v26  ;;  %v1377_v53 = vsel %vm1374_vm14, %v1376_v1, %v1372_v36  ;;  %v1387_v7 = vsel %vm1386_vm13, %v6497_v15, %v1383_v45  ;;  %v6282_v15 = vld [vmem:[#allocation4 + $0xe4] sm:$0xf]  ;;  %1977 = vmatpush.bf16.msrb.mxu3 %v5397_v18  ;;  %v5370_v26 = vld [vmem:[#allocation4 + $0xd0] sm:$0xf0] }
 0x263   :  { %v1392_v59 = vsel %vm1389_vm15, %v1391_v30, %v1387_v7  ;;  %v1411_v60 = vmul.f32 %v6501_v49, %v1377_v53  ;;  %v5389_v2 = vor.u32 %v6282_v15, %v5386_v5  ;;  %1964 = vmatpush.bf16.msrb.mxu2 %v5393_v3  ;;  %v5376_v1 = vld [vmem:[#allocation4 + $0xc8] sm:$0xf]  ;;  %v6281_v45 = vld [vmem:[#allocation4 + $0xd4] sm:$0xf0]  ;;  %v6279_v49 = vld [vmem:[#allocation4 + $0xcc] sm:$0xf] }
 0x264   :  { %v1397_v52 = vmul.f32 %v6499_v42, %v1396_v56  ;;  %v1410_v6 = vmul.f32 %v1392_v59, %v7158_v32  ;;  %v5384_v32 = vld [vmem:[#allocation4 + $0xe0] sm:$0xf]  ;;  %v5377_v36 = vor.u32 %v6281_v45, %v5376_v1  ;;  %v5378_v56 = vld [vmem:[#allocation4 + $0xd8] sm:$0xf0]  ;;  %v6276_v59 = vld [vmem:[#allocation4 + $0xac] sm:$0xf0] }
 0x265   :  { %v5385_v58 = vor.u32 %v6284_v10, %v5384_v32  ;;  %1951 = vmatpush.bf16.msrb.mxu1 %v5389_v2  ;;  %v5381_v53 = vor.u32 %v6279_v49, %v5378_v56  ;;  %v5352_v7 = vld [vmem:[#allocation4 + $0xa0] sm:$0xf]  ;;  %v6270_v32 = vld [vmem:[#allocation4 + $0x84] sm:$0xf]  ;;  %v5338_v15 = vld [vmem:[#allocation4 + $0x90] sm:$0xf0] }
 0x266   :  { %v7166_v61 = vadd.f32 %v1411_v60, %v1410_v6  ;;  %v1398_v23 = vadd.f32 %v6499_v42, %v1397_v52  ;;  %v6274_v60 = vld [vmem:[#allocation4 + $0xa4] sm:$0xf]  ;;  %v5353_v52 = vor.u32 %v6276_v59, %v5352_v7  ;;  %v5354_v6 = vld [vmem:[#allocation4 + $0xb0] sm:$0xf0]  ;;  %v6273_v5 = vld [vmem:[#allocation4 + $0x94] sm:$0xf0]  ;;  %v5341_v0 = vor.u32 %v6270_v32, %v5338_v15 }
 0x267   :  { %1938 = vmatpush.bf16.msrb.mxu0 %v5385_v58  ;;  %1965 = vmatpush.bf16.msrb.mxu2 %v5377_v36  ;;  %v5357_v63 = vor.u32 %v6274_v60, %v5354_v6  ;;  %v5344_v58 = vld [vmem:[#allocation4 + $0x88] sm:$0xf]  ;;  %v6271_v2 = vld [vmem:[#allocation4 + $0x8c] sm:$0xf]  ;;  %v5346_v3 = vld [vmem:[#allocation4 + $0x98] sm:$0xf0] }
 0x268   :  { %6502 = vtanh.f32 %v7166_v61  ;;  %v1402_v13 = vsel %vm1401_vm2, %v6499_v42, %v1398_v23  ;;  %v6278_v42 = vld [vmem:[#allocation4 + $0xc4] sm:$0xf]  ;;  %1978 = vmatpush.bf16.msrb.mxu3 %v5381_v53  ;;  %v5360_v23 = vld [vmem:[#allocation4 + $0xa8] sm:$0xf]  ;;  %v5345_v9 = vor.u32 %v6273_v5, %v5344_v58  ;;  %v5349_v11 = vor.u32 %v6271_v2, %v5346_v3  ;;  %v6268_v18 = vld [vmem:[#allocation4 + $0x6c] sm:$0xf0] }
 0x269   :  { %v1407_v19 = vsel %vm1404_vm3, %v1406_v55, %v1402_v13  ;;  %v5373_v30 = vor.u32 %v6278_v42, %v5370_v26  ;;  %v5361_v13 = vor.u32 %v6277_v62, %v5360_v23  ;;  %v6275_v55 = vld [vmem:[#allocation4 + $0xac] sm:$0xf]  ;;  %v354_v42 = vadd.f32 %v7092_v27, %v7070_v14  ;;  %v5322_v26 = vld [vmem:[#allocation4 + $0x70] sm:$0xf0]  ;;  %v5328_v1 = vld [vmem:[#allocation4 + $0x68] sm:$0xf] }
 0x26a   :  { %v6269_v45 = vld [vmem:[#allocation4 + $0x74] sm:$0xf0]  ;;  %v5325_v49 = vor.u32 %v6266_v24, %v5322_v26  ;;  %v6267_v53 = vld [vmem:[#allocation4 + $0x6c] sm:$0xf]  ;;  %v5330_v7 = vld [vmem:[#allocation4 + $0x78] sm:$0xf0]  ;;  %v383_v58 = vadd.f32 %v7094_v28, %v7080_v20 }
 0x26b   :  { %1939 = vmatpush.bf16.msrb.mxu0 %v5369_v46  ;;  %1952 = vmatpush.bf16.msrb.mxu1 %v5373_v30  ;;  %v5321_v46 = vor.u32 %v6268_v18, %v5320_v16  ;;  %v5329_v56 = vor.u32 %v6269_v45, %v5328_v1  ;;  %v5304_v25 = vld [vmem:[#allocation4 + $0x40] sm:$0xf]  ;;  %v6264_v6 = vld [vmem:[#allocation4 + $0x4c] sm:$0xf0]  ;;  %v6262_v27 = vld [vmem:[#allocation4 + $0x44] sm:$0xf] }
 0x26c   :  { %1966 = vmatpush.bf16.msrb.mxu2 %v5361_v13  ;;  %v5306_v13 = vld [vmem:[#allocation4 + $0x50] sm:$0xf0]  ;;  %v5314_v32 = vld [vmem:[#allocation4 + $0x58] sm:$0xf0]  ;;  %v6260_v15 = vld [vmem:[#allocation4 + $0x2c] sm:$0xf0] }
 0x26d   :  { %v5290_v2 = vld [vmem:[#allocation4 + $0x30] sm:$0xf0]  ;;  %v5296_v3 = vld [vmem:[#allocation4 + $0x28] sm:$0xf]  ;;  %v6261_v24 = vld [vmem:[#allocation4 + $0x34] sm:$0xf0] }
 0x26e   :  { %v6503_v17 = vpop.eup %6502  ;;  %v5297_v45 = vor.u32 %v6261_v24, %v5296_v3 }
 0x26f   :  { %v1414_v8 = vmul.f32 %v6503_v17, %v1407_v19  ;;  %v5362_v17 = vld [vmem:[#allocation4 + $0xb8] sm:$0xf0]  ;;  %1940 = vmatpush.bf16.msrb.mxu0 %v5353_v52  ;;  %1953 = vmatpush.bf16.msrb.mxu1 %v5357_v63  ;;  %v5333_v52 = vor.u32 %v6267_v53, %v5330_v7  ;;  %v5305_v63 = vor.u32 %v6264_v6, %v5304_v25  ;;  %v5274_v53 = vld [vmem:[#allocation4 + $0x10] sm:$0xf0]  ;;  %v5280_v7 = vld [vmem:[#allocation4 + $0x8] sm:$0xf] }
 0x270   :  { %v5365_v19 = vor.u32 %v6275_v55, %v5362_v17  ;;  %1967 = vmatpush.bf16.msrb.mxu2 %v5345_v9  ;;  %v5309_v55 = vor.u32 %v6262_v27, %v5306_v13  ;;  %v5312_v17 = vld [vmem:[#allocation4 + $0x48] sm:$0xf]  ;;  %v6258_v9 = vld [vmem:[#allocation4 + $0x24] sm:$0xf]  ;;  %v6255_v25 = vld [vmem:[#allocation4 + $0xc] sm:$0xf] }
 0x271   :  { %v1415_v47 = vpack.c.bf16 %v1414_v8, %v1414_v8  ;;  %v5336_v8 = vld [vmem:[#allocation4 + $0x80] sm:$0xf]  ;;  %v5293_v18 = vor.u32 %v6258_v9, %v5290_v2  ;;  %v5282_v6 = vld [vmem:[#allocation4 + $0x18] sm:$0xf0] }
 0x272   :  { %1979 = vmatpush.bf16.msrb.mxu3 %v5365_v19  ;;  %v6265_v19 = vld [vmem:[#allocation4 + $0x54] sm:$0xf0]  ;;  %v5285_v13 = vor.u32 %v6255_v25, %v5282_v6 }
 0x273   :  { %1417 = vst [vmem:[#allocation3 + $0x8] sm:$0xf] %v1415_v47  ;;  %1625 = vmatmul.bf16.vlgmr.msra.gmra.mxu0 %v1415_v47  ;;  %1638 = vmatmul.bf16.vlgmr.msra.gmra.mxu1 %v1415_v47 }
 0x274   :  { %1651 = vmatmul.bf16.vlgmr.msra.gmra.mxu2 %v1415_v47  ;;  %1664 = vmatmul.bf16.vlgmr.msra.gmra.mxu3 %v1415_v47  ;;  %v6272_v47 = vld [vmem:[#allocation4 + $0x8c] sm:$0xf0] }
 0x275   :  { %v5337_v10 = vor.u32 %v6272_v47, %v5336_v8  ;;  %1954 = vmatpush.bf16.msrb.mxu1 %v5341_v0  ;;  %1968 = vmatpush.bf16.msrb.mxu2 %v5329_v56  ;;  %v6263_v8 = vld [vmem:[#allocation4 + $0x4c] sm:$0xf]  ;;  %v5313_v47 = vor.u32 %v6265_v19, %v5312_v17 }
 0x276   :  { %1980 = vmatpush.bf16.msrb.mxu3 %v5349_v11  ;;  %v5317_v5 = vor.u32 %v6263_v8, %v5314_v32 }
 0x277   :  { %1941 = vmatpush.bf16.msrb.mxu0 %v5337_v10  ;;  %v5288_v10 = vld [vmem:[#allocation4 + $0x20] sm:$0xf] }
 0x278   :  { %v5289_v0 = vor.u32 %v6260_v15, %v5288_v10 }
 0x279   :  { %1955 = vmatpush.bf16.msrb.mxu1 %v5325_v49  ;;  %1969 = vmatpush.bf16.msrb.mxu2 %v5313_v47  ;;  %v6254_v49 = vld [vmem:[#allocation4 + $0x4] sm:$0xf]  ;;  %v412_v47 = vadd.f32 %v7096_v29, %v7082_v21 }
 0x27a   :  { %1981 = vmatpush.bf16.msrb.mxu3 %v5333_v52  ;;  %v5277_v52 = vor.u32 %v6254_v49, %v5274_v53 }
 0x27b   :  { %1942 = vmatpush.bf16.msrb.mxu0 %v5321_v46 }
 0x27d   :  { %1956 = vmatpush.bf16.msrb.mxu1 %v5309_v55  ;;  %1970 = vmatpush.bf16.msrb.mxu2 %v5297_v45 }
 0x27e   :  { %1982 = vmatpush.bf16.msrb.mxu3 %v5317_v5 }
 0x27f   :  { %1943 = vmatpush.bf16.msrb.mxu0 %v5305_v63 }
 0x281   :  { %1957 = vmatpush.bf16.msrb.mxu1 %v5293_v18 }
 0x283   :  { %1944 = vmatpush.bf16.msrb.mxu0 %v5289_v0 }
 0x285   :  { %1958 = vmatpush.bf16.msrb.mxu1 %v5277_v52 }
 0x2f0   :  { %v1626_v30 = vpop.f32.mrf.mxu0  ;;  %v1639_v36 = vpop.f32.mrf.mxu1 }
 0x2f1   :  { %v1669_v59 = vadd.f32 %v1626_v30, %v325_v34  ;;  %v1670_v60 = vadd.f32 %v1639_v36, %v354_v42  ;;  %v6259_v34 = vld [vmem:[#allocation4 + $0x2c] sm:$0xf]  ;;  %v5298_v42 = vld [vmem:[#allocation4 + $0x38] sm:$0xf0]  ;;  %v5272_v30 = vld [vmem:[#allocation4] sm:$0xf] }
 0x2f2   :  { %v5301_v28 = vor.u32 %v6259_v34, %v5298_v42  ;;  %v6256_v36 = vld [vmem:[#allocation4 + $0xc] sm:$0xf0] }
 0x2f3   :  { %v5267_v23 = vmul.f32 -1.442695, %v1669_v59  ;;  %v5268_v62 = vmul.f32 -1.442695, %v1670_v60  ;;  %v5273_v56 = vor.u32 %v6256_v36, %v5272_v30  ;;  %v6257_v59 = vld [vmem:[#allocation4 + $0x14] sm:$0xf0] }
 0x2f4   :  { %1983 = vmatpush.bf16.msrb.mxu3 %v5301_v28 }
 0x2f5   :  { %6504 = vpow2.f32 %v5267_v23  ;;  %v5281_v23 = vor.u32 %v6257_v59, %v5280_v7  ;;  %1945 = vmatpush.bf16.msrb.mxu0 %v5273_v56 }
 0x2f6   :  { %6506 = vpow2.f32 %v5268_v62 }
 0x2f7   :  { %v1652_v11 = vpop.f32.mrf.mxu2  ;;  %v1665_v16 = vpop.f32.mrf.mxu3  ;;  %1971 = vmatpush.bf16.msrb.mxu2 %v5281_v23 }
 0x2f8   :  { %v1671_v46 = vadd.f32 %v1652_v11, %v383_v58  ;;  %v1628_v26 = vpop.f32.mrf.mxu0  ;;  %v1641_v1 = vpop.f32.mrf.mxu1  ;;  %1984 = vmatpush.bf16.msrb.mxu3 %v5285_v13  ;;  %v1672_v15 = vadd.f32 %v1665_v16, %v412_v47 }
 0x2fa   :  { %v5269_v60 = vmul.f32 -1.442695, %v1671_v46 }
 0x2fb   :  { %v6505_v27 = vpop.eup %6504 }
 0x2fc   :  { %v6507_v62 = vpop.eup %6506  ;;  %v1682_v63 = vadd.f32 1.0, %v6505_v27  ;;  %6508 = vpow2.f32 %v5269_v60 }
 0x2fd   :  { %v1683_v55 = vadd.f32 1.0, %v6507_v62 }
 0x2fe   :  { %6510 = vrcp.f32 %v1682_v63  ;;  %v1696_v3 = vand.u32 2147483648, %v1682_v63  ;;  %v1694_v24 = vand.u32 2147483647, %v1682_v63  ;;  %vm1690_vm6 = vweird.f32 %v1682_v63 }
 0x2ff   :  { %6512 = vrcp.f32 %v1683_v55  ;;  %v1654_v17 = vpop.f32.mrf.mxu2  ;;  %v1667_v19 = vpop.f32.mrf.mxu3  ;;  %v1711_v11 = vand.u32 2147483648, %v1683_v55  ;;  %v1709_v42 = vand.u32 2147483647, %v1683_v55  ;;  %vm1705_vm7 = vweird.f32 %v1683_v55 }
 0x300   :  { %v1697_v26 = vor.u32 1.1754944e-38, %v1696_v3  ;;  %vm1695_vm10 = vcmp.eq.f32.partialorder %v1694_v24, 8.507059e+37  ;;  %v6316_v19 = vld [vmem:[#allocation4 + $0xec] sm:$0xf0]  ;;  %v5499_v3 = vld [vmem:[#allocation4 + $0xc0] sm:$0xf] }
 0x301   :  { %v1712_v45 = vor.u32 1.1754944e-38, %v1711_v11  ;;  %vm1710_vm11 = vcmp.eq.f32.partialorder %v1709_v42, 8.507059e+37  ;;  %v6312_v11 = vld [vmem:[#allocation4 + $0xcc] sm:$0xf0]  ;;  %v5507_v42 = vld [vmem:[#allocation4 + $0xc8] sm:$0xf] }
 0x302   :  { %v6509_v8 = vpop.eup %6508  ;;  %v5500_v24 = vor.u32 %v6312_v11, %v5499_v3  ;;  %v6301_v3 = vld [vmem:[#allocation4 + $0x74] sm:$0xf0] }
 0x303   :  { %v1684_v32 = vadd.f32 1.0, %v6509_v8  ;;  %v6314_v8 = vld [vmem:[#allocation4 + $0xe4] sm:$0xf] }
 0x304   :  { %v6511_v10 = vpop.eup %6510 }
 0x305   :  { %v6513_v58 = vpop.eup %6512  ;;  %v1686_v5 = vmul.f32 %v6511_v10, %v1682_v63  ;;  %6514 = vrcp.f32 %v1684_v32  ;;  %vm1691_vm4 = vweird.f32 %v6511_v10  ;;  %v1726_v6 = vand.u32 2147483648, %v1684_v32 }
 0x306   :  { %v1701_v0 = vmul.f32 %v6513_v58, %v1683_v55  ;;  %6516 = vtanh.f32 %v1672_v15  ;;  %vm1706_vm5 = vweird.f32 %v6513_v58  ;;  %vm1692_vm8 = vmor %vm1690_vm6, %vm1691_vm4  ;;  %vm1720_vm13 = vweird.f32 %v1684_v32  ;;  %v5523_v15 = vld [vmem:[#allocation4 + $0xe8] sm:$0xf] }
 0x307   :  { %v1687_v9 = vsub.f32 1.0, %v1686_v5  ;;  %vm1707_vm9 = vmor %vm1705_vm7, %vm1706_vm5  ;;  %v1724_v27 = vand.u32 2147483647, %v1684_v32  ;;  %v1727_v62 = vor.u32 1.1754944e-38, %v1726_v6  ;;  %v5493_v6 = vld [vmem:[#allocation4 + $0xb8] sm:$0xf0] }
 0x308   :  { %v1702_v2 = vsub.f32 1.0, %v1701_v0  ;;  %v6315_v0 = vld [vmem:[#allocation4 + $0xec] sm:$0xf] }
 0x309   :  { %v1688_v18 = vmul.f32 %v6511_v10, %v1687_v9  ;;  %vm1725_vm15 = vcmp.eq.f32.partialorder %v1724_v27, 8.507059e+37  ;;  %v5525_v9 = vld [vmem:[#allocation4 + $0xf8] sm:$0xf0] }
 0x30a   :  { %v1703_v34 = vmul.f32 %v6513_v58, %v1702_v2  ;;  %v5528_v2 = vor.u32 %v6315_v0, %v5525_v9  ;;  %v5453_v9 = vld [vmem:[#allocation4 + $0x70] sm:$0xf0] }
 0x30b   :  { %v6515_v46 = vpop.eup %6514  ;;  %v1689_v29 = vadd.f32 %v6511_v10, %v1688_v18  ;;  %v6310_v18 = vld [vmem:[#allocation4 + $0xc4] sm:$0xf] }
 0x30c   :  { %v1716_v16 = vmul.f32 %v6515_v46, %v1684_v32  ;;  %v1704_v1 = vadd.f32 %v6513_v58, %v1703_v34  ;;  %v6517_v30 = vpop.eup %6516  ;;  %vm1721_vm12 = vweird.f32 %v6515_v46  ;;  %v6317_v32 = vld [vmem:[#allocation4 + $0xf4] sm:$0xf0]  ;;  %2298 = vmatpush.bf16.msra.mxu3 %v5528_v2  ;;  %v5501_v34 = vld [vmem:[#allocation4 + $0xd0] sm:$0xf0]  ;;  %v5459_v2 = vld [vmem:[#allocation4 + $0x68] sm:$0xf] }
 0x30d   :  { %v1693_v28 = vsel %vm1692_vm8, %v6511_v10, %v1689_v29  ;;  %vm1722_vm14 = vmor %vm1720_vm13, %vm1721_vm12  ;;  %v5517_v10 = vld [vmem:[#allocation4 + $0xf0] sm:$0xf0]  ;;  %v5524_v5 = vor.u32 %v6317_v32, %v5523_v15  ;;  %v5504_v29 = vor.u32 %v6310_v18, %v5501_v34  ;;  %v5451_v32 = vld [vmem:[#allocation4 + $0x60] sm:$0xf]  ;;  %v5460_v34 = vor.u32 %v6301_v3, %v5459_v2 }
 0x30e   :  { %v1717_v36 = vsub.f32 1.0, %v1716_v16  ;;  %v1698_v49 = vsel %vm1695_vm10, %v1697_v26, %v1693_v28  ;;  %v1708_v56 = vsel %vm1707_vm9, %v6513_v58, %v1704_v1  ;;  %v5520_v58 = vor.u32 %v6314_v8, %v5517_v10  ;;  %v6311_v26 = vld [vmem:[#allocation4 + $0xcc] sm:$0xf]  ;;  %v5509_v1 = vld [vmem:[#allocation4 + $0xd8] sm:$0xf0] }
 0x30f   :  { %v1713_v53 = vsel %vm1710_vm11, %v1712_v45, %v1708_v56  ;;  %v1732_v7 = vmul.f32 %v6517_v30, %v1698_v49  ;;  %2285 = vmatpush.bf16.msra.mxu2 %v5524_v5  ;;  %v5512_v45 = vor.u32 %v6311_v26, %v5509_v1  ;;  %v5483_v28 = vld [vmem:[#allocation4 + $0xa0] sm:$0xf]  ;;  %v6308_v30 = vld [vmem:[#allocation4 + $0xac] sm:$0xf0]  ;;  %v5485_v56 = vld [vmem:[#allocation4 + $0xb0] sm:$0xf0] }
 0x310   :  { %v1718_v59 = vmul.f32 %v6515_v46, %v1717_v36  ;;  %v1731_v60 = vmul.f32 %v1713_v53, %v7166_v61  ;;  %v5515_v61 = vld [vmem:[#allocation4 + $0xe0] sm:$0xf]  ;;  %2272 = vmatpush.bf16.msra.mxu1 %v5520_v58  ;;  %v6306_v36 = vld [vmem:[#allocation4 + $0xa4] sm:$0xf]  ;;  %v5484_v49 = vor.u32 %v6308_v30, %v5483_v28  ;;  %v5491_v53 = vld [vmem:[#allocation4 + $0xa8] sm:$0xf] }
 0x311   :  { %v5516_v47 = vor.u32 %v6316_v19, %v5515_v61  ;;  %2299 = vmatpush.bf16.msra.mxu3 %v5512_v45  ;;  %v6305_v61 = vld [vmem:[#allocation4 + $0x94] sm:$0xf0]  ;;  %v5477_v10 = vld [vmem:[#allocation4 + $0x98] sm:$0xf0]  ;;  %v6300_v58 = vld [vmem:[#allocation4 + $0x6c] sm:$0xf0] }
 0x312   :  { %v7178_v52 = vadd.f32 %v1732_v7, %v1731_v60  ;;  %v1719_v25 = vadd.f32 %v6515_v46, %v1718_v59  ;;  %v6309_v7 = vld [vmem:[#allocation4 + $0xb4] sm:$0xf0]  ;;  %v5488_v59 = vor.u32 %v6306_v36, %v5485_v56  ;;  %v6298_v5 = vld [vmem:[#allocation4 + $0x64] sm:$0xf]  ;;  %v5452_v0 = vor.u32 %v6300_v58, %v5451_v32  ;;  %v5435_v1 = vld [vmem:[#allocation4 + $0x40] sm:$0xf] }
 0x313   :  { %2259 = vmatpush.bf16.msra.mxu0 %v5516_v47  ;;  %v5492_v60 = vor.u32 %v6309_v7, %v5491_v53  ;;  %v6303_v47 = vld [vmem:[#allocation4 + $0x8c] sm:$0xf]  ;;  %v6296_v45 = vld [vmem:[#allocation4 + $0x4c] sm:$0xf0]  ;;  %v6294_v28 = vld [vmem:[#allocation4 + $0x44] sm:$0xf] }
 0x314   :  { %6518 = vtanh.f32 %v7178_v52  ;;  %v1723_v23 = vsel %vm1722_vm14, %v6515_v46, %v1719_v25  ;;  %v6313_v46 = vld [vmem:[#allocation4 + $0xd4] sm:$0xf0]  ;;  %2273 = vmatpush.bf16.msra.mxu1 %v5504_v29  ;;  %v6307_v25 = vld [vmem:[#allocation4 + $0xac] sm:$0xf]  ;;  %v5480_v15 = vor.u32 %v6303_v47, %v5477_v10  ;;  %v5437_v56 = vld [vmem:[#allocation4 + $0x50] sm:$0xf0] }
 0x315   :  { %v1728_v13 = vsel %vm1725_vm15, %v1727_v62, %v1723_v23  ;;  %v5508_v16 = vor.u32 %v6313_v46, %v5507_v42  ;;  %v5496_v27 = vor.u32 %v6307_v25, %v5493_v6  ;;  %v5467_v23 = vld [vmem:[#allocation4 + $0x80] sm:$0xf]  ;;  %v6304_v62 = vld [vmem:[#allocation4 + $0x8c] sm:$0xf0]  ;;  %v6299_v42 = vld [vmem:[#allocation4 + $0x6c] sm:$0xf]  ;;  %v5440_v53 = vor.u32 %v6294_v28, %v5437_v56 }
 0x316   :  { %v5461_v46 = vld [vmem:[#allocation4 + $0x78] sm:$0xf0]  ;;  %v5443_v7 = vld [vmem:[#allocation4 + $0x48] sm:$0xf]  ;;  %v5419_v25 = vld [vmem:[#allocation4 + $0x20] sm:$0xf] }
 0x317   :  { %2260 = vmatpush.bf16.msra.mxu0 %v5500_v24  ;;  %2286 = vmatpush.bf16.msra.mxu2 %v5508_v16  ;;  %v5456_v24 = vor.u32 %v6298_v5, %v5453_v9  ;;  %v5464_v26 = vor.u32 %v6299_v42, %v5461_v46  ;;  %v6292_v6 = vld [vmem:[#allocation4 + $0x2c] sm:$0xf0]  ;;  %v5429_v47 = vld [vmem:[#allocation4 + $0x38] sm:$0xf0]  ;;  %v6286_v2 = vld [vmem:[#allocation4 + $0x4] sm:$0xf] }
 0x318   :  { %2274 = vmatpush.bf16.msra.mxu1 %v5488_v59  ;;  %2300 = vmatpush.bf16.msra.mxu3 %v5496_v27  ;;  %v6297_v59 = vld [vmem:[#allocation4 + $0x54] sm:$0xf0]  ;;  %v6288_v9 = vld [vmem:[#allocation4 + $0xc] sm:$0xf0]  ;;  %v6287_v46 = vld [vmem:[#allocation4 + $0xc] sm:$0xf] }
 0x31a   :  { %v6519_v63 = vpop.eup %6518 }
 0x31b   :  { %v1735_v55 = vmul.f32 %v6519_v63, %v1728_v13  ;;  %2261 = vmatpush.bf16.msra.mxu0 %v5484_v49  ;;  %2287 = vmatpush.bf16.msra.mxu2 %v5492_v60  ;;  %v6302_v63 = vld [vmem:[#allocation4 + $0x84] sm:$0xf]  ;;  %v5468_v13 = vor.u32 %v6304_v62, %v5467_v23  ;;  %v5436_v49 = vor.u32 %v6296_v45, %v5435_v1  ;;  %v6295_v60 = vld [vmem:[#allocation4 + $0x4c] sm:$0xf] }
 0x31c   :  { %2301 = vmatpush.bf16.msra.mxu3 %v5480_v15  ;;  %v5420_v23 = vor.u32 %v6292_v6, %v5419_v25  ;;  %v6290_v62 = vld [vmem:[#allocation4 + $0x24] sm:$0xf] }
 0x31d   :  { %v1736_v17 = vpack.c.bf16 %v1735_v55, %v1735_v55  ;;  %v5469_v55 = vld [vmem:[#allocation4 + $0x90] sm:$0xf0] }
 0x31e   :  { %v5472_v19 = vor.u32 %v6302_v63, %v5469_v55  ;;  %v5421_v63 = vld [vmem:[#allocation4 + $0x30] sm:$0xf0] }
 0x31f   :  { %1738 = vst [vmem:[#allocation3 + $0xc] sm:$0xf] %v1736_v17  ;;  %1946 = vmatmul.bf16.vlgmr.msrb.gmra.mxu0 %v1736_v17  ;;  %1959 = vmatmul.bf16.vlgmr.msrb.gmra.mxu1 %v1736_v17 }
 0x320   :  { %1972 = vmatmul.bf16.vlgmr.msrb.gmra.mxu2 %v1736_v17  ;;  %1985 = vmatmul.bf16.vlgmr.msrb.gmra.mxu3 %v1736_v17  ;;  %v5475_v17 = vld [vmem:[#allocation4 + $0x88] sm:$0xf] }
 0x321   :  { %v5476_v8 = vor.u32 %v6305_v61, %v5475_v17  ;;  %2262 = vmatpush.bf16.msra.mxu0 %v5468_v13  ;;  %2275 = vmatpush.bf16.msra.mxu1 %v5472_v19  ;;  %v5427_v13 = vld [vmem:[#allocation4 + $0x28] sm:$0xf]  ;;  %v5424_v61 = vor.u32 %v6290_v62, %v5421_v63  ;;  %v6293_v19 = vld [vmem:[#allocation4 + $0x34] sm:$0xf0] }
 0x322   :  { %2302 = vmatpush.bf16.msra.mxu3 %v5464_v26  ;;  %v5428_v58 = vor.u32 %v6293_v19, %v5427_v13 }
 0x323   :  { %2288 = vmatpush.bf16.msra.mxu2 %v5476_v8  ;;  %v6291_v8 = vld [vmem:[#allocation4 + $0x2c] sm:$0xf] }
 0x324   :  { %v5432_v5 = vor.u32 %v6291_v8, %v5429_v47 }
 0x325   :  { %2263 = vmatpush.bf16.msra.mxu0 %v5452_v0  ;;  %2276 = vmatpush.bf16.msra.mxu1 %v5456_v24  ;;  %v5403_v0 = vld [vmem:[#allocation4] sm:$0xf]  ;;  %v6289_v24 = vld [vmem:[#allocation4 + $0x14] sm:$0xf0] }
 0x326   :  { %v5404_v3 = vor.u32 %v6288_v9, %v5403_v0 }
 0x327   :  { %2289 = vmatpush.bf16.msra.mxu2 %v5460_v34 }
 0x329   :  { %2264 = vmatpush.bf16.msra.mxu0 %v5436_v49  ;;  %2277 = vmatpush.bf16.msra.mxu1 %v5440_v53 }
 0x32d   :  { %2265 = vmatpush.bf16.msra.mxu0 %v5420_v23  ;;  %2278 = vmatpush.bf16.msra.mxu1 %v5424_v61 }
 0x331   :  { %2266 = vmatpush.bf16.msra.mxu0 %v5404_v3 }
 0x39c   :  { %v1947_v11 = vpop.f32.mrf.mxu0  ;;  %v1960_v18 = vpop.f32.mrf.mxu1 }
 0x39d   :  { %v1990_v29 = vadd.f32 %v1947_v11, %v7099_v31  ;;  %v1991_v16 = vadd.f32 %v1960_v18, %v7102_v33  ;;  %v5444_v31 = vor.u32 %v6297_v59, %v5443_v7  ;;  %v5445_v33 = vld [vmem:[#allocation4 + $0x58] sm:$0xf0]  ;;  %v5405_v11 = vld [vmem:[#allocation4 + $0x10] sm:$0xf0]  ;;  %v5411_v18 = vld [vmem:[#allocation4 + $0x8] sm:$0xf] }
 0x39e   :  { %v5448_v27 = vor.u32 %v6295_v60, %v5445_v33  ;;  %v5408_v42 = vor.u32 %v6286_v2, %v5405_v11 }
 0x39f   :  { %v5398_v30 = vmul.f32 -1.442695, %v1990_v29  ;;  %v5399_v36 = vmul.f32 -1.442695, %v1991_v16  ;;  %2290 = vmatpush.bf16.msra.mxu2 %v5444_v31  ;;  %v5413_v29 = vld [vmem:[#allocation4 + $0x18] sm:$0xf0] }
 0x3a0   :  { %2303 = vmatpush.bf16.msra.mxu3 %v5448_v27  ;;  %v5416_v45 = vor.u32 %v6287_v46, %v5413_v29  ;;  %2279 = vmatpush.bf16.msra.mxu1 %v5408_v42 }
 0x3a1   :  { %6520 = vpow2.f32 %v5398_v30 }
 0x3a2   :  { %6522 = vpow2.f32 %v5399_v36 }
 0x3a3   :  { %v1973_v55 = vpop.f32.mrf.mxu2  ;;  %v1986_v17 = vpop.f32.mrf.mxu3  ;;  %2291 = vmatpush.bf16.msra.mxu2 %v5428_v58 }
 0x3a4   :  { %v1992_v10 = vadd.f32 %v1973_v55, %v7105_v35  ;;  %v1949_v15 = vpop.f32.mrf.mxu0  ;;  %v1962_v32 = vpop.f32.mrf.mxu1  ;;  %v5412_v35 = vor.u32 %v6289_v24, %v5411_v18  ;;  %2304 = vmatpush.bf16.msra.mxu3 %v5432_v5  ;;  %v1993_v7 = vadd.f32 %v1986_v17, %v7110_v38 }
 0x3a6   :  { %v5400_v34 = vmul.f32 -1.442695, %v1992_v10 }
 0x3a7   :  { %v6521_v16 = vpop.eup %6520  ;;  %2292 = vmatpush.bf16.msra.mxu2 %v5412_v35 }
 0x3a8   :  { %v6523_v26 = vpop.eup %6522  ;;  %v2003_v1 = vadd.f32 1.0, %v6521_v16  ;;  %6524 = vpow2.f32 %v5400_v34  ;;  %2305 = vmatpush.bf16.msra.mxu3 %v5416_v45 }
 0x3a9   :  { %v2004_v28 = vadd.f32 1.0, %v6523_v26  ;;  %v6348_v26 = vld [vmem:[#allocation4 + $0xec] sm:$0xf0] }
 0x3aa   :  { %6526 = vrcp.f32 %v2003_v1  ;;  %v2017_v6 = vand.u32 2147483648, %v2003_v1  ;;  %v2015_v62 = vand.u32 2147483647, %v2003_v1  ;;  %vm2011_vm2 = vweird.f32 %v2003_v1 }
 0x3ab   :  { %6528 = vrcp.f32 %v2004_v28  ;;  %v1975_v30 = vpop.f32.mrf.mxu2  ;;  %v1988_v36 = vpop.f32.mrf.mxu3  ;;  %v2032_v27 = vand.u32 2147483648, %v2004_v28  ;;  %v2030_v13 = vand.u32 2147483647, %v2004_v28  ;;  %vm2026_vm3 = vweird.f32 %v2004_v28 }
 0x3ac   :  { %v2018_v17 = vor.u32 1.1754944e-38, %v2017_v6  ;;  %vm2016_vm6 = vcmp.eq.f32.partialorder %v2015_v62, 8.507059e+37  ;;  %v5654_v30 = vld [vmem:[#allocation4 + $0xe8] sm:$0xf]  ;;  %v6349_v36 = vld [vmem:[#allocation4 + $0xf4] sm:$0xf0] }
 0x3ad   :  { %v2033_v8 = vor.u32 1.1754944e-38, %v2032_v27  ;;  %vm2031_vm7 = vcmp.eq.f32.partialorder %v2030_v13, 8.507059e+37  ;;  %v5632_v6 = vld [vmem:[#allocation4 + $0xd0] sm:$0xf0]  ;;  %v5638_v27 = vld [vmem:[#allocation4 + $0xc8] sm:$0xf] }
 0x3ae   :  { %v6525_v49 = vpop.eup %6524  ;;  %v6343_v13 = vld [vmem:[#allocation4 + $0xcc] sm:$0xf] }
 0x3af   :  { %v2005_v56 = vadd.f32 1.0, %v6525_v49 }
 0x3b0   :  { %v6527_v53 = vpop.eup %6526 }
 0x3b1   :  { %v6529_v59 = vpop.eup %6528  ;;  %v2007_v60 = vmul.f32 %v6527_v53, %v2003_v1  ;;  %6530 = vrcp.f32 %v2005_v56  ;;  %vm2012_vm0 = vweird.f32 %v6527_v53  ;;  %v2047_v18 = vand.u32 2147483648, %v2005_v56  ;;  %v6346_v1 = vld [vmem:[#allocation4 + $0xe4] sm:$0xf] }
 0x3b2   :  { %v2022_v31 = vmul.f32 %v6529_v59, %v2004_v28  ;;  %6532 = vtanh.f32 %v1993_v7  ;;  %vm2027_vm1 = vweird.f32 %v6529_v59  ;;  %vm2013_vm4 = vmor %vm2011_vm2, %vm2012_vm0  ;;  %vm2041_vm9 = vweird.f32 %v2005_v56  ;;  %v5648_v28 = vld [vmem:[#allocation4 + $0xf0] sm:$0xf0]  ;;  %v5656_v7 = vld [vmem:[#allocation4 + $0xf8] sm:$0xf0] }
 0x3b3   :  { %v2008_v33 = vsub.f32 1.0, %v2007_v60  ;;  %vm2028_vm5 = vmor %vm2026_vm3, %vm2027_vm1  ;;  %v2045_v24 = vand.u32 2147483647, %v2005_v56  ;;  %v2048_v42 = vor.u32 1.1754944e-38, %v2047_v18  ;;  %v5651_v49 = vor.u32 %v6346_v1, %v5648_v28  ;;  %v5630_v60 = vld [vmem:[#allocation4 + $0xc0] sm:$0xf] }
 0x3b4   :  { %v2023_v25 = vsub.f32 1.0, %v2022_v31  ;;  %v6344_v31 = vld [vmem:[#allocation4 + $0xcc] sm:$0xf0]  ;;  %v6334_v18 = vld [vmem:[#allocation4 + $0x84] sm:$0xf] }
 0x3b5   :  { %v2009_v23 = vmul.f32 %v6527_v53, %v2008_v33  ;;  %vm2046_vm11 = vcmp.eq.f32.partialorder %v2045_v24, 8.507059e+37  ;;  %2593 = vmatpush.bf16.msrb.mxu1 %v5651_v49  ;;  %v6342_v33 = vld [vmem:[#allocation4 + $0xc4] sm:$0xf]  ;;  %v5582_v1 = vld [vmem:[#allocation4 + $0x60] sm:$0xf] }
 0x3b6   :  { %v2024_v63 = vmul.f32 %v6529_v59, %v2023_v25  ;;  %v5631_v25 = vor.u32 %v6344_v31, %v5630_v60  ;;  %v5635_v62 = vor.u32 %v6342_v33, %v5632_v6  ;;  %v6330_v28 = vld [vmem:[#allocation4 + $0x64] sm:$0xf]  ;;  %v5592_v6 = vld [vmem:[#allocation4 + $0x78] sm:$0xf0] }
 0x3b7   :  { %v6531_v55 = vpop.eup %6530  ;;  %v2010_v61 = vadd.f32 %v6527_v53, %v2009_v23  ;;  %v6345_v23 = vld [vmem:[#allocation4 + $0xd4] sm:$0xf0] }
 0x3b8   :  { %v2037_v38 = vmul.f32 %v6531_v55, %v2005_v56  ;;  %v2025_v19 = vadd.f32 %v6529_v59, %v2024_v63  ;;  %v6533_v10 = vpop.eup %6532  ;;  %vm2042_vm8 = vweird.f32 %v6531_v55  ;;  %v5655_v56 = vor.u32 %v6349_v36, %v5654_v30 }
 0x3b9   :  { %v2014_v47 = vsel %vm2013_vm4, %v6527_v53, %v2010_v61  ;;  %vm2043_vm10 = vmor %vm2041_vm9, %vm2042_vm8  ;;  %v6347_v53 = vld [vmem:[#allocation4 + $0xec] sm:$0xf]  ;;  %v5639_v63 = vor.u32 %v6345_v23, %v5638_v27  ;;  %2594 = vmatpush.bf16.msrb.mxu1 %v5635_v62  ;;  %v330_v30 = vadd.f32 %v7107_v37, %v7066_v12  ;;  %v359_v36 = vadd.f32 %v7112_v39, %v7070_v14  ;;  %v5566_v37 = vld [vmem:[#allocation4 + $0x40] sm:$0xf] }
 0x3ba   :  { %v2038_v15 = vsub.f32 1.0, %v2037_v38  ;;  %v2019_v32 = vsel %vm2016_vm6, %v2018_v17, %v2014_v47  ;;  %v2029_v58 = vsel %vm2028_vm5, %v6529_v59, %v2025_v19  ;;  %v5659_v59 = vor.u32 %v6347_v53, %v5656_v7  ;;  %2606 = vmatpush.bf16.msrb.mxu2 %v5655_v56  ;;  %v5614_v38 = vld [vmem:[#allocation4 + $0xa0] sm:$0xf]  ;;  %v6340_v17 = vld [vmem:[#allocation4 + $0xac] sm:$0xf0] }
 0x3bb   :  { %v2034_v5 = vsel %vm2031_vm7, %v2033_v8, %v2029_v58  ;;  %v2053_v0 = vmul.f32 %v6533_v10, %v2019_v32  ;;  %v6338_v19 = vld [vmem:[#allocation4 + $0xa4] sm:$0xf]  ;;  %v5615_v8 = vor.u32 %v6340_v17, %v5614_v38  ;;  %v5616_v47 = vld [vmem:[#allocation4 + $0xb0] sm:$0xf0]  ;;  %v5622_v10 = vld [vmem:[#allocation4 + $0xa8] sm:$0xf] }
 0x3bc   :  { %v2039_v9 = vmul.f32 %v6531_v55, %v2038_v15  ;;  %v2052_v2 = vmul.f32 %v2034_v5, %v7178_v52  ;;  %v5646_v52 = vld [vmem:[#allocation4 + $0xe0] sm:$0xf]  ;;  %2619 = vmatpush.bf16.msrb.mxu3 %v5659_v59  ;;  %v6341_v15 = vld [vmem:[#allocation4 + $0xb4] sm:$0xf0]  ;;  %v5619_v32 = vor.u32 %v6338_v19, %v5616_v47  ;;  %v6339_v5 = vld [vmem:[#allocation4 + $0xac] sm:$0xf] }
 0x3bd   :  { %v5647_v45 = vor.u32 %v6348_v26, %v5646_v52  ;;  %v5623_v58 = vor.u32 %v6341_v15, %v5622_v10  ;;  %v5608_v52 = vld [vmem:[#allocation4 + $0x98] sm:$0xf0]  ;;  %v5584_v56 = vld [vmem:[#allocation4 + $0x70] sm:$0xf0]  ;;  %v5590_v53 = vld [vmem:[#allocation4 + $0x68] sm:$0xf] }
 0x3be   :  { %v7186_v3 = vadd.f32 %v2053_v0, %v2052_v2  ;;  %v2040_v11 = vadd.f32 %v6531_v55, %v2039_v9  ;;  %2607 = vmatpush.bf16.msrb.mxu2 %v5639_v63  ;;  %v5624_v0 = vld [vmem:[#allocation4 + $0xb8] sm:$0xf0]  ;;  %2595 = vmatpush.bf16.msrb.mxu1 %v5619_v32  ;;  %v5598_v2 = vld [vmem:[#allocation4 + $0x80] sm:$0xf]  ;;  %v6333_v7 = vld [vmem:[#allocation4 + $0x74] sm:$0xf0]  ;;  %v5587_v31 = vor.u32 %v6330_v28, %v5584_v56 }
 0x3bf   :  { %2580 = vmatpush.bf16.msrb.mxu0 %v5647_v45  ;;  %v5627_v9 = vor.u32 %v6339_v5, %v5624_v0  ;;  %v6332_v45 = vld [vmem:[#allocation4 + $0x6c] sm:$0xf0]  ;;  %v5591_v33 = vor.u32 %v6333_v7, %v5590_v53  ;;  %v6326_v39 = vld [vmem:[#allocation4 + $0x44] sm:$0xf]  ;;  %v5568_v38 = vld [vmem:[#allocation4 + $0x50] sm:$0xf0]  ;;  %v388_v5 = vadd.f32 %v7114_v43, %v7080_v20 }
 0x3c0   :  { %6534 = vtanh.f32 %v7186_v3  ;;  %v2044_v34 = vsel %vm2043_vm10, %v6531_v55, %v2040_v11  ;;  %v5640_v55 = vld [vmem:[#allocation4 + $0xd8] sm:$0xf0]  ;;  %v6336_v11 = vld [vmem:[#allocation4 + $0x8c] sm:$0xf0]  ;;  %v5583_v49 = vor.u32 %v6332_v45, %v5582_v1  ;;  %v5571_v17 = vor.u32 %v6326_v39, %v5568_v38  ;;  %v5574_v19 = vld [vmem:[#allocation4 + $0x48] sm:$0xf] }
 0x3c1   :  { %v2049_v29 = vsel %vm2046_vm11, %v2048_v42, %v2044_v34  ;;  %v5643_v61 = vor.u32 %v6343_v13, %v5640_v55  ;;  %v5599_v24 = vor.u32 %v6336_v11, %v5598_v2  ;;  %v5600_v34 = vld [vmem:[#allocation4 + $0x90] sm:$0xf0]  ;;  %v5606_v42 = vld [vmem:[#allocation4 + $0x88] sm:$0xf]  ;;  %v6328_v63 = vld [vmem:[#allocation4 + $0x4c] sm:$0xf0] }
 0x3c2   :  { %2608 = vmatpush.bf16.msrb.mxu2 %v5623_v58  ;;  %v6327_v47 = vld [vmem:[#allocation4 + $0x4c] sm:$0xf]  ;;  %v5576_v15 = vld [vmem:[#allocation4 + $0x58] sm:$0xf0]  ;;  %v5550_v32 = vld [vmem:[#allocation4 + $0x20] sm:$0xf] }
 0x3c3   :  { %2581 = vmatpush.bf16.msrb.mxu0 %v5631_v25  ;;  %2620 = vmatpush.bf16.msrb.mxu3 %v5643_v61  ;;  %v6331_v25 = vld [vmem:[#allocation4 + $0x6c] sm:$0xf]  ;;  %v5567_v61 = vor.u32 %v6328_v63, %v5566_v37  ;;  %v6324_v58 = vld [vmem:[#allocation4 + $0x2c] sm:$0xf0]  ;;  %v5579_v0 = vor.u32 %v6327_v47, %v5576_v15  ;;  %v6322_v2 = vld [vmem:[#allocation4 + $0x24] sm:$0xf] }
 0x3c4   :  { %v5595_v62 = vor.u32 %v6331_v25, %v5592_v6  ;;  %v5552_v11 = vld [vmem:[#allocation4 + $0x30] sm:$0xf0]  ;;  %v5534_v45 = vld [vmem:[#allocation4] sm:$0xf]  ;;  %v6320_v28 = vld [vmem:[#allocation4 + $0xc] sm:$0xf0] }
 0x3c5   :  { %v5542_v56 = vld [vmem:[#allocation4 + $0x8] sm:$0xf]  ;;  %v6321_v53 = vld [vmem:[#allocation4 + $0x14] sm:$0xf0] }
 0x3c6   :  { %v6535_v46 = vpop.eup %6534  ;;  %v5543_v25 = vor.u32 %v6321_v53, %v5542_v56 }
 0x3c7   :  { %v2056_v16 = vmul.f32 %v6535_v46, %v2049_v29  ;;  %2582 = vmatpush.bf16.msrb.mxu0 %v5615_v8  ;;  %2621 = vmatpush.bf16.msrb.mxu3 %v5627_v9  ;;  %v6337_v46 = vld [vmem:[#allocation4 + $0x94] sm:$0xf0]  ;;  %v5603_v29 = vor.u32 %v6334_v18, %v5600_v34  ;;  %v5551_v9 = vor.u32 %v6324_v58, %v5550_v32  ;;  %v5558_v18 = vld [vmem:[#allocation4 + $0x28] sm:$0xf] }
 0x3c8   :  { %v6329_v8 = vld [vmem:[#allocation4 + $0x54] sm:$0xf0] }
 0x3c9   :  { %v2057_v35 = vpack.c.bf16 %v2056_v16, %v2056_v16  ;;  %v5607_v16 = vor.u32 %v6337_v46, %v5606_v42  ;;  %2596 = vmatpush.bf16.msrb.mxu1 %v5603_v29  ;;  %v5575_v10 = vor.u32 %v6329_v8, %v5574_v19  ;;  %v5555_v42 = vor.u32 %v6322_v2, %v5552_v11  ;;  %v6325_v46 = vld [vmem:[#allocation4 + $0x34] sm:$0xf0]  ;;  %v6323_v29 = vld [vmem:[#allocation4 + $0x2c] sm:$0xf] }
 0x3ca   :  { %v5559_v1 = vor.u32 %v6325_v46, %v5558_v18 }
 0x3cb   :  { %2059 = vst [vmem:[#allocation3 + $0x10] sm:$0xf] %v2057_v35  ;;  %2267 = vmatmul.bf16.vlgmr.msra.gmra.mxu0 %v2057_v35  ;;  %2280 = vmatmul.bf16.vlgmr.msra.gmra.mxu1 %v2057_v35 }
 0x3cc   :  { %2293 = vmatmul.bf16.vlgmr.msra.gmra.mxu2 %v2057_v35  ;;  %2306 = vmatmul.bf16.vlgmr.msra.gmra.mxu3 %v2057_v35  ;;  %v6335_v35 = vld [vmem:[#allocation4 + $0x8c] sm:$0xf] }
 0x3cd   :  { %2583 = vmatpush.bf16.msrb.mxu0 %v5599_v24  ;;  %v5611_v26 = vor.u32 %v6335_v35, %v5608_v52  ;;  %2609 = vmatpush.bf16.msrb.mxu2 %v5607_v16  ;;  %v5560_v16 = vld [vmem:[#allocation4 + $0x38] sm:$0xf0] }
 0x3ce   :  { %2597 = vmatpush.bf16.msrb.mxu1 %v5587_v31  ;;  %v5563_v43 = vor.u32 %v6323_v29, %v5560_v16  ;;  %v5544_v31 = vld [vmem:[#allocation4 + $0x18] sm:$0xf0] }
 0x3cf   :  { %2622 = vmatpush.bf16.msrb.mxu3 %v5611_v26 }
 0x3d1   :  { %2584 = vmatpush.bf16.msrb.mxu0 %v5583_v49  ;;  %2610 = vmatpush.bf16.msrb.mxu2 %v5591_v33  ;;  %v5536_v49 = vld [vmem:[#allocation4 + $0x10] sm:$0xf0] }
 0x3d2   :  { %2598 = vmatpush.bf16.msrb.mxu1 %v5571_v17 }
 0x3d3   :  { %2623 = vmatpush.bf16.msrb.mxu3 %v5595_v62 }
 0x3d5   :  { %2585 = vmatpush.bf16.msrb.mxu0 %v5567_v61  ;;  %2611 = vmatpush.bf16.msrb.mxu2 %v5575_v10 }
 0x3d6   :  { %2599 = vmatpush.bf16.msrb.mxu1 %v5555_v42 }
 0x3d7   :  { %2624 = vmatpush.bf16.msrb.mxu3 %v5579_v0 }
 0x3d9   :  { %2586 = vmatpush.bf16.msrb.mxu0 %v5551_v9  ;;  %2612 = vmatpush.bf16.msrb.mxu2 %v5559_v1 }
 0x3db   :  { %2625 = vmatpush.bf16.msrb.mxu3 %v5563_v43 }
 0x3dd   :  { %2613 = vmatpush.bf16.msrb.mxu2 %v5543_v25 }
 0x448   :  { %v2268_v59 = vpop.f32.mrf.mxu0  ;;  %v2281_v60 = vpop.f32.mrf.mxu1 }
 0x449   :  { %v2311_v27 = vadd.f32 %v2268_v59, %v330_v30  ;;  %v2312_v23 = vadd.f32 %v2281_v60, %v359_v36  ;;  %v6318_v30 = vld [vmem:[#allocation4 + $0x4] sm:$0xf]  ;;  %v5535_v36 = vor.u32 %v6320_v28, %v5534_v45  ;;  %v6319_v60 = vld [vmem:[#allocation4 + $0xc] sm:$0xf] }
 0x44a   :  { %v5539_v59 = vor.u32 %v6318_v30, %v5536_v49 }
 0x44b   :  { %v5529_v13 = vmul.f32 -1.442695, %v2311_v27  ;;  %v5530_v55 = vmul.f32 -1.442695, %v2312_v23  ;;  %v5547_v23 = vor.u32 %v6319_v60, %v5544_v31  ;;  %2587 = vmatpush.bf16.msrb.mxu0 %v5535_v36  ;;  %v6380_v31 = vld [vmem:[#allocation4 + $0xec] sm:$0xf0] }
 0x44c   :  { %2600 = vmatpush.bf16.msrb.mxu1 %v5539_v59 }
 0x44d   :  { %6536 = vpow2.f32 %v5529_v13  ;;  %2626 = vmatpush.bf16.msrb.mxu3 %v5547_v23  ;;  %v417_v13 = vadd.f32 %v7116_v48, %v7082_v21  ;;  %v6381_v23 = vld [vmem:[#allocation4 + $0xf4] sm:$0xf0] }
 0x44e   :  { %6538 = vpow2.f32 %v5530_v55 }
 0x44f   :  { %v2294_v24 = vpop.f32.mrf.mxu2  ;;  %v2307_v34 = vpop.f32.mrf.mxu3 }
 0x450   :  { %v2313_v35 = vadd.f32 %v2294_v24, %v388_v5  ;;  %v2270_v52 = vpop.f32.mrf.mxu0  ;;  %v2283_v26 = vpop.f32.mrf.mxu1  ;;  %v2314_v38 = vadd.f32 %v2307_v34, %v417_v13 }
 0x452   :  { %v5531_v7 = vmul.f32 -1.442695, %v2313_v35 }
 0x453   :  { %v6537_v33 = vpop.eup %6536 }
 0x454   :  { %v6539_v6 = vpop.eup %6538  ;;  %v2324_v27 = vadd.f32 1.0, %v6537_v33  ;;  %6540 = vpow2.f32 %v5531_v7  ;;  %v6378_v33 = vld [vmem:[#allocation4 + $0xe4] sm:$0xf] }
 0x455   :  { %v2325_v62 = vadd.f32 1.0, %v6539_v6  ;;  %v5779_v6 = vld [vmem:[#allocation4 + $0xf0] sm:$0xf0] }
 0x456   :  { %6542 = vrcp.f32 %v2324_v27  ;;  %v2338_v15 = vand.u32 2147483648, %v2324_v27  ;;  %v2336_v5 = vand.u32 2147483647, %v2324_v27  ;;  %vm2332_vm14 = vweird.f32 %v2324_v27 }
 0x457   :  { %6544 = vrcp.f32 %v2325_v62  ;;  %v2296_v37 = vpop.f32.mrf.mxu2  ;;  %v2309_v63 = vpop.f32.mrf.mxu3  ;;  %v2353_v32 = vand.u32 2147483648, %v2325_v62  ;;  %v2351_v9 = vand.u32 2147483647, %v2325_v62  ;;  %vm2347_vm15 = vweird.f32 %v2325_v62 }
 0x458   :  { %v2339_v18 = vor.u32 1.1754944e-38, %v2338_v15  ;;  %vm2337_vm2 = vcmp.eq.f32.partialorder %v2336_v5, 8.507059e+37  ;;  %v6379_v63 = vld [vmem:[#allocation4 + $0xec] sm:$0xf] }
 0x459   :  { %v2354_v34 = vor.u32 1.1754944e-38, %v2353_v32  ;;  %vm2352_vm3 = vcmp.eq.f32.partialorder %v2351_v9, 8.507059e+37  ;;  %v6375_v32 = vld [vmem:[#allocation4 + $0xcc] sm:$0xf]  ;;  %v6372_v9 = vld [vmem:[#allocation4 + $0xac] sm:$0xf0] }
 0x45a   :  { %v6541_v39 = vpop.eup %6540 }
 0x45b   :  { %v2326_v55 = vadd.f32 1.0, %v6541_v39  ;;  %v5787_v39 = vld [vmem:[#allocation4 + $0xf8] sm:$0xf0] }
 0x45c   :  { %v6543_v61 = vpop.eup %6542  ;;  %v5790_v13 = vor.u32 %v6379_v63, %v5787_v39  ;;  %v5697_v39 = vld [vmem:[#allocation4 + $0x40] sm:$0xf] }
 0x45d   :  { %v6545_v17 = vpop.eup %6544  ;;  %v2328_v19 = vmul.f32 %v6543_v61, %v2324_v27  ;;  %6546 = vrcp.f32 %v2326_v55  ;;  %vm2333_vm12 = vweird.f32 %v6543_v61  ;;  %v2368_v30 = vand.u32 2147483648, %v2326_v55  ;;  %v5785_v27 = vld [vmem:[#allocation4 + $0xe8] sm:$0xf] }
 0x45e   :  { %v2343_v8 = vmul.f32 %v6545_v17, %v2325_v62  ;;  %6548 = vtanh.f32 %v2314_v38  ;;  %vm2348_vm13 = vweird.f32 %v6545_v17  ;;  %vm2334_vm0 = vmor %vm2332_vm14, %vm2333_vm12  ;;  %vm2362_vm5 = vweird.f32 %v2326_v55  ;;  %2940 = vmatpush.bf16.msra.mxu3 %v5790_v13  ;;  %v6374_v38 = vld [vmem:[#allocation4 + $0xc4] sm:$0xf]  ;;  %v6360_v13 = vld [vmem:[#allocation4 + $0x4c] sm:$0xf0] }
 0x45f   :  { %v2329_v47 = vsub.f32 1.0, %v2328_v19  ;;  %vm2349_vm1 = vmor %vm2347_vm15, %vm2348_vm13  ;;  %v2366_v36 = vand.u32 2147483647, %v2326_v55  ;;  %v2369_v56 = vor.u32 1.1754944e-38, %v2368_v30  ;;  %v5782_v62 = vor.u32 %v6378_v33, %v5779_v6  ;;  %v5763_v19 = vld [vmem:[#allocation4 + $0xd0] sm:$0xf0] }
 0x460   :  { %v2344_v10 = vsub.f32 1.0, %v2343_v8  ;;  %v5786_v37 = vor.u32 %v6381_v23, %v5785_v27  ;;  %v5769_v8 = vld [vmem:[#allocation4 + $0xc8] sm:$0xf]  ;;  %v6369_v30 = vld [vmem:[#allocation4 + $0x94] sm:$0xf0] }
 0x461   :  { %v2330_v58 = vmul.f32 %v6543_v61, %v2329_v47  ;;  %vm2367_vm7 = vcmp.eq.f32.partialorder %v2366_v36, 8.507059e+37  ;;  %2914 = vmatpush.bf16.msra.mxu1 %v5782_v62  ;;  %v6377_v47 = vld [vmem:[#allocation4 + $0xd4] sm:$0xf0]  ;;  %v5715_v33 = vld [vmem:[#allocation4 + $0x70] sm:$0xf0] }
 0x462   :  { %v2345_v0 = vmul.f32 %v6545_v17, %v2344_v10  ;;  %2927 = vmatpush.bf16.msra.mxu2 %v5786_v37  ;;  %v5766_v10 = vor.u32 %v6374_v38, %v5763_v19  ;;  %v5770_v15 = vor.u32 %v6377_v47, %v5769_v8  ;;  %v6365_v6 = vld [vmem:[#allocation4 + $0x74] sm:$0xf0]  ;;  %v6363_v62 = vld [vmem:[#allocation4 + $0x6c] sm:$0xf]  ;;  %v5723_v37 = vld [vmem:[#allocation4 + $0x78] sm:$0xf0] }
 0x463   :  { %v6547_v2 = vpop.eup %6546  ;;  %v2331_v48 = vadd.f32 %v6543_v61, %v2330_v58  ;;  %v5771_v58 = vld [vmem:[#allocation4 + $0xd8] sm:$0xf0]  ;;  %v5726_v63 = vor.u32 %v6363_v62, %v5723_v37  ;;  %v5699_v38 = vld [vmem:[#allocation4 + $0x50] sm:$0xf0]  ;;  %v6361_v19 = vld [vmem:[#allocation4 + $0x54] sm:$0xf0] }
 0x464   :  { %v2358_v11 = vmul.f32 %v6547_v2, %v2326_v55  ;;  %v2346_v24 = vadd.f32 %v6545_v17, %v2345_v0  ;;  %v6549_v46 = vpop.eup %6548  ;;  %vm2363_vm4 = vweird.f32 %v6547_v2  ;;  %v5761_v55 = vld [vmem:[#allocation4 + $0xc0] sm:$0xf]  ;;  %v5774_v5 = vor.u32 %v6375_v32, %v5771_v58  ;;  %v6415_v62 = vld [vmem:[#allocation6 + $0xec] sm:$0xf] }
 0x465   :  { %v2335_v42 = vsel %vm2334_vm0, %v6543_v61, %v2331_v48  ;;  %vm2364_vm6 = vmor %vm2362_vm5, %vm2363_vm4  ;;  %v6376_v61 = vld [vmem:[#allocation4 + $0xcc] sm:$0xf0]  ;;  %2915 = vmatpush.bf16.msra.mxu1 %v5766_v10  ;;  %v5745_v0 = vld [vmem:[#allocation4 + $0xa0] sm:$0xf] }
 0x466   :  { %v2359_v29 = vsub.f32 1.0, %v2358_v11  ;;  %v2340_v16 = vsel %vm2337_vm2, %v2339_v18, %v2335_v42  ;;  %v2350_v35 = vsel %vm2349_vm1, %v6545_v17, %v2346_v24  ;;  %v5762_v17 = vor.u32 %v6376_v61, %v5761_v55  ;;  %2928 = vmatpush.bf16.msra.mxu2 %v5770_v15  ;;  %2941 = vmatpush.bf16.msra.mxu3 %v5774_v5  ;;  %v5747_v11 = vld [vmem:[#allocation4 + $0xb0] sm:$0xf0]  ;;  %v5753_v18 = vld [vmem:[#allocation4 + $0xa8] sm:$0xf] }
 0x467   :  { %v2355_v52 = vsel %vm2352_vm3, %v2354_v34, %v2350_v35  ;;  %v2374_v26 = vmul.f32 %v6549_v46, %v2340_v16  ;;  %v5746_v48 = vor.u32 %v6372_v9, %v5745_v0  ;;  %v6373_v24 = vld [vmem:[#allocation4 + $0xb4] sm:$0xf0]  ;;  %v6371_v46 = vld [vmem:[#allocation4 + $0xac] sm:$0xf]  ;;  %v5729_v35 = vld [vmem:[#allocation4 + $0x80] sm:$0xf]  ;;  %v5698_v61 = vor.u32 %v6360_v13, %v5697_v39 }
 0x468   :  { %v2360_v1 = vmul.f32 %v6547_v2, %v2359_v29  ;;  %v2373_v43 = vmul.f32 %v2355_v52, %v7186_v3  ;;  %v5777_v3 = vld [vmem:[#allocation4 + $0xe0] sm:$0xf]  ;;  %v5754_v42 = vor.u32 %v6373_v24, %v5753_v18  ;;  %v5755_v29 = vld [vmem:[#allocation4 + $0xb8] sm:$0xf0]  ;;  %v6368_v52 = vld [vmem:[#allocation4 + $0x8c] sm:$0xf0] }
 0x469   :  { %v5778_v25 = vor.u32 %v6380_v31, %v5777_v3  ;;  %v5758_v16 = vor.u32 %v6371_v46, %v5755_v29  ;;  %v6362_v3 = vld [vmem:[#allocation4 + $0x64] sm:$0xf]  ;;  %v6359_v10 = vld [vmem:[#allocation4 + $0x4c] sm:$0xf]  ;;  %v5707_v15 = vld [vmem:[#allocation4 + $0x58] sm:$0xf0] }
 0x46a   :  { %v7198_v45 = vadd.f32 %v2374_v26, %v2373_v43  ;;  %v2361_v28 = vadd.f32 %v6547_v2, %v2360_v1  ;;  %2929 = vmatpush.bf16.msra.mxu2 %v5754_v42  ;;  %v6366_v26 = vld [vmem:[#allocation4 + $0x84] sm:$0xf]  ;;  %v5730_v1 = vor.u32 %v6368_v52, %v5729_v35  ;;  %v5731_v43 = vld [vmem:[#allocation4 + $0x90] sm:$0xf0]  ;;  %v5718_v27 = vor.u32 %v6362_v3, %v5715_v33  ;;  %v5681_v58 = vld [vmem:[#allocation4 + $0x20] sm:$0xf] }
 0x46b   :  { %2901 = vmatpush.bf16.msra.mxu0 %v5778_v25  ;;  %2942 = vmatpush.bf16.msra.mxu3 %v5758_v16  ;;  %v5734_v36 = vor.u32 %v6366_v26, %v5731_v43  ;;  %v5721_v25 = vld [vmem:[#allocation4 + $0x68] sm:$0xf]  ;;  %v6358_v55 = vld [vmem:[#allocation4 + $0x44] sm:$0xf]  ;;  %v5710_v32 = vor.u32 %v6359_v10, %v5707_v15  ;;  %v6356_v5 = vld [vmem:[#allocation4 + $0x2c] sm:$0xf0] }
 0x46c   :  { %6550 = vtanh.f32 %v7198_v45  ;;  %v2365_v49 = vsel %vm2364_vm6, %v6547_v2, %v2361_v28  ;;  %v6370_v2 = vld [vmem:[#allocation4 + $0xa4] sm:$0xf]  ;;  %v5737_v28 = vld [vmem:[#allocation4 + $0x88] sm:$0xf]  ;;  %v5722_v23 = vor.u32 %v6365_v6, %v5721_v25  ;;  %v5702_v8 = vor.u32 %v6358_v55, %v5699_v38  ;;  %v5691_v42 = vld [vmem:[#allocation4 + $0x38] sm:$0xf0] }
 0x46d   :  { %v2370_v7 = vsel %vm2367_vm7, %v2369_v56, %v2365_v49  ;;  %v5750_v34 = vor.u32 %v6370_v2, %v5747_v11  ;;  %v5738_v49 = vor.u32 %v6369_v30, %v5737_v28  ;;  %v6367_v56 = vld [vmem:[#allocation4 + $0x8c] sm:$0xf]  ;;  %v6354_v0 = vld [vmem:[#allocation4 + $0x24] sm:$0xf]  ;;  %v5682_v9 = vor.u32 %v6356_v5, %v5681_v58  ;;  %v5683_v2 = vld [vmem:[#allocation4 + $0x30] sm:$0xf0] }
 0x46e   :  { %v6357_v11 = vld [vmem:[#allocation4 + $0x34] sm:$0xf0]  ;;  %v5686_v18 = vor.u32 %v6354_v0, %v5683_v2  ;;  %v5665_v29 = vld [vmem:[#allocation4] sm:$0xf]  ;;  %v6352_v16 = vld [vmem:[#allocation4 + $0xc] sm:$0xf0] }
 0x46f   :  { %2902 = vmatpush.bf16.msra.mxu0 %v5762_v17  ;;  %2916 = vmatpush.bf16.msra.mxu1 %v5750_v34  ;;  %v5705_v17 = vld [vmem:[#allocation4 + $0x48] sm:$0xf]  ;;  %v6355_v34 = vld [vmem:[#allocation4 + $0x2c] sm:$0xf]  ;;  %v6350_v35 = vld [vmem:[#allocation4 + $0x4] sm:$0xf]  ;;  %v5666_v52 = vor.u32 %v6352_v16, %v5665_v29 }
 0x470   :  { %2930 = vmatpush.bf16.msra.mxu2 %v5738_v49  ;;  %v5706_v47 = vor.u32 %v6361_v19, %v5705_v17  ;;  %v5694_v46 = vor.u32 %v6355_v34, %v5691_v42  ;;  %v5667_v26 = vld [vmem:[#allocation4 + $0x10] sm:$0xf0]  ;;  %v6353_v43 = vld [vmem:[#allocation4 + $0x14] sm:$0xf0]  ;;  %v5675_v49 = vld [vmem:[#allocation4 + $0x18] sm:$0xf0] }
 0x471   :  { %v5670_v28 = vor.u32 %v6350_v35, %v5667_v26  ;;  %v6414_v3 = vld [vmem:[#allocation6 + $0xe4] sm:$0xf]  ;;  %v5934_v39 = vld [vmem:[#allocation6 + $0xf8] sm:$0xf0]  ;;  %v5908_v13 = vld [vmem:[#allocation6 + $0xc0] sm:$0xf] }
 0x472   :  { %v6551_v53 = vpop.eup %6550  ;;  %v6412_v55 = vld [vmem:[#allocation6 + $0xcc] sm:$0xf0]  ;;  %v5937_v17 = vor.u32 %v6415_v62, %v5934_v39  ;;  %v5918_v58 = vld [vmem:[#allocation6 + $0xd8] sm:$0xf0]  ;;  %v5892_v5 = vld [vmem:[#allocation6 + $0xa0] sm:$0xf] }
 0x473   :  { %v2377_v59 = vmul.f32 %v6551_v53, %v2370_v7  ;;  %2903 = vmatpush.bf16.msra.mxu0 %v5746_v48  ;;  %v5739_v53 = vld [vmem:[#allocation4 + $0x98] sm:$0xf0]  ;;  %2917 = vmatpush.bf16.msra.mxu1 %v5734_v36  ;;  %v5689_v48 = vld [vmem:[#allocation4 + $0x28] sm:$0xf]  ;;  %v6351_v36 = vld [vmem:[#allocation4 + $0xc] sm:$0xf]  ;;  %v5909_v19 = vor.u32 %v6412_v55, %v5908_v13 }
 0x474   :  { %v5742_v7 = vor.u32 %v6367_v56, %v5739_v53  ;;  %2931 = vmatpush.bf16.msra.mxu2 %v5722_v23  ;;  %v5690_v24 = vor.u32 %v6357_v11, %v5689_v48  ;;  %v5924_v56 = vld [vmem:[#allocation6 + $0xe0] sm:$0xf]  ;;  %v6417_v23 = vld [vmem:[#allocation6 + $0xf4] sm:$0xf0]  ;;  %v6406_v2 = vld [vmem:[#allocation6 + $0xa4] sm:$0xf] }
 0x475   :  { %v2378_v60 = vpack.c.bf16 %v2377_v59, %v2377_v59  ;;  %v5713_v59 = vld [vmem:[#allocation4 + $0x60] sm:$0xf]  ;;  %v5894_v48 = vld [vmem:[#allocation6 + $0xb0] sm:$0xf0]  ;;  %v5900_v34 = vld [vmem:[#allocation6 + $0xa8] sm:$0xf] }
 0x476   :  { %2943 = vmatpush.bf16.msra.mxu3 %v5742_v7  ;;  %v6409_v42 = vld [vmem:[#allocation6 + $0xb4] sm:$0xf0]  ;;  %v5860_v62 = vld [vmem:[#allocation6 + $0x60] sm:$0xf]  ;;  %v6400_v39 = vld [vmem:[#allocation6 + $0x6c] sm:$0xf0] }
 0x477   :  { %2380 = vst [vmem:[#allocation3 + $0x14] sm:$0xf] %v2378_v60  ;;  %2588 = vmatmul.bf16.vlgmr.msrb.gmra.mxu0 %v2378_v60  ;;  %2601 = vmatmul.bf16.vlgmr.msrb.gmra.mxu1 %v2378_v60  ;;  %v5901_v26 = vor.u32 %v6409_v42, %v5900_v34  ;;  %v5861_v13 = vor.u32 %v6400_v39, %v5860_v62  ;;  %v6398_v55 = vld [vmem:[#allocation6 + $0x64] sm:$0xf]  ;;  %v6397_v34 = vld [vmem:[#allocation6 + $0x54] sm:$0xf0] }
 0x478   :  { %2614 = vmatmul.bf16.vlgmr.msrb.gmra.mxu2 %v2378_v60  ;;  %2627 = vmatmul.bf16.vlgmr.msrb.gmra.mxu3 %v2378_v60  ;;  %v6364_v60 = vld [vmem:[#allocation4 + $0x6c] sm:$0xf0]  ;;  %v5812_v62 = vld [vmem:[#allocation6] sm:$0xf] }
 0x479   :  { %2904 = vmatpush.bf16.msra.mxu0 %v5730_v1  ;;  %v5714_v31 = vor.u32 %v6364_v60, %v5713_v59  ;;  %2918 = vmatpush.bf16.msra.mxu1 %v5718_v27  ;;  %v5673_v1 = vld [vmem:[#allocation4 + $0x8] sm:$0xf]  ;;  %v5678_v59 = vor.u32 %v6351_v36, %v5675_v49  ;;  %v6416_v60 = vld [vmem:[#allocation6 + $0xec] sm:$0xf0]  ;;  %v6402_v36 = vld [vmem:[#allocation6 + $0x84] sm:$0xf] }
 0x47a   :  { %2944 = vmatpush.bf16.msra.mxu3 %v5726_v63  ;;  %2932 = vmatpush.bf16.msra.mxu2 %v5706_v47  ;;  %v5674_v30 = vor.u32 %v6353_v43, %v5673_v1  ;;  %v5925_v6 = vor.u32 %v6416_v60, %v5924_v56  ;;  %v5932_v27 = vld [vmem:[#allocation6 + $0xe8] sm:$0xf]  ;;  %v6413_v47 = vld [vmem:[#allocation6 + $0xd4] sm:$0xf0]  ;;  %v5902_v1 = vld [vmem:[#allocation6 + $0xb8] sm:$0xf0] }
 0x47b   :  { %v5933_v63 = vor.u32 %v6417_v23, %v5932_v27  ;;  %v5876_v43 = vld [vmem:[#allocation6 + $0x80] sm:$0xf]  ;;  %v5878_v49 = vld [vmem:[#allocation6 + $0x90] sm:$0xf0]  ;;  %v5884_v56 = vld [vmem:[#allocation6 + $0x88] sm:$0xf] }
 0x47c   :  { %v6388_v39 = vld [vmem:[#allocation6 + $0xc] sm:$0xf0] }
 0x47d   :  { %2905 = vmatpush.bf16.msra.mxu0 %v5714_v31  ;;  %2919 = vmatpush.bf16.msra.mxu1 %v5702_v8  ;;  %v5926_v31 = vld [vmem:[#allocation6 + $0xf0] sm:$0xf0]  ;;  %v5916_v8 = vld [vmem:[#allocation6 + $0xc8] sm:$0xf] }
 0x47e   :  { %2945 = vmatpush.bf16.msra.mxu3 %v5710_v32  ;;  %2933 = vmatpush.bf16.msra.mxu2 %v5690_v24  ;;  %v5929_v37 = vor.u32 %v6414_v3, %v5926_v31  ;;  %v5917_v15 = vor.u32 %v6413_v47, %v5916_v8  ;;  %v6411_v32 = vld [vmem:[#allocation6 + $0xcc] sm:$0xf]  ;;  %v5886_v3 = vld [vmem:[#allocation6 + $0x98] sm:$0xf0] }
 0x47f   :  { %v5921_v0 = vor.u32 %v6411_v32, %v5918_v58  ;;  %v5844_v32 = vld [vmem:[#allocation6 + $0x40] sm:$0xf] }
 0x481   :  { %2906 = vmatpush.bf16.msra.mxu0 %v5698_v61  ;;  %2920 = vmatpush.bf16.msra.mxu1 %v5686_v18 }
 0x482   :  { %2946 = vmatpush.bf16.msra.mxu3 %v5694_v46  ;;  %2934 = vmatpush.bf16.msra.mxu2 %v5674_v30  ;;  %v6407_v46 = vld [vmem:[#allocation6 + $0xac] sm:$0xf] }
 0x483   :  { %v5905_v30 = vor.u32 %v6407_v46, %v5902_v1  ;;  %v6395_v46 = vld [vmem:[#allocation6 + $0x4c] sm:$0xf] }
 0x485   :  { %2907 = vmatpush.bf16.msra.mxu0 %v5682_v9  ;;  %2921 = vmatpush.bf16.msra.mxu1 %v5670_v28  ;;  %v6408_v9 = vld [vmem:[#allocation6 + $0xac] sm:$0xf0] }
 0x486   :  { %2947 = vmatpush.bf16.msra.mxu3 %v5678_v59  ;;  %3315 = vmatpush.bf16.msrb.mxu2 %v5933_v63  ;;  %v5893_v24 = vor.u32 %v6408_v9, %v5892_v5  ;;  %v6404_v28 = vld [vmem:[#allocation6 + $0x8c] sm:$0xf0]  ;;  %v6403_v59 = vld [vmem:[#allocation6 + $0x8c] sm:$0xf]  ;;  %v6394_v9 = vld [vmem:[#allocation6 + $0x44] sm:$0xf] }
 0x487   :  { %v5889_v23 = vor.u32 %v6403_v59, %v5886_v3 }
 0x489   :  { %2908 = vmatpush.bf16.msra.mxu0 %v5666_v52  ;;  %3286 = vmatpush.bf16.msrb.mxu1 %v5929_v37  ;;  %v5897_v52 = vor.u32 %v6406_v2, %v5894_v48 }
 0x48a   :  { %3344 = vmatpush.bf16.msrb.mxu3 %v5937_v17  ;;  %3316 = vmatpush.bf16.msrb.mxu2 %v5917_v15  ;;  %v5870_v15 = vld [vmem:[#allocation6 + $0x78] sm:$0xf0] }
 0x48d   :  { %3257 = vmatpush.bf16.msrb.mxu0 %v5925_v6 }
 0x48e   :  { %3345 = vmatpush.bf16.msrb.mxu3 %v5921_v0  ;;  %3317 = vmatpush.bf16.msrb.mxu2 %v5901_v26  ;;  %v6396_v0 = vld [vmem:[#allocation6 + $0x4c] sm:$0xf0] }
 0x48f   :  { %v5845_v48 = vor.u32 %v6396_v0, %v5844_v32  ;;  %v6392_v26 = vld [vmem:[#allocation6 + $0x2c] sm:$0xf0] }
 0x491   :  { %3258 = vmatpush.bf16.msrb.mxu0 %v5909_v19  ;;  %v5868_v19 = vld [vmem:[#allocation6 + $0x68] sm:$0xf] }
 0x492   :  { %3346 = vmatpush.bf16.msrb.mxu3 %v5905_v30 }
 0x495   :  { %3259 = vmatpush.bf16.msrb.mxu0 %v5893_v24  ;;  %v5852_v24 = vld [vmem:[#allocation6 + $0x48] sm:$0xf] }
 0x496   :  { %3347 = vmatpush.bf16.msrb.mxu3 %v5889_v23  ;;  %v5853_v30 = vor.u32 %v6397_v34, %v5852_v24  ;;  %v5838_v23 = vld [vmem:[#allocation6 + $0x38] sm:$0xf0] }
 0x4f4   :  { %v2589_v53 = vpop.f32.mrf.mxu0  ;;  %v2602_v7 = vpop.f32.mrf.mxu1 }
 0x4f5   :  { %v2632_v33 = vadd.f32 %v2589_v53, %v7119_v54  ;;  %v2633_v25 = vadd.f32 %v2602_v7, %v7122_v57  ;;  %v6410_v54 = vld [vmem:[#allocation6 + $0xc4] sm:$0xf]  ;;  %v5910_v57 = vld [vmem:[#allocation6 + $0xd0] sm:$0xf0]  ;;  %v6405_v7 = vld [vmem:[#allocation6 + $0x94] sm:$0xf0] }
 0x4f6   :  { %v5913_v10 = vor.u32 %v6410_v54, %v5910_v57  ;;  %v5885_v6 = vor.u32 %v6405_v7, %v5884_v56  ;;  %v6401_v54 = vld [vmem:[#allocation6 + $0x74] sm:$0xf0] }
 0x4f7   :  { %v5660_v61 = vmul.f32 -1.442695, %v2632_v33  ;;  %v5661_v38 = vmul.f32 -1.442695, %v2633_v25  ;;  %v5881_v25 = vor.u32 %v6402_v36, %v5878_v49  ;;  %v5869_v47 = vor.u32 %v6401_v54, %v5868_v19  ;;  %v6390_v36 = vld [vmem:[#allocation6 + $0x24] sm:$0xf] }
 0x4f8   :  { %3287 = vmatpush.bf16.msrb.mxu1 %v5913_v10  ;;  %3318 = vmatpush.bf16.msrb.mxu2 %v5885_v6  ;;  %v6399_v10 = vld [vmem:[#allocation6 + $0x6c] sm:$0xf]  ;;  %v5830_v49 = vld [vmem:[#allocation6 + $0x30] sm:$0xf0]  ;;  %v5820_v19 = vld [vmem:[#allocation6 + $0x8] sm:$0xf] }
 0x4f9   :  { %6552 = vpow2.f32 %v5660_v61  ;;  %v5862_v61 = vld [vmem:[#allocation6 + $0x70] sm:$0xf0]  ;;  %v5873_v5 = vor.u32 %v6399_v10, %v5870_v15  ;;  %v6391_v6 = vld [vmem:[#allocation6 + $0x2c] sm:$0xf]  ;;  %v6389_v54 = vld [vmem:[#allocation6 + $0x14] sm:$0xf0] }
 0x4fa   :  { %6554 = vpow2.f32 %v5661_v38  ;;  %v5865_v17 = vor.u32 %v6398_v55, %v5862_v61  ;;  %v5814_v55 = vld [vmem:[#allocation6 + $0x10] sm:$0xf0] }
 0x4fb   :  { %v2615_v11 = vpop.f32.mrf.mxu2  ;;  %v2628_v18 = vpop.f32.mrf.mxu3  ;;  %3348 = vmatpush.bf16.msrb.mxu3 %v5873_v5  ;;  %v5822_v5 = vld [vmem:[#allocation6 + $0x18] sm:$0xf0] }
 0x4fc   :  { %v2634_v29 = vadd.f32 %v2615_v11, %v7125_v41  ;;  %v2591_v16 = vpop.f32.mrf.mxu0  ;;  %v2604_v35 = vpop.f32.mrf.mxu1  ;;  %v5877_v41 = vor.u32 %v6404_v28, %v5876_v43  ;;  %3288 = vmatpush.bf16.msrb.mxu1 %v5897_v52  ;;  %v2635_v8 = vadd.f32 %v2628_v18, %v7130_v50  ;;  %3319 = vmatpush.bf16.msrb.mxu2 %v5869_v47  ;;  %v5846_v11 = vld [vmem:[#allocation6 + $0x50] sm:$0xf0]  ;;  %v5828_v52 = vld [vmem:[#allocation6 + $0x20] sm:$0xf] }
 0x4fd   :  { %v5849_v28 = vor.u32 %v6394_v9, %v5846_v11  ;;  %v5829_v59 = vor.u32 %v6392_v26, %v5828_v52  ;;  %v5821_v9 = vor.u32 %v6389_v54, %v5820_v19  ;;  %v6036_v19 = vld [vmem:[#allocation8 + $0xc0] sm:$0xf]  ;;  %v6444_v54 = vld [vmem:[#allocation8 + $0xcc] sm:$0xf0] }
 0x4fe   :  { %v5662_v53 = vmul.f32 -1.442695, %v2634_v29  ;;  %3260 = vmatpush.bf16.msrb.mxu0 %v5877_v41  ;;  %v5854_v29 = vld [vmem:[#allocation6 + $0x58] sm:$0xf0]  ;;  %v6393_v41 = vld [vmem:[#allocation6 + $0x34] sm:$0xf0] }
 0x4ff   :  { %v6553_v60 = vpop.eup %6552  ;;  %v5857_v7 = vor.u32 %v6395_v46, %v5854_v29 }
 0x500   :  { %v6555_v31 = vpop.eup %6554  ;;  %v7204_v33 = vadd.f32 1.0, %v6553_v60  ;;  %6556 = vpow2.f32 %v5662_v53  ;;  %3289 = vmatpush.bf16.msrb.mxu1 %v5881_v25  ;;  %v5836_v60 = vld [vmem:[#allocation6 + $0x28] sm:$0xf]  ;;  %3320 = vmatpush.bf16.msrb.mxu2 %v5853_v30 }
 0x501   :  { %v7206_v27 = vadd.f32 1.0, %v6555_v31  ;;  %v5833_v31 = vor.u32 %v6390_v36, %v5830_v49  ;;  %v5837_v25 = vor.u32 %v6393_v41, %v5836_v60  ;;  %3349 = vmatpush.bf16.msrb.mxu3 %v5857_v7  ;;  %v6383_v30 = vld [vmem:[#allocation3 + $0x8] sm:$0xff]  ;;  %v335_v36 = vadd.f32 %v7127_v44, %v7066_v12  ;;  %v6446_v12 = vld [vmem:[#allocation8 + $0xe4] sm:$0xf] }
 0x502   :  { %6558 = vrcp.f32 %v7204_v33  ;;  %v2657_v38 = vand.u32 2147483647, %v7204_v33  ;;  %3261 = vmatpush.bf16.msrb.mxu0 %v5861_v13  ;;  %v2659_v18 = vand.u32 2147483648, %v7204_v33  ;;  %v6386_v13 = vld [vmem:[#allocation6 + $0x4] sm:$0xf]  ;;  %vm2653_vm12 = vweird.f32 %v7204_v33 }
 0x503   :  { %6560 = vrcp.f32 %v7206_v27  ;;  %v2617_v37 = vpop.f32.mrf.mxu2  ;;  %v2630_v63 = vpop.f32.mrf.mxu3  ;;  %v2672_v35 = vand.u32 2147483647, %v7206_v27  ;;  %v2674_v43 = vand.u32 2147483648, %v7206_v27  ;;  %vm2668_vm11 = vweird.f32 %v7206_v27 }
 0x504   :  { %3290 = vmatpush.bf16.msrb.mxu1 %v5865_v17  ;;  %vm7226_vm8 = vcmp.eq.f32.partialorder %v2657_v38, 8.507059e+37  ;;  %v5841_v63 = vor.u32 %v6391_v6, %v5838_v23  ;;  %v5813_v17 = vor.u32 %v6388_v39, %v5812_v62  ;;  %v2660_v15 = vor.u32 1.1754944e-38, %v2659_v18  ;;  %3321 = vmatpush.bf16.msrb.mxu2 %v5837_v25  ;;  %v6052_v6 = vld [vmem:[#allocation8 + $0xe0] sm:$0xf]  ;;  %v6448_v23 = vld [vmem:[#allocation8 + $0xec] sm:$0xf0] }
 0x505   :  { %v2675_v47 = vor.u32 1.1754944e-38, %v2674_v43  ;;  %vm2673_vm15 = vcmp.eq.f32.partialorder %v2672_v35, 8.507059e+37  ;;  %v5817_v0 = vor.u32 %v6386_v13, %v5814_v55  ;;  %v364_v49 = vadd.f32 %v7132_v51, %v7070_v14  ;;  %v6449_v39 = vld [vmem:[#allocation8 + $0xf4] sm:$0xf0] }
 0x506   :  { %v6557_v57 = vpop.eup %6556  ;;  %3262 = vmatpush.bf16.msrb.mxu0 %v5845_v48  ;;  %3350 = vmatpush.bf16.msrb.mxu3 %v5841_v63  ;;  %v7264_v51 = vor.u32 %v6448_v23, %v6052_v6  ;;  %v6060_v63 = vld [vmem:[#allocation8 + $0xe8] sm:$0xf] }
 0x507   :  { %v7212_v58 = vadd.f32 1.0, %v6557_v57  ;;  %v6387_v57 = vld [vmem:[#allocation6 + $0xc] sm:$0xf]  ;;  %v7268_v55 = vor.u32 %v6449_v39, %v6060_v63 }
 0x508   :  { %v7214_v2 = vpop.eup %6558  ;;  %3291 = vmatpush.bf16.msrb.mxu1 %v5849_v28  ;;  %v5825_v34 = vor.u32 %v6387_v57, %v5822_v5  ;;  %3322 = vmatpush.bf16.msrb.mxu2 %v5821_v9  ;;  %v6382_v28 = vld [vmem:[#allocation3] sm:$0xff]  ;;  %v6443_v9 = vld [vmem:[#allocation8 + $0xcc] sm:$0xf] }
 0x509   :  { %v7216_v42 = vpop.eup %6560  ;;  %v2649_v50 = vmul.f32 %v7214_v2, %v7204_v33  ;;  %6562 = vrcp.f32 %v7212_v58  ;;  %vm2654_vm9 = vweird.f32 %v7214_v2  ;;  %vm2683_vm1 = vweird.f32 %v7212_v58  ;;  %v6442_v57 = vld [vmem:[#allocation8 + $0xc4] sm:$0xf] }
 0x50a   :  { %v2664_v16 = vmul.f32 %v7216_v42, %v7206_v27  ;;  %6564 = vtanh.f32 %v2635_v8  ;;  %vm2669_vm10 = vweird.f32 %v7216_v42  ;;  %3263 = vmatpush.bf16.msrb.mxu0 %v5829_v59  ;;  %vm2655_vm13 = vmor %vm2653_vm12, %vm2654_vm9  ;;  %3351 = vmatpush.bf16.msrb.mxu3 %v5825_v34  ;;  %v6020_v34 = vld [vmem:[#allocation8 + $0xa0] sm:$0xf] }
 0x50b   :  { %v2650_v1 = vsub.f32 1.0, %v2649_v50  ;;  %vm2670_vm14 = vmor %vm2668_vm11, %vm2669_vm10 }
 0x50c   :  { %v2665_v56 = vsub.f32 1.0, %v2664_v16  ;;  %3292 = vmatpush.bf16.msrb.mxu1 %v5833_v31  ;;  %v2689_v16 = vand.u32 2147483648, %v7212_v58 }
 0x50d   :  { %v2651_v3 = vmul.f32 %v7214_v2, %v2650_v1 }
 0x50e   :  { %v2666_v37 = vmul.f32 %v7216_v42, %v2665_v56  ;;  %3264 = vmatpush.bf16.msrb.mxu0 %v5813_v17  ;;  %v2690_v52 = vor.u32 1.1754944e-38, %v2689_v16 }
 0x50f   :  { %v6563_v61 = vpop.eup %6562  ;;  %v2652_v38 = vadd.f32 %v7214_v2, %v2651_v3  ;;  %v393_v3 = vadd.f32 %v7136_v22, %v7080_v20  ;;  %v6447_v20 = vld [vmem:[#allocation8 + $0xec] sm:$0xf]  ;;  %v6062_v22 = vld [vmem:[#allocation8 + $0xf8] sm:$0xf0] }
 0x510   :  { %v6565_v8 = vpop.eup %6564  ;;  %v2679_v10 = vmul.f32 %v6563_v61, %v7212_v58  ;;  %v2667_v32 = vadd.f32 %v7216_v42, %v2666_v37  ;;  %3293 = vmatpush.bf16.msrb.mxu1 %v5817_v0  ;;  %vm2684_vm0 = vweird.f32 %v6563_v61  ;;  %v6054_v37 = vld [vmem:[#allocation8 + $0xf0] sm:$0xf0]  ;;  %v6445_v0 = vld [vmem:[#allocation8 + $0xd4] sm:$0xf0] }
 0x511   :  { %v2656_v33 = vsel %vm2655_vm13, %v7214_v2, %v2652_v38  ;;  %vm2685_vm2 = vmor %vm2683_vm1, %vm2684_vm0  ;;  %v7266_v13 = vor.u32 %v6446_v12, %v6054_v37  ;;  %v7271_v38 = vor.u32 %v6447_v20, %v6062_v22  ;;  %v6030_v12 = vld [vmem:[#allocation8 + $0xb8] sm:$0xf0]  ;;  %v6430_v37 = vld [vmem:[#allocation8 + $0x64] sm:$0xf] }
 0x512   :  { %v2680_v48 = vsub.f32 1.0, %v2679_v10  ;;  %v2661_v11 = vsel %vm7226_vm8, %v2660_v15, %v2656_v33  ;;  %v2671_v24 = vsel %vm2670_vm14, %v7216_v42, %v2667_v32  ;;  %v2687_v42 = vand.u32 2147483647, %v7212_v58  ;;  %v6384_v58 = vld [vmem:[#allocation3 + $0x10] sm:$0xff]  ;;  %v6044_v32 = vld [vmem:[#allocation8 + $0xc8] sm:$0xf] }
 0x513   :  { %v2676_v50 = vsel %vm2673_vm15, %v2675_v47, %v2671_v24  ;;  %v2695_v18 = vmul.f32 %v6565_v8, %v2661_v11  ;;  %v7277_v10 = vor.u32 %v6444_v54, %v6036_v19  ;;  %v6038_v15 = vld [vmem:[#allocation8 + $0xd0] sm:$0xf0] }
 0x514   :  { %v2681_v27 = vmul.f32 %v6563_v61, %v2680_v48  ;;  %v2694_v46 = vmul.f32 %v2676_v50, %v7198_v45  ;;  %vm2688_vm3 = vcmp.eq.f32.partialorder %v2687_v42, 8.507059e+37  ;;  %v7282_v33 = vor.u32 %v6442_v57, %v6038_v15  ;;  %v6046_v48 = vld [vmem:[#allocation8 + $0xd8] sm:$0xf0]  ;;  %v6022_v42 = vld [vmem:[#allocation8 + $0xb0] sm:$0xf0] }
 0x515   :  { %v6435_v15 = vld [vmem:[#allocation8 + $0x8c] sm:$0xf] }
 0x516   :  { %v7250_v2 = vadd.f32 %v2695_v18, %v2694_v46  ;;  %v2682_v29 = vadd.f32 %v6563_v61, %v2681_v27  ;;  %v7289_v18 = vor.u32 %v6445_v0, %v6044_v32  ;;  %v6440_v27 = vld [vmem:[#allocation8 + $0xac] sm:$0xf0]  ;;  %v6438_v46 = vld [vmem:[#allocation8 + $0xa4] sm:$0xf]  ;;  %v6014_v0 = vld [vmem:[#allocation8 + $0x98] sm:$0xf0] }
 0x518   :  { %6566 = vtanh.f32 %v7250_v2  ;;  %v2686_v35 = vsel %vm2685_vm2, %v6563_v61, %v2682_v29  ;;  %v7291_v29 = vor.u32 %v6443_v9, %v6046_v48  ;;  %v5972_v9 = vld [vmem:[#allocation8 + $0x40] sm:$0xf]  ;;  %v6428_v48 = vld [vmem:[#allocation8 + $0x4c] sm:$0xf0] }
 0x519   :  { %v2691_v26 = vsel %vm2688_vm3, %v2690_v52, %v2686_v35  ;;  %v6028_v35 = vld [vmem:[#allocation8 + $0xa8] sm:$0xf] }
 0x51e   :  { %v6567_v45 = vpop.eup %6566 }
 0x51f   :  { %v2698_v1 = vmul.f32 %v6567_v45, %v2691_v26  ;;  %v422_v45 = vadd.f32 %v7140_v40, %v7082_v21  ;;  %v7297_v26 = vor.u32 %v6440_v27, %v6020_v34  ;;  %v6426_v27 = vld [vmem:[#allocation8 + $0x44] sm:$0xf] }
 0x521   :  { %v2699_v43 = vpack.c.bf16 %v2698_v1, %v2698_v1  ;;  %v7299_v1 = vor.u32 %v6438_v46, %v6022_v42  ;;  %v5974_v46 = vld [vmem:[#allocation8 + $0x50] sm:$0xf0] }
 0x523   :  { %2701 = vst [vmem:[#allocation3 + $0x18] sm:$0xf] %v2699_v43  ;;  %2909 = vmatmul.bf16.vlgmr.msra.gmra.mxu0 %v2699_v43  ;;  %2922 = vmatmul.bf16.vlgmr.msra.gmra.mxu1 %v2699_v43 }
 0x524   :  { %2935 = vmatmul.bf16.vlgmr.msra.gmra.mxu2 %v2699_v43  ;;  %2948 = vmatmul.bf16.vlgmr.msra.gmra.mxu3 %v2699_v43  ;;  %v6441_v43 = vld [vmem:[#allocation8 + $0xb4] sm:$0xf0] }
 0x525   :  { %3601 = vmatpush.bf16.msra.mxu0 %v7264_v51  ;;  %3614 = vmatpush.bf16.msra.mxu1 %v7266_v13 }
 0x526   :  { %3627 = vmatpush.bf16.msra.mxu2 %v7268_v55  ;;  %3640 = vmatpush.bf16.msra.mxu3 %v7271_v38 }
 0x529   :  { %3602 = vmatpush.bf16.msra.mxu0 %v7277_v10  ;;  %3615 = vmatpush.bf16.msra.mxu1 %v7282_v33 }
 0x52a   :  { %3628 = vmatpush.bf16.msra.mxu2 %v7289_v18  ;;  %3641 = vmatpush.bf16.msra.mxu3 %v7291_v29 }
 0x52d   :  { %3603 = vmatpush.bf16.msra.mxu0 %v7297_v26  ;;  %3616 = vmatpush.bf16.msra.mxu1 %v7299_v1 }
 0x533   :  { %3265 = vmatmul.bf16.vlgmr.msrb.gmra.mxu0 %v6382_v28  ;;  %3294 = vmatmul.bf16.vlgmr.msrb.gmra.mxu1 %v6382_v28 }
 0x534   :  { %3323 = vmatmul.bf16.vlgmr.msrb.gmra.mxu2 %v6382_v28  ;;  %3352 = vmatmul.bf16.vlgmr.msrb.gmra.mxu3 %v6382_v28  ;;  %v6004_v28 = vld [vmem:[#allocation8 + $0x80] sm:$0xf] }
 0x543   :  { %3270 = vmatmul.bf16.gmra.mxu0 %v6383_v30  ;;  %3299 = vmatmul.bf16.gmra.mxu1 %v6383_v30 }
 0x544   :  { %3328 = vmatmul.bf16.gmra.mxu2 %v6383_v30  ;;  %3357 = vmatmul.bf16.gmra.mxu3 %v6383_v30  ;;  %v6436_v30 = vld [vmem:[#allocation8 + $0x8c] sm:$0xf0] }
 0x553   :  { %3275 = vmatmul.bf16.gmra.mxu0 %v6384_v58  ;;  %3304 = vmatmul.bf16.gmra.mxu1 %v6384_v58 }
 0x554   :  { %3333 = vmatmul.bf16.gmra.mxu2 %v6384_v58  ;;  %3362 = vmatmul.bf16.gmra.mxu3 %v6384_v58 }
 0x5a0   :  { %v2910_v56 = vpop.f32.mrf.mxu0  ;;  %v2923_v53 = vpop.f32.mrf.mxu1 }
 0x5a1   :  { %v2953_v7 = vadd.f32 %v2910_v56, %v335_v36  ;;  %v2954_v59 = vadd.f32 %v2923_v53, %v364_v49  ;;  %v7305_v49 = vor.u32 %v6441_v43, %v6028_v35  ;;  %v6434_v56 = vld [vmem:[#allocation8 + $0x84] sm:$0xf]  ;;  %v6006_v53 = vld [vmem:[#allocation8 + $0x90] sm:$0xf0]  ;;  %v5998_v43 = vld [vmem:[#allocation8 + $0x78] sm:$0xf0] }
 0x5a3   :  { %v5791_v60 = vmul.f32 -1.442695, %v2953_v7  ;;  %v5792_v41 = vmul.f32 -1.442695, %v2954_v59  ;;  %v7312_v7 = vor.u32 %v6436_v30, %v6004_v28  ;;  %v7314_v59 = vor.u32 %v6434_v56, %v6006_v53  ;;  %3629 = vmatpush.bf16.msra.mxu2 %v7305_v49  ;;  %v6419_v56 = vld [vmem:[#allocation8 + $0xc] sm:$0xf] }
 0x5a5   :  { %6568 = vpow2.f32 %v5791_v60  ;;  %v6012_v60 = vld [vmem:[#allocation8 + $0x88] sm:$0xf]  ;;  %3604 = vmatpush.bf16.msra.mxu0 %v7312_v7  ;;  %3617 = vmatpush.bf16.msra.mxu1 %v7314_v59 }
 0x5a6   :  { %6570 = vpow2.f32 %v5792_v41  ;;  %v6437_v41 = vld [vmem:[#allocation8 + $0x94] sm:$0xf0] }
 0x5a7   :  { %v2936_v31 = vpop.f32.mrf.mxu2  ;;  %v7262_v25 = vpop.f32.mrf.mxu3  ;;  %v7331_v20 = vor.u32 %v6437_v41, %v6012_v60  ;;  %v5956_v41 = vld [vmem:[#allocation8 + $0x20] sm:$0xf] }
 0x5a8   :  { %v2955_v44 = vadd.f32 %v2936_v31, %v393_v3  ;;  %v2912_v62 = vpop.f32.mrf.mxu0  ;;  %v2925_v14 = vpop.f32.mrf.mxu1  ;;  %v2956_v40 = vadd.f32 %v7262_v25, %v422_v45  ;;  %v6439_v3 = vld [vmem:[#allocation8 + $0xac] sm:$0xf] }
 0x5a9   :  { %v5988_v62 = vld [vmem:[#allocation8 + $0x60] sm:$0xf]  ;;  %v6432_v14 = vld [vmem:[#allocation8 + $0x6c] sm:$0xf0]  ;;  %v7333_v22 = vor.u32 %v6439_v3, %v6030_v12  ;;  %3630 = vmatpush.bf16.msra.mxu2 %v7331_v20  ;;  %v6431_v45 = vld [vmem:[#allocation8 + $0x6c] sm:$0xf] }
 0x5aa   :  { %v5793_v61 = vmul.f32 -1.442695, %v2955_v44  ;;  %v7381_v60 = vor.u32 %v6431_v45, %v5998_v43  ;;  %v6424_v3 = vld [vmem:[#allocation8 + $0x2c] sm:$0xf0] }
 0x5ab   :  { %v6569_v17 = vpop.eup %6568  ;;  %3642 = vmatpush.bf16.msra.mxu3 %v7333_v22 }
 0x5ac   :  { %v6571_v8 = vpop.eup %6570  ;;  %v7275_v47 = vadd.f32 1.0, %v6569_v17  ;;  %6572 = vpow2.f32 %v5793_v61  ;;  %v5990_v61 = vld [vmem:[#allocation8 + $0x70] sm:$0xf0]  ;;  %v5996_v17 = vld [vmem:[#allocation8 + $0x68] sm:$0xf] }
 0x5ad   :  { %v7280_v5 = vadd.f32 1.0, %v6571_v8  ;;  %v6433_v8 = vld [vmem:[#allocation8 + $0x74] sm:$0xf0] }
 0x5ae   :  { %6574 = vrcp.f32 %v7275_v47  ;;  %v2978_v50 = vand.u32 2147483647, %v7275_v47  ;;  %v2980_v16 = vand.u32 2147483648, %v7275_v47  ;;  %v7350_v34 = vor.u32 %v6433_v8, %v5996_v17  ;;  %v5964_v17 = vld [vmem:[#allocation8 + $0x28] sm:$0xf] }
 0x5af   :  { %6576 = vrcp.f32 %v7280_v5  ;;  %v2938_v11 = vpop.f32.mrf.mxu2  ;;  %v2951_v24 = vpop.f32.mrf.mxu3  ;;  %v2995_v58 = vand.u32 2147483648, %v7280_v5  ;;  %v2993_v23 = vand.u32 2147483647, %v7280_v5  ;;  %vm2989_vm5 = vweird.f32 %v7280_v5  ;;  %v5982_v8 = vld [vmem:[#allocation8 + $0x58] sm:$0xf0] }
 0x5b0   :  { %vm7321_vm4 = vcmp.eq.f32.partialorder %v2978_v50, 8.507059e+37  ;;  %v2981_v39 = vor.u32 1.1754944e-38, %v2980_v16  ;;  %v7348_v24 = vor.u32 %v6430_v37, %v5990_v61  ;;  %v7352_v50 = vor.u32 %v6435_v15, %v6014_v0  ;;  %v5980_v16 = vld [vmem:[#allocation8 + $0x48] sm:$0xf]  ;;  %3631 = vmatpush.bf16.msra.mxu2 %v7350_v34  ;;  %v6427_v37 = vld [vmem:[#allocation8 + $0x4c] sm:$0xf] }
 0x5b1   :  { %v2996_v57 = vor.u32 1.1754944e-38, %v2995_v58  ;;  %vm2974_vm9 = vweird.f32 %v7275_v47  ;;  %vm7367_vm11 = vcmp.eq.f32.partialorder %v2993_v23, 8.507059e+37  ;;  %v7402_v15 = vor.u32 %v6427_v37, %v5982_v8  ;;  %v6423_v0 = vld [vmem:[#allocation8 + $0x2c] sm:$0xf] }
 0x5b2   :  { %v6573_v52 = vpop.eup %6572  ;;  %3618 = vmatpush.bf16.msra.mxu1 %v7348_v24  ;;  %3643 = vmatpush.bf16.msra.mxu3 %v7352_v50 }
 0x5b3   :  { %v7303_v36 = vadd.f32 1.0, %v6573_v52  ;;  %v6429_v52 = vld [vmem:[#allocation8 + $0x54] sm:$0xf0] }
 0x5b4   :  { %v7307_v21 = vpop.eup %6574 }
 0x5b5   :  { %v7316_v31 = vpop.eup %6576  ;;  %v2970_v6 = vmul.f32 %v7307_v21, %v7275_v47  ;;  %6578 = vrcp.f32 %v7303_v36  ;;  %vm2975_vm8 = vweird.f32 %v7307_v21  ;;  %v7373_v47 = vor.u32 %v6428_v48, %v5972_v9 }
 0x5b6   :  { %v2985_v44 = vmul.f32 %v7316_v31, %v7280_v5  ;;  %vm2990_vm6 = vweird.f32 %v7316_v31  ;;  %6580 = vtanh.f32 %v2956_v40  ;;  %v7344_v5 = vor.u32 %v6432_v14, %v5988_v62  ;;  %vm7362_vm10 = vmor %vm2974_vm9, %vm2975_vm8  ;;  %v5958_v14 = vld [vmem:[#allocation8 + $0x30] sm:$0xf0]  ;;  %3644 = vmatpush.bf16.msra.mxu3 %v7381_v60 }
 0x5b7   :  { %v2971_v63 = vsub.f32 1.0, %v2970_v6  ;;  %vm7335_vm7 = vmor %vm2989_vm5, %vm2990_vm6  ;;  %v7379_v40 = vor.u32 %v6426_v27, %v5974_v46  ;;  %v6422_v6 = vld [vmem:[#allocation8 + $0x24] sm:$0xf]  ;;  %v5966_v27 = vld [vmem:[#allocation8 + $0x38] sm:$0xf0]  ;;  %vm3004_vm13 = vweird.f32 %v7303_v36  ;;  %v3353_v37 = vpop.f32.mrf.mxu3 }
 0x5b8   :  { %v2986_v19 = vsub.f32 1.0, %v2985_v44  ;;  %3605 = vmatpush.bf16.msra.mxu0 %v7344_v5  ;;  %v7400_v54 = vor.u32 %v6422_v6, %v5958_v14  ;;  %v3008_v43 = vand.u32 2147483647, %v7303_v36  ;;  %v7419_v30 = vor.u32 %v6423_v0, %v5966_v27  ;;  %v3324_v14 = vpop.f32.mrf.mxu2 }
 0x5b9   :  { %v2972_v32 = vmul.f32 %v7307_v21, %v2971_v63  ;;  %3619 = vmatpush.bf16.msra.mxu1 %v7379_v40 }
 0x5ba   :  { %v2987_v11 = vmul.f32 %v7316_v31, %v2986_v19  ;;  %v6425_v19 = vld [vmem:[#allocation8 + $0x34] sm:$0xf0]  ;;  %3645 = vmatpush.bf16.msra.mxu3 %v7402_v15  ;;  %vm3009_vm15 = vcmp.eq.f32.partialorder %v3008_v43, 8.507059e+37 }
 0x5bb   :  { %v7354_v42 = vpop.eup %6578  ;;  %v2973_v35 = vadd.f32 %v7307_v21, %v2972_v32  ;;  %v6420_v32 = vld [vmem:[#allocation8 + $0xc] sm:$0xf0]  ;;  %v7405_v48 = vor.u32 %v6425_v19, %v5964_v17 }
 0x5bc   :  { %v3000_v28 = vmul.f32 %v7354_v42, %v7303_v36  ;;  %v2988_v58 = vadd.f32 %v7316_v31, %v2987_v11  ;;  %v6581_v23 = vpop.eup %6580  ;;  %3606 = vmatpush.bf16.msra.mxu0 %v7373_v47  ;;  %v5942_v11 = vld [vmem:[#allocation8 + $0x10] sm:$0xf0]  ;;  %vm3005_vm12 = vweird.f32 %v7354_v42 }
 0x5bd   :  { %v2977_v53 = vsel %vm7362_vm10, %v7307_v21, %v2973_v35  ;;  %v7389_v21 = vor.u32 %v6429_v52, %v5980_v16  ;;  %v5948_v16 = vld [vmem:[#allocation8 + $0x8] sm:$0xf]  ;;  %v6421_v35 = vld [vmem:[#allocation8 + $0x14] sm:$0xf0]  ;;  %v3010_v52 = vand.u32 2147483648, %v7303_v36  ;;  %3620 = vmatpush.bf16.msra.mxu1 %v7400_v54  ;;  %vm3006_vm14 = vmor %vm3004_vm13, %vm3005_vm12 }
 0x5be   :  { %v3001_v12 = vsub.f32 1.0, %v3000_v28  ;;  %v2982_v44 = vsel %vm7321_vm4, %v2981_v39, %v2977_v53  ;;  %v2992_v62 = vsel %vm7335_vm7, %v7316_v31, %v2988_v58  ;;  %v7396_v31 = vor.u32 %v6424_v3, %v5956_v41  ;;  %v5950_v53 = vld [vmem:[#allocation8 + $0x18] sm:$0xf0]  ;;  %3646 = vmatpush.bf16.msra.mxu3 %v7419_v30 }
 0x5bf   :  { %v2997_v63 = vsel %vm7367_vm11, %v2996_v57, %v2992_v62  ;;  %v3016_v61 = vmul.f32 %v6581_v23, %v2982_v44  ;;  %v5940_v57 = vld [vmem:[#allocation8] sm:$0xf]  ;;  %3632 = vmatpush.bf16.msra.mxu2 %v7389_v21  ;;  %v7422_v58 = vor.u32 %v6421_v35, %v5948_v16  ;;  %v3011_v3 = vor.u32 1.1754944e-38, %v3010_v52  ;;  %v3295_v62 = vpop.f32.mrf.mxu1  ;;  %v7506_v19 = vpop.f32.mrf.mxu3 }
 0x5c0   :  { %v3002_v25 = vmul.f32 %v7354_v42, %v3001_v12  ;;  %v3015_v39 = vmul.f32 %v2997_v63, %v7250_v2  ;;  %v6418_v2 = vld [vmem:[#allocation8 + $0x4] sm:$0xf]  ;;  %3607 = vmatpush.bf16.msra.mxu0 %v7396_v31  ;;  %v7411_v45 = vor.u32 %v6420_v32, %v5940_v57  ;;  %v7428_v36 = vor.u32 %v6419_v56, %v5950_v53  ;;  %v7504_v17 = vpop.f32.mrf.mxu2 }
 0x5c1   :  { %v7417_v28 = vor.u32 %v6418_v2, %v5942_v11  ;;  %7838 = vst [vmem:[#allocation11_spill] sm:$0xff] %v7506_v19 }
 0x5c2   :  { %v3017_v9 = vadd.f32 %v3016_v61, %v3015_v39  ;;  %v3003_v46 = vadd.f32 %v7354_v42, %v3002_v25  ;;  %3647 = vmatpush.bf16.msra.mxu3 %v7428_v36 }
 0x5c3   :  { %3633 = vmatpush.bf16.msra.mxu2 %v7405_v48  ;;  %3621 = vmatpush.bf16.msra.mxu1 %v7417_v28 }
 0x5c4   :  { %6582 = vtanh.f32 %v3017_v9  ;;  %v3007_v41 = vsel %vm3006_vm14, %v7354_v42, %v3003_v46  ;;  %3608 = vmatpush.bf16.msra.mxu0 %v7411_v45 }
 0x5c5   :  { %v3012_v23 = vsel %vm3009_vm15, %v3011_v3, %v3007_v41 }
 0x5c6   :  { %3764 = vmatpush.bf16.msrb.mxu3 %v7271_v38 }
 0x5c7   :  { %3634 = vmatpush.bf16.msra.mxu2 %v7422_v58  ;;  %3738 = vmatpush.bf16.msrb.mxu1 %v7266_v13  ;;  %v7502_v61 = vpop.f32.mrf.mxu1  ;;  %v7514_v57 = vpop.f32.mrf.mxu3 }
 0x5c8   :  { %3725 = vmatpush.bf16.msrb.mxu0 %v7264_v51  ;;  %v7512_v39 = vpop.f32.mrf.mxu2  ;;  %7842 = vst [vmem:[#allocation15_spill] sm:$0xff] %v7514_v57 }
 0x5c9   :  { %7841 = vst [vmem:[#allocation14_spill] sm:$0xff] %v7512_v39 }
 0x5ca   :  { %v6583_v6 = vpop.eup %6582  ;;  %3765 = vmatpush.bf16.msrb.mxu3 %v7291_v29 }
 0x5cb   :  { %v3019_v12 = vmul.f32 %v6583_v6, %v3012_v23  ;;  %3751 = vmatpush.bf16.msrb.mxu2 %v7268_v55  ;;  %3739 = vmatpush.bf16.msrb.mxu1 %v7282_v33  ;;  %v3063_v23 = vld [vmem:[%s7824_s6] sm:$0xf] }
 0x5cc   :  { %3726 = vmatpush.bf16.msrb.mxu0 %v7277_v10 }
 0x5cd   :  { %v3020_v42 = vpack.c.bf16 %v3019_v12, %v3019_v12 }
 0x5ce   :  { %3766 = vmatpush.bf16.msrb.mxu3 %v7333_v22 }
 0x5cf   :  { %3022 = vst [vmem:[#allocation3 + $0x1c] sm:$0xf] %v3020_v42  ;;  %3752 = vmatpush.bf16.msrb.mxu2 %v7289_v18  ;;  %3740 = vmatpush.bf16.msrb.mxu1 %v7299_v1  ;;  %v7510_v25 = vpop.f32.mrf.mxu1  ;;  %v7522_v2 = vpop.f32.mrf.mxu3 }
 0x5d0   :  { %3727 = vmatpush.bf16.msrb.mxu0 %v7297_v26  ;;  %7840 = vst [vmem:[#allocation13_spill] sm:$0xff] %v7510_v25  ;;  %v7520_v9 = vpop.f32.mrf.mxu2 }
 0x5d1   :  { %7845 = vst [vmem:[#allocation18_spill] sm:$0xff] %v7520_v9 }
 0x5d2   :  { %3767 = vmatpush.bf16.msrb.mxu3 %v7352_v50  ;;  %7846 = vst [vmem:[#allocation19_spill] sm:$0xff] %v7522_v2 }
 0x5d3   :  { %3753 = vmatpush.bf16.msrb.mxu2 %v7305_v49  ;;  %3741 = vmatpush.bf16.msrb.mxu1 %v7314_v59 }
 0x5d4   :  { %3728 = vmatpush.bf16.msrb.mxu0 %v7312_v7 }
 0x5d6   :  { %v6385_v44 = vld [vmem:[#allocation3 + $0x18] sm:$0xff]  ;;  %3768 = vmatpush.bf16.msrb.mxu3 %v7381_v60 }
 0x5d7   :  { %3754 = vmatpush.bf16.msrb.mxu2 %v7331_v20  ;;  %3280 = vmatmul.bf16.gmra.mxu0 %v6385_v44  ;;  %v7518_v0 = vpop.f32.mrf.mxu1  ;;  %v7530_v16 = vpop.f32.mrf.mxu3 }
 0x5d8   :  { %3309 = vmatmul.bf16.gmra.mxu1 %v6385_v44  ;;  %3338 = vmatmul.bf16.gmra.mxu2 %v6385_v44  ;;  %7844 = vst [vmem:[#allocation17_spill] sm:$0xff] %v7518_v0  ;;  %v7528_v46 = vpop.f32.mrf.mxu2 }
 0x5d9   :  { %3367 = vmatmul.bf16.gmra.mxu3 %v6385_v44  ;;  %3729 = vmatpush.bf16.msrb.mxu0 %v7344_v5  ;;  %7849 = vst [vmem:[#allocation22_spill] sm:$0xff] %v7528_v46  ;;  %v7555_v44 = vperm.slane %v3063_v23, 0  ;;  %v7565_v46 = vperm.slane %v3063_v23, 2 }
 0x5da   :  { %3742 = vmatpush.bf16.msrb.mxu1 %v7348_v24  ;;  %3769 = vmatpush.bf16.msrb.mxu3 %v7402_v15  ;;  %7850 = vst [vmem:[#allocation23_spill] sm:$0xff] %v7530_v16 }
 0x5db   :  { %3755 = vmatpush.bf16.msrb.mxu2 %v7350_v34 }
 0x5dd   :  { %3730 = vmatpush.bf16.msrb.mxu0 %v7373_v47 }
 0x5de   :  { %3743 = vmatpush.bf16.msrb.mxu1 %v7379_v40  ;;  %3770 = vmatpush.bf16.msrb.mxu3 %v7419_v30 }
 0x5df   :  { %3756 = vmatpush.bf16.msrb.mxu2 %v7389_v21  ;;  %v7526_v27 = vpop.f32.mrf.mxu1  ;;  %v7538_v56 = vpop.f32.mrf.mxu3 }
 0x5e0   :  { %7848 = vst [vmem:[#allocation21_spill] sm:$0xff] %v7526_v27  ;;  %v7536_v43 = vpop.f32.mrf.mxu2  ;;  %v3325_v27 = vadd.f32 %v3324_v14, %v7565_v46 }
 0x5e1   :  { %3731 = vmatpush.bf16.msrb.mxu0 %v7396_v31  ;;  %7853 = vst [vmem:[#allocation26_spill] sm:$0xff] %v7536_v43  ;;  %v7557_v43 = vperm.slane %v3063_v23, 1 }
 0x5e2   :  { %3744 = vmatpush.bf16.msrb.mxu1 %v7400_v54  ;;  %3771 = vmatpush.bf16.msrb.mxu3 %v7428_v36  ;;  %7854 = vst [vmem:[#allocation27_spill] sm:$0xff] %v7538_v56 }
 0x5e3   :  { %3757 = vmatpush.bf16.msrb.mxu2 %v7405_v48 }
 0x5e5   :  { %3732 = vmatpush.bf16.msrb.mxu0 %v7411_v45 }
 0x5e6   :  { %3745 = vmatpush.bf16.msrb.mxu1 %v7417_v28 }
 0x5e7   :  { %3758 = vmatpush.bf16.msrb.mxu2 %v7422_v58  ;;  %3609 = vmatmul.bf16.vlgmr.msra.gmra.mxu0 %v6793_v4  ;;  %v7534_v52 = vpop.f32.mrf.mxu1 }
 0x5e8   :  { %3622 = vmatmul.bf16.vlgmr.msra.gmra.mxu1 %v6793_v4  ;;  %3635 = vmatmul.bf16.vlgmr.msra.gmra.mxu2 %v6793_v4  ;;  %7852 = vst [vmem:[#allocation25_spill] sm:$0xff] %v7534_v52 }
 0x5e9   :  { %3648 = vmatmul.bf16.vlgmr.msra.gmra.mxu3 %v6793_v4  ;;  %3849 = vmatpush.bf16.msra.mxu0 %v7264_v51  ;;  %v3266_v4 = vpop.f32.mrf.mxu0 }
 0x5ea   :  { %3862 = vmatpush.bf16.msra.mxu1 %v7266_v13  ;;  %3888 = vmatpush.bf16.msra.mxu3 %v7271_v38 }
 0x5eb   :  { %3875 = vmatpush.bf16.msra.mxu2 %v7268_v55 }
 0x5ed   :  { %3850 = vmatpush.bf16.msra.mxu0 %v7277_v10 }
 0x5ee   :  { %3863 = vmatpush.bf16.msra.mxu1 %v7282_v33  ;;  %3889 = vmatpush.bf16.msra.mxu3 %v7291_v29 }
 0x5ef   :  { %3876 = vmatpush.bf16.msra.mxu2 %v7289_v18 }
 0x5f1   :  { %3851 = vmatpush.bf16.msra.mxu0 %v7297_v26  ;;  %v7500_v63 = vpop.f32.mrf.mxu0 }
 0x5f2   :  { %3864 = vmatpush.bf16.msra.mxu1 %v7299_v1  ;;  %3890 = vmatpush.bf16.msra.mxu3 %v7333_v22 }
 0x5f3   :  { %3877 = vmatpush.bf16.msra.mxu2 %v7305_v49 }
 0x5f5   :  { %3852 = vmatpush.bf16.msra.mxu0 %v7312_v7 }
 0x5f6   :  { %3865 = vmatpush.bf16.msra.mxu1 %v7314_v59  ;;  %3891 = vmatpush.bf16.msra.mxu3 %v7352_v50 }
 0x5f7   :  { %3878 = vmatpush.bf16.msra.mxu2 %v7331_v20 }
 0x5f9   :  { %3853 = vmatpush.bf16.msra.mxu0 %v7344_v5  ;;  %v7508_v8 = vpop.f32.mrf.mxu0 }
 0x5fa   :  { %3866 = vmatpush.bf16.msra.mxu1 %v7348_v24  ;;  %3892 = vmatpush.bf16.msra.mxu3 %v7381_v60  ;;  %7839 = vst [vmem:[#allocation12_spill] sm:$0xff] %v7508_v8 }
 0x5fb   :  { %3879 = vmatpush.bf16.msra.mxu2 %v7350_v34 }
 0x5fd   :  { %3854 = vmatpush.bf16.msra.mxu0 %v7373_v47 }
 0x5fe   :  { %3867 = vmatpush.bf16.msra.mxu1 %v7379_v40  ;;  %3893 = vmatpush.bf16.msra.mxu3 %v7402_v15 }
 0x5ff   :  { %3880 = vmatpush.bf16.msra.mxu2 %v7389_v21 }
 0x601   :  { %3855 = vmatpush.bf16.msra.mxu0 %v7396_v31  ;;  %v7516_v32 = vpop.f32.mrf.mxu0 }
 0x602   :  { %3868 = vmatpush.bf16.msra.mxu1 %v7400_v54  ;;  %3894 = vmatpush.bf16.msra.mxu3 %v7419_v30  ;;  %7843 = vst [vmem:[#allocation16_spill] sm:$0xff] %v7516_v32 }
 0x603   :  { %3881 = vmatpush.bf16.msra.mxu2 %v7405_v48 }
 0x605   :  { %3856 = vmatpush.bf16.msra.mxu0 %v7411_v45 }
 0x606   :  { %3869 = vmatpush.bf16.msra.mxu1 %v7417_v28  ;;  %3895 = vmatpush.bf16.msra.mxu3 %v7428_v36 }
 0x607   :  { %3882 = vmatpush.bf16.msra.mxu2 %v7422_v58 }
 0x609   :  { %v7524_v11 = vpop.f32.mrf.mxu0 }
 0x60a   :  { %7847 = vst [vmem:[#allocation20_spill] sm:$0xff] %v7524_v11 }
 0x611   :  { %v7532_v35 = vpop.f32.mrf.mxu0 }
 0x612   :  { %7851 = vst [vmem:[#allocation24_spill] sm:$0xff] %v7532_v35 }
 0x654   :  { %v7540_v53 = vpop.f32.mrf.mxu0 }
 0x655   :  { %7855 = vst [vmem:[#allocation28_spill] sm:$0xff] %v7540_v53  ;;  %v7542_v41 = vpop.f32.mrf.mxu1  ;;  %v3267_v53 = vadd.f32 %v3266_v4, %v7555_v44 }
 0x656   :  { %7856 = vst [vmem:[#allocation29_spill] sm:$0xff] %v7542_v41  ;;  %v3296_v41 = vadd.f32 %v3295_v62, %v7557_v43 }
 0x65b   :  { %v7544_v3 = vpop.f32.mrf.mxu2 }
 0x65c   :  { %7857 = vst [vmem:[#allocation30_spill] sm:$0xff] %v7544_v3  ;;  %v7546_v6 = vpop.f32.mrf.mxu3  ;;  %v7551_v12 = vpop.f32.mrf.mxu0 }
 0x65d   :  { %7858 = vst [vmem:[#allocation31_spill] sm:$0xff] %v7546_v6  ;;  %v7553_v42 = vpop.f32.mrf.mxu1 }
 0x65e   :  { %7859 = vst [vmem:[#allocation32_spill] sm:$0xff] %v7551_v12 }
 0x65f   :  { %7860 = vst [vmem:[#allocation33_spill] sm:$0xff] %v7553_v42 }
 0x663   :  { %v7561_v56 = vpop.f32.mrf.mxu2 }
 0x664   :  { %7861 = vst [vmem:[#allocation34_spill] sm:$0xff] %v7561_v56  ;;  %v7563_v3 = vpop.f32.mrf.mxu3  ;;  %v3610_v6 = vpop.f32.mrf.mxu0 }
 0x665   :  { %7862 = vst [vmem:[#allocation35_spill] sm:$0xff] %v7563_v3  ;;  %v3623_v52 = vpop.f32.mrf.mxu1  ;;  %v3653_v35 = vadd.f32 %v3610_v6, %v3267_v53 }
 0x666   :  { %v3654_v16 = vadd.f32 %v3623_v52, %v3296_v41  ;;  %v7568_v52 = vperm.slane %v3063_v23, 3 }
 0x667   :  { %v6066_v12 = vmul.f32 -1.442695, %v3653_v35 }
 0x668   :  { %v6067_v42 = vmul.f32 -1.442695, %v3654_v16  ;;  %7863 = vst [vmem:[#allocation36_spill] sm:$0xff] %v7568_v52  ;;  %v3354_v14 = vadd.f32 %v3353_v37, %v7568_v52 }
 0x669   :  { %6584 = vpow2.f32 %v6066_v12 }
 0x66a   :  { %6586 = vpow2.f32 %v6067_v42 }
 0x66b   :  { %v3636_v11 = vpop.f32.mrf.mxu2 }
 0x66c   :  { %v3649_v4 = vpop.f32.mrf.mxu3  ;;  %v3655_v2 = vadd.f32 %v3636_v11, %v3325_v27  ;;  %v3612_v62 = vpop.f32.mrf.mxu0 }
 0x66d   :  { %v3625_v9 = vpop.f32.mrf.mxu1  ;;  %v3656_v11 = vadd.f32 %v3649_v4, %v3354_v14 }
 0x66e   :  { %v6068_v56 = vmul.f32 -1.442695, %v3655_v2 }
 0x66f   :  { %v6585_v0 = vpop.eup %6584 }
 0x670   :  { %v6587_v3 = vpop.eup %6586  ;;  %v3666_v32 = vadd.f32 1.0, %v6585_v0  ;;  %6588 = vpow2.f32 %v6068_v56 }
 0x671   :  { %v3667_v53 = vadd.f32 1.0, %v6587_v3 }
 0x672   :  { %6590 = vrcp.f32 %v3666_v32  ;;  %v3680_v56 = vand.u32 2147483648, %v3666_v32  ;;  %v3678_v62 = vand.u32 2147483647, %v3666_v32  ;;  %vm3674_vm2 = vweird.f32 %v3666_v32 }
 0x673   :  { %6592 = vrcp.f32 %v3667_v53  ;;  %v3638_v16 = vpop.f32.mrf.mxu2  ;;  %v3695_v3 = vand.u32 2147483648, %v3667_v53  ;;  %vm3689_vm3 = vweird.f32 %v3667_v53 }
 0x674   :  { %v3651_v35 = vpop.f32.mrf.mxu3  ;;  %vm3679_vm5 = vcmp.eq.f32.partialorder %v3678_v62, 8.507059e+37 }
 0x675   :  { %v3693_v35 = vand.u32 2147483647, %v3667_v53  ;;  %v3696_v39 = vor.u32 1.1754944e-38, %v3695_v3 }
 0x676   :  { %v6589_v41 = vpop.eup %6588 }
 0x677   :  { %v3668_v6 = vadd.f32 1.0, %v6589_v41  ;;  %v3681_v41 = vor.u32 1.1754944e-38, %v3680_v56  ;;  %vm3694_vm7 = vcmp.eq.f32.partialorder %v3693_v35, 8.507059e+37 }
 0x678   :  { %v6591_v12 = vpop.eup %6590 }
 0x679   :  { %v6593_v27 = vpop.eup %6592  ;;  %v3670_v9 = vmul.f32 %v6591_v12, %v3666_v32  ;;  %6594 = vrcp.f32 %v3668_v6  ;;  %vm3675_vm0 = vweird.f32 %v6591_v12  ;;  %vm3704_vm9 = vweird.f32 %v3668_v6 }
 0x67a   :  { %v3685_v2 = vmul.f32 %v6593_v27, %v3667_v53  ;;  %6596 = vtanh.f32 %v3656_v11  ;;  %vm3690_vm1 = vweird.f32 %v6593_v27  ;;  %vm3676_vm4 = vmor %vm3674_vm2, %vm3675_vm0  ;;  %v3710_v53 = vand.u32 2147483648, %v3668_v6 }
 0x67b   :  { %v3671_v42 = vsub.f32 1.0, %v3670_v9  ;;  %vm3691_vm6 = vmor %vm3689_vm3, %vm3690_vm1 }
 0x67c   :  { %v3686_v0 = vsub.f32 1.0, %v3685_v2  ;;  %v3711_v3 = vor.u32 1.1754944e-38, %v3710_v53 }
 0x67d   :  { %v3672_v23 = vmul.f32 %v6591_v12, %v3671_v42 }
 0x67e   :  { %v3687_v16 = vmul.f32 %v6593_v27, %v3686_v0 }
 0x67f   :  { %v6595_v57 = vpop.eup %6594  ;;  %v3673_v37 = vadd.f32 %v6591_v12, %v3672_v23 }
 0x680   :  { %v3700_v4 = vmul.f32 %v6595_v57, %v3668_v6  ;;  %v3688_v14 = vadd.f32 %v6593_v27, %v3687_v16  ;;  %v6597_v11 = vpop.eup %6596  ;;  %vm3705_vm8 = vweird.f32 %v6595_v57 }
 0x681   :  { %v3677_v9 = vsel %vm3676_vm4, %v6591_v12, %v3673_v37  ;;  %v3708_v12 = vand.u32 2147483647, %v3668_v6  ;;  %vm3706_vm10 = vmor %vm3704_vm9, %vm3705_vm8 }
 0x682   :  { %v3701_v2 = vsub.f32 1.0, %v3700_v4  ;;  %v3682_v42 = vsel %vm3679_vm5, %v3681_v41, %v3677_v9  ;;  %v3692_v25 = vsel %vm3691_vm6, %v6593_v27, %v3688_v14  ;;  %v3327_v4 = vadd.f32 %v7504_v17, %v7565_v46 }
 0x683   :  { %v3697_v0 = vsel %vm3694_vm7, %v3696_v39, %v3692_v25  ;;  %v3716_v8 = vmul.f32 %v6597_v11, %v3682_v42  ;;  %vm3709_vm11 = vcmp.eq.f32.partialorder %v3708_v12, 8.507059e+37 }
 0x684   :  { %v3702_v19 = vmul.f32 %v6595_v57, %v3701_v2  ;;  %v3715_v52 = vmul.f32 0.0, %v3697_v0 }
 0x686   :  { %v7571_v23 = vadd.f32 %v3716_v8, %v3715_v52  ;;  %v3703_v32 = vadd.f32 %v6595_v57, %v3702_v19  ;;  %v3269_v19 = vadd.f32 %v7500_v63, %v7555_v44  ;;  %v3298_v8 = vadd.f32 %v7502_v61, %v7557_v43 }
 0x688   :  { %6598 = vtanh.f32 %v7571_v23  ;;  %v3707_v56 = vsel %vm3706_vm10, %v6595_v57, %v3703_v32 }
 0x689   :  { %v3712_v27 = vsel %vm3709_vm11, %v3711_v3, %v3707_v56  ;;  %v7864_v3 = vld [vmem:[#allocation36_spill] sm:$0xff] }
 0x68e   :  { %v6599_v62 = vpop.eup %6598 }
 0x68f   :  { %v3719_v16 = vmul.f32 %v6599_v62, %v3712_v27  ;;  %v7865_v62 = vld [vmem:[#allocation11_spill] sm:$0xff] }
 0x690   :  { %v3356_v17 = vadd.f32 %v7865_v62, %v7864_v3 }
 0x691   :  { %v3724_v25 = vpack.c.bf16 %v3719_v16, %v3719_v16 }
 0x693   :  { %3733 = vmatmul.bf16.vlgmr.msrb.gmra.mxu0 %v3724_v25  ;;  %3746 = vmatmul.bf16.vlgmr.msrb.gmra.mxu1 %v3724_v25 }
 0x694   :  { %3759 = vmatmul.bf16.vlgmr.msrb.gmra.mxu2 %v3724_v25  ;;  %3772 = vmatmul.bf16.vlgmr.msrb.gmra.mxu3 %v3724_v25 }
 0x695   :  { %3973 = vmatpush.bf16.msrb.mxu0 %v7264_v51  ;;  %3986 = vmatpush.bf16.msrb.mxu1 %v7266_v13 }
 0x696   :  { %3999 = vmatpush.bf16.msrb.mxu2 %v7268_v55  ;;  %4012 = vmatpush.bf16.msrb.mxu3 %v7271_v38 }
 0x699   :  { %3974 = vmatpush.bf16.msrb.mxu0 %v7277_v10  ;;  %3987 = vmatpush.bf16.msrb.mxu1 %v7282_v33 }
 0x69a   :  { %4000 = vmatpush.bf16.msrb.mxu2 %v7289_v18  ;;  %4013 = vmatpush.bf16.msrb.mxu3 %v7291_v29 }
 0x69d   :  { %3975 = vmatpush.bf16.msrb.mxu0 %v7297_v26  ;;  %3988 = vmatpush.bf16.msrb.mxu1 %v7299_v1 }
 0x69e   :  { %4001 = vmatpush.bf16.msrb.mxu2 %v7305_v49  ;;  %4014 = vmatpush.bf16.msrb.mxu3 %v7333_v22 }
 0x6a1   :  { %3976 = vmatpush.bf16.msrb.mxu0 %v7312_v7  ;;  %3989 = vmatpush.bf16.msrb.mxu1 %v7314_v59 }
 0x6a2   :  { %4002 = vmatpush.bf16.msrb.mxu2 %v7331_v20  ;;  %4015 = vmatpush.bf16.msrb.mxu3 %v7352_v50 }
 0x6a5   :  { %3977 = vmatpush.bf16.msrb.mxu0 %v7344_v5  ;;  %3990 = vmatpush.bf16.msrb.mxu1 %v7348_v24 }
 0x6a6   :  { %4003 = vmatpush.bf16.msrb.mxu2 %v7350_v34  ;;  %4016 = vmatpush.bf16.msrb.mxu3 %v7381_v60 }
 0x6a9   :  { %3978 = vmatpush.bf16.msrb.mxu0 %v7373_v47  ;;  %3991 = vmatpush.bf16.msrb.mxu1 %v7379_v40 }
 0x6aa   :  { %4004 = vmatpush.bf16.msrb.mxu2 %v7389_v21  ;;  %4017 = vmatpush.bf16.msrb.mxu3 %v7402_v15 }
 0x6ad   :  { %3979 = vmatpush.bf16.msrb.mxu0 %v7396_v31  ;;  %3992 = vmatpush.bf16.msrb.mxu1 %v7400_v54 }
 0x6ae   :  { %4005 = vmatpush.bf16.msrb.mxu2 %v7405_v48  ;;  %4018 = vmatpush.bf16.msrb.mxu3 %v7419_v30 }
 0x6b1   :  { %3980 = vmatpush.bf16.msrb.mxu0 %v7411_v45  ;;  %3993 = vmatpush.bf16.msrb.mxu1 %v7417_v28 }
 0x6b2   :  { %4006 = vmatpush.bf16.msrb.mxu2 %v7422_v58  ;;  %4019 = vmatpush.bf16.msrb.mxu3 %v7428_v36 }
 0x710   :  { %v3734_v39 = vpop.f32.mrf.mxu0  ;;  %v3747_v57 = vpop.f32.mrf.mxu1 }
 0x711   :  { %v3777_v52 = vadd.f32 %v3734_v39, %v3269_v19  ;;  %v3778_v6 = vadd.f32 %v3747_v57, %v3298_v8 }
 0x713   :  { %v6069_v35 = vmul.f32 -1.442695, %v3777_v52  ;;  %v6070_v37 = vmul.f32 -1.442695, %v3778_v6 }
 0x715   :  { %6600 = vpow2.f32 %v6069_v35 }
 0x716   :  { %6602 = vpow2.f32 %v6070_v37 }
 0x717   :  { %v3760_v41 = vpop.f32.mrf.mxu2  ;;  %v3773_v14 = vpop.f32.mrf.mxu3 }
 0x718   :  { %v3779_v9 = vadd.f32 %v3760_v41, %v3327_v4  ;;  %v3736_v11 = vpop.f32.mrf.mxu0  ;;  %v3749_v2 = vpop.f32.mrf.mxu1  ;;  %v3780_v25 = vadd.f32 %v3773_v14, %v3356_v17 }
 0x71a   :  { %v6071_v63 = vmul.f32 -1.442695, %v3779_v9 }
 0x71b   :  { %v6601_v42 = vpop.eup %6600 }
 0x71c   :  { %v6603_v0 = vpop.eup %6602  ;;  %v3790_v61 = vadd.f32 1.0, %v6601_v42  ;;  %6604 = vpow2.f32 %v6071_v63 }
 0x71d   :  { %v3791_v32 = vadd.f32 1.0, %v6603_v0 }
 0x71e   :  { %6606 = vrcp.f32 %v3790_v61  ;;  %v3804_v6 = vand.u32 2147483648, %v3790_v61  ;;  %v3802_v4 = vand.u32 2147483647, %v3790_v61  ;;  %vm3798_vm14 = vweird.f32 %v3790_v61 }
 0x71f   :  { %6608 = vrcp.f32 %v3791_v32  ;;  %v3762_v53 = vpop.f32.mrf.mxu2  ;;  %v3775_v12 = vpop.f32.mrf.mxu3  ;;  %v3819_v35 = vand.u32 2147483648, %v3791_v32  ;;  %v3817_v9 = vand.u32 2147483647, %v3791_v32  ;;  %vm3813_vm15 = vweird.f32 %v3791_v32 }
 0x720   :  { %v3805_v63 = vor.u32 1.1754944e-38, %v3804_v6  ;;  %vm3803_vm2 = vcmp.eq.f32.partialorder %v3802_v4, 8.507059e+37 }
 0x721   :  { %v3820_v0 = vor.u32 1.1754944e-38, %v3819_v35  ;;  %vm3818_vm3 = vcmp.eq.f32.partialorder %v3817_v9, 8.507059e+37  ;;  %v7867_v9 = vld [vmem:[#allocation13_spill] sm:$0xff] }
 0x722   :  { %v6605_v56 = vpop.eup %6604 }
 0x723   :  { %v3792_v27 = vadd.f32 1.0, %v6605_v56 }
 0x724   :  { %v6607_v16 = vpop.eup %6606 }
 0x725   :  { %v6609_v19 = vpop.eup %6608  ;;  %v3794_v8 = vmul.f32 %v6607_v16, %v3790_v61  ;;  %6610 = vrcp.f32 %v3792_v27  ;;  %vm3799_vm12 = vweird.f32 %v6607_v16  ;;  %vm3828_vm5 = vweird.f32 %v3792_v27 }
 0x726   :  { %v3809_v39 = vmul.f32 %v6609_v19, %v3791_v32  ;;  %6612 = vtanh.f32 %v3780_v25  ;;  %vm3814_vm13 = vweird.f32 %v6609_v19  ;;  %vm3800_vm0 = vmor %vm3798_vm14, %vm3799_vm12 }
 0x727   :  { %v3795_v57 = vsub.f32 1.0, %v3794_v8  ;;  %vm3815_vm1 = vmor %vm3813_vm15, %vm3814_vm13 }
 0x728   :  { %v3810_v52 = vsub.f32 1.0, %v3809_v39 }
 0x729   :  { %v3796_v37 = vmul.f32 %v6607_v16, %v3795_v57 }
 0x72a   :  { %v3811_v41 = vmul.f32 %v6609_v19, %v3810_v52  ;;  %v3834_v52 = vand.u32 2147483648, %v3792_v27 }
 0x72b   :  { %v6611_v11 = vpop.eup %6610  ;;  %v3797_v2 = vadd.f32 %v6607_v16, %v3796_v37 }
 0x72c   :  { %v3824_v14 = vmul.f32 %v6611_v11, %v3792_v27  ;;  %v3812_v42 = vadd.f32 %v6609_v19, %v3811_v41  ;;  %v6613_v12 = vpop.eup %6612  ;;  %vm3829_vm4 = vweird.f32 %v6611_v11  ;;  %v3835_v35 = vor.u32 1.1754944e-38, %v3834_v52 }
 0x72d   :  { %v3801_v53 = vsel %vm3800_vm0, %v6607_v16, %v3797_v2  ;;  %v3832_v16 = vand.u32 2147483647, %v3792_v27  ;;  %vm3830_vm6 = vmor %vm3828_vm5, %vm3829_vm4 }
 0x72e   :  { %v3825_v56 = vsub.f32 1.0, %v3824_v14  ;;  %v3806_v62 = vsel %vm3803_vm2, %v3805_v63, %v3801_v53  ;;  %v3816_v17 = vsel %vm3815_vm1, %v6609_v19, %v3812_v42 }
 0x72f   :  { %v3821_v25 = vsel %vm3818_vm3, %v3820_v0, %v3816_v17  ;;  %v3840_v8 = vmul.f32 %v6613_v12, %v3806_v62  ;;  %vm3833_vm7 = vcmp.eq.f32.partialorder %v3832_v16, 8.507059e+37  ;;  %v7868_v12 = vld [vmem:[#allocation14_spill] sm:$0xff] }
 0x730   :  { %v3826_v39 = vmul.f32 %v6611_v11, %v3825_v56  ;;  %v3839_v57 = vmul.f32 %v3821_v25, %v7571_v23  ;;  %v7866_v23 = vld [vmem:[#allocation12_spill] sm:$0xff]  ;;  %v3330_v56 = vadd.f32 %v7868_v12, %v7565_v46 }
 0x731   :  { %v3272_v27 = vadd.f32 %v7866_v23, %v7555_v44 }
 0x732   :  { %v7615_v61 = vadd.f32 %v3840_v8, %v3839_v57  ;;  %v3827_v32 = vadd.f32 %v6611_v11, %v3826_v39 }
 0x734   :  { %6614 = vtanh.f32 %v7615_v61  ;;  %v3831_v6 = vsel %vm3830_vm6, %v6611_v11, %v3827_v32  ;;  %v3301_v11 = vadd.f32 %v7867_v9, %v7557_v43 }
 0x735   :  { %v3836_v37 = vsel %vm3833_vm7, %v3835_v35, %v3831_v6 }
 0x73a   :  { %v6615_v19 = vpop.eup %6614 }
 0x73b   :  { %v3843_v4 = vmul.f32 %v6615_v19, %v3836_v37 }
 0x73d   :  { %v3848_v41 = vpack.c.bf16 %v3843_v4, %v3843_v4  ;;  %v7869_v4 = vld [vmem:[#allocation15_spill] sm:$0xff] }
 0x73f   :  { %3857 = vmatmul.bf16.vlgmr.msra.gmra.mxu0 %v3848_v41  ;;  %3870 = vmatmul.bf16.vlgmr.msra.gmra.mxu1 %v3848_v41 }
 0x740   :  { %3883 = vmatmul.bf16.vlgmr.msra.gmra.mxu2 %v3848_v41  ;;  %3896 = vmatmul.bf16.vlgmr.msra.gmra.mxu3 %v3848_v41  ;;  %v3359_v41 = vadd.f32 %v7869_v4, %v7864_v3 }
 0x741   :  { %4097 = vmatpush.bf16.msra.mxu0 %v7264_v51  ;;  %4110 = vmatpush.bf16.msra.mxu1 %v7266_v13 }
 0x742   :  { %4123 = vmatpush.bf16.msra.mxu2 %v7268_v55  ;;  %4136 = vmatpush.bf16.msra.mxu3 %v7271_v38 }
 0x745   :  { %4098 = vmatpush.bf16.msra.mxu0 %v7277_v10  ;;  %4111 = vmatpush.bf16.msra.mxu1 %v7282_v33 }
 0x746   :  { %4124 = vmatpush.bf16.msra.mxu2 %v7289_v18  ;;  %4137 = vmatpush.bf16.msra.mxu3 %v7291_v29 }
 0x749   :  { %4099 = vmatpush.bf16.msra.mxu0 %v7297_v26  ;;  %4112 = vmatpush.bf16.msra.mxu1 %v7299_v1 }
 0x74a   :  { %4125 = vmatpush.bf16.msra.mxu2 %v7305_v49  ;;  %4138 = vmatpush.bf16.msra.mxu3 %v7333_v22 }
 0x74d   :  { %4100 = vmatpush.bf16.msra.mxu0 %v7312_v7  ;;  %4113 = vmatpush.bf16.msra.mxu1 %v7314_v59 }
 0x74e   :  { %4126 = vmatpush.bf16.msra.mxu2 %v7331_v20  ;;  %4139 = vmatpush.bf16.msra.mxu3 %v7352_v50 }
 0x751   :  { %4101 = vmatpush.bf16.msra.mxu0 %v7344_v5  ;;  %4114 = vmatpush.bf16.msra.mxu1 %v7348_v24 }
 0x752   :  { %4127 = vmatpush.bf16.msra.mxu2 %v7350_v34  ;;  %4140 = vmatpush.bf16.msra.mxu3 %v7381_v60 }
 0x755   :  { %4102 = vmatpush.bf16.msra.mxu0 %v7373_v47  ;;  %4115 = vmatpush.bf16.msra.mxu1 %v7379_v40 }
 0x756   :  { %4128 = vmatpush.bf16.msra.mxu2 %v7389_v21  ;;  %4141 = vmatpush.bf16.msra.mxu3 %v7402_v15 }
 0x759   :  { %4103 = vmatpush.bf16.msra.mxu0 %v7396_v31  ;;  %4116 = vmatpush.bf16.msra.mxu1 %v7400_v54 }
 0x75a   :  { %4129 = vmatpush.bf16.msra.mxu2 %v7405_v48  ;;  %4142 = vmatpush.bf16.msra.mxu3 %v7419_v30 }
 0x75d   :  { %4104 = vmatpush.bf16.msra.mxu0 %v7411_v45  ;;  %4117 = vmatpush.bf16.msra.mxu1 %v7417_v28 }
 0x75e   :  { %4130 = vmatpush.bf16.msra.mxu2 %v7422_v58  ;;  %4143 = vmatpush.bf16.msra.mxu3 %v7428_v36 }
 0x7bc   :  { %v3858_v2 = vpop.f32.mrf.mxu0  ;;  %v3871_v14 = vpop.f32.mrf.mxu1 }
 0x7bd   :  { %v3901_v63 = vadd.f32 %v3858_v2, %v3272_v27  ;;  %v3902_v42 = vadd.f32 %v3871_v14, %v3301_v11 }
 0x7bf   :  { %v6072_v0 = vmul.f32 -1.442695, %v3901_v63  ;;  %v6073_v53 = vmul.f32 -1.442695, %v3902_v42 }
 0x7c1   :  { %6616 = vpow2.f32 %v6072_v0 }
 0x7c2   :  { %6618 = vpow2.f32 %v6073_v53 }
 0x7c3   :  { %v3884_v62 = vpop.f32.mrf.mxu2  ;;  %v3897_v17 = vpop.f32.mrf.mxu3 }
 0x7c4   :  { %v3903_v25 = vadd.f32 %v3884_v62, %v3330_v56  ;;  %v3860_v8 = vpop.f32.mrf.mxu0  ;;  %v3873_v39 = vpop.f32.mrf.mxu1  ;;  %v3904_v9 = vadd.f32 %v3897_v17, %v3359_v41 }
 0x7c6   :  { %v6074_v57 = vmul.f32 -1.442695, %v3903_v25 }
 0x7c7   :  { %v6617_v32 = vpop.eup %6616 }
 0x7c8   :  { %v6619_v52 = vpop.eup %6618  ;;  %v3914_v16 = vadd.f32 1.0, %v6617_v32  ;;  %6620 = vpow2.f32 %v6074_v57 }
 0x7c9   :  { %v3915_v6 = vadd.f32 1.0, %v6619_v52 }
 0x7ca   :  { %6622 = vrcp.f32 %v3914_v16  ;;  %v3928_v0 = vand.u32 2147483648, %v3914_v16  ;;  %v3926_v56 = vand.u32 2147483647, %v3914_v16  ;;  %vm3922_vm10 = vweird.f32 %v3914_v16 }
 0x7cb   :  { %6624 = vrcp.f32 %v3915_v6  ;;  %v3886_v35 = vpop.f32.mrf.mxu2  ;;  %v3899_v19 = vpop.f32.mrf.mxu3  ;;  %v3943_v53 = vand.u32 2147483648, %v3915_v6  ;;  %v3941_v25 = vand.u32 2147483647, %v3915_v6  ;;  %vm3937_vm11 = vweird.f32 %v3915_v6 }
 0x7cc   :  { %v3929_v57 = vor.u32 1.1754944e-38, %v3928_v0  ;;  %vm3927_vm14 = vcmp.eq.f32.partialorder %v3926_v56, 8.507059e+37 }
 0x7cd   :  { %v3944_v52 = vor.u32 1.1754944e-38, %v3943_v53  ;;  %vm3942_vm15 = vcmp.eq.f32.partialorder %v3941_v25, 8.507059e+37  ;;  %v7871_v25 = vld [vmem:[#allocation17_spill] sm:$0xff] }
 0x7ce   :  { %v6621_v37 = vpop.eup %6620 }
 0x7cf   :  { %v3916_v23 = vadd.f32 1.0, %v6621_v37 }
 0x7d0   :  { %v6623_v27 = vpop.eup %6622 }
 0x7d1   :  { %v6625_v11 = vpop.eup %6624  ;;  %v3918_v2 = vmul.f32 %v6623_v27, %v3914_v16  ;;  %6626 = vrcp.f32 %v3916_v23  ;;  %vm3923_vm8 = vweird.f32 %v6623_v27  ;;  %vm3952_vm1 = vweird.f32 %v3916_v23 }
 0x7d2   :  { %v3933_v14 = vmul.f32 %v6625_v11, %v3915_v6  ;;  %6628 = vtanh.f32 %v3904_v9  ;;  %vm3938_vm9 = vweird.f32 %v6625_v11  ;;  %vm3924_vm12 = vmor %vm3922_vm10, %vm3923_vm8 }
 0x7d3   :  { %v3919_v63 = vsub.f32 1.0, %v3918_v2  ;;  %vm3939_vm13 = vmor %vm3937_vm11, %vm3938_vm9 }
 0x7d4   :  { %v3934_v42 = vsub.f32 1.0, %v3933_v14 }
 0x7d5   :  { %v3920_v12 = vmul.f32 %v6623_v27, %v3919_v63 }
 0x7d6   :  { %v3935_v62 = vmul.f32 %v6625_v11, %v3934_v42  ;;  %v3958_v42 = vand.u32 2147483648, %v3916_v23 }
 0x7d7   :  { %v6627_v8 = vpop.eup %6626  ;;  %v3921_v39 = vadd.f32 %v6623_v27, %v3920_v12 }
 0x7d8   :  { %v3948_v17 = vmul.f32 %v6627_v8, %v3916_v23  ;;  %v3936_v32 = vadd.f32 %v6625_v11, %v3935_v62  ;;  %v6629_v19 = vpop.eup %6628  ;;  %vm3953_vm0 = vweird.f32 %v6627_v8  ;;  %v3959_v53 = vor.u32 1.1754944e-38, %v3958_v42 }
 0x7d9   :  { %v3925_v35 = vsel %vm3924_vm12, %v6623_v27, %v3921_v39  ;;  %v3956_v27 = vand.u32 2147483647, %v3916_v23  ;;  %vm3954_vm2 = vmor %vm3952_vm1, %vm3953_vm0 }
 0x7da   :  { %v3949_v37 = vsub.f32 1.0, %v3948_v17  ;;  %v3930_v4 = vsel %vm3927_vm14, %v3929_v57, %v3925_v35  ;;  %v3940_v41 = vsel %vm3939_vm13, %v6625_v11, %v3936_v32 }
 0x7db   :  { %v3945_v9 = vsel %vm3942_vm15, %v3944_v52, %v3940_v41  ;;  %v3964_v2 = vmul.f32 %v6629_v19, %v3930_v4  ;;  %vm3957_vm3 = vcmp.eq.f32.partialorder %v3956_v27, 8.507059e+37  ;;  %v7872_v19 = vld [vmem:[#allocation18_spill] sm:$0xff] }
 0x7dc   :  { %v3950_v14 = vmul.f32 %v6627_v8, %v3949_v37  ;;  %v3963_v63 = vmul.f32 %v3945_v9, %v7615_v61  ;;  %v7870_v61 = vld [vmem:[#allocation16_spill] sm:$0xff]  ;;  %v3332_v37 = vadd.f32 %v7872_v19, %v7565_v46 }
 0x7dd   :  { %v3274_v23 = vadd.f32 %v7870_v61, %v7555_v44 }
 0x7de   :  { %v7659_v16 = vadd.f32 %v3964_v2, %v3963_v63  ;;  %v3951_v6 = vadd.f32 %v6627_v8, %v3950_v14 }
 0x7e0   :  { %6630 = vtanh.f32 %v7659_v16  ;;  %v3955_v0 = vsel %vm3954_vm2, %v6627_v8, %v3951_v6  ;;  %v3303_v8 = vadd.f32 %v7871_v25, %v7557_v43 }
 0x7e1   :  { %v3960_v12 = vsel %vm3957_vm3, %v3959_v53, %v3955_v0 }
 0x7e6   :  { %v6631_v11 = vpop.eup %6630 }
 0x7e7   :  { %v3967_v56 = vmul.f32 %v6631_v11, %v3960_v12 }
 0x7e9   :  { %v3972_v62 = vpack.c.bf16 %v3967_v56, %v3967_v56  ;;  %v7873_v56 = vld [vmem:[#allocation19_spill] sm:$0xff] }
 0x7eb   :  { %3981 = vmatmul.bf16.vlgmr.msrb.gmra.mxu0 %v3972_v62  ;;  %3994 = vmatmul.bf16.vlgmr.msrb.gmra.mxu1 %v3972_v62 }
 0x7ec   :  { %4007 = vmatmul.bf16.vlgmr.msrb.gmra.mxu2 %v3972_v62  ;;  %4020 = vmatmul.bf16.vlgmr.msrb.gmra.mxu3 %v3972_v62  ;;  %v3361_v62 = vadd.f32 %v7873_v56, %v7864_v3 }
 0x7ed   :  { %4221 = vmatpush.bf16.msrb.mxu0 %v7264_v51  ;;  %4234 = vmatpush.bf16.msrb.mxu1 %v7266_v13 }
 0x7ee   :  { %4247 = vmatpush.bf16.msrb.mxu2 %v7268_v55  ;;  %4260 = vmatpush.bf16.msrb.mxu3 %v7271_v38 }
 0x7f1   :  { %4222 = vmatpush.bf16.msrb.mxu0 %v7277_v10  ;;  %4235 = vmatpush.bf16.msrb.mxu1 %v7282_v33 }
 0x7f2   :  { %4248 = vmatpush.bf16.msrb.mxu2 %v7289_v18  ;;  %4261 = vmatpush.bf16.msrb.mxu3 %v7291_v29 }
 0x7f5   :  { %4223 = vmatpush.bf16.msrb.mxu0 %v7297_v26  ;;  %4236 = vmatpush.bf16.msrb.mxu1 %v7299_v1 }
 0x7f6   :  { %4249 = vmatpush.bf16.msrb.mxu2 %v7305_v49  ;;  %4262 = vmatpush.bf16.msrb.mxu3 %v7333_v22 }
 0x7f9   :  { %4224 = vmatpush.bf16.msrb.mxu0 %v7312_v7  ;;  %4237 = vmatpush.bf16.msrb.mxu1 %v7314_v59 }
 0x7fa   :  { %4250 = vmatpush.bf16.msrb.mxu2 %v7331_v20  ;;  %4263 = vmatpush.bf16.msrb.mxu3 %v7352_v50 }
 0x7fd   :  { %4225 = vmatpush.bf16.msrb.mxu0 %v7344_v5  ;;  %4238 = vmatpush.bf16.msrb.mxu1 %v7348_v24 }
 0x7fe   :  { %4251 = vmatpush.bf16.msrb.mxu2 %v7350_v34  ;;  %4264 = vmatpush.bf16.msrb.mxu3 %v7381_v60 }
 0x801   :  { %4226 = vmatpush.bf16.msrb.mxu0 %v7373_v47  ;;  %4239 = vmatpush.bf16.msrb.mxu1 %v7379_v40 }
 0x802   :  { %4252 = vmatpush.bf16.msrb.mxu2 %v7389_v21  ;;  %4265 = vmatpush.bf16.msrb.mxu3 %v7402_v15 }
 0x805   :  { %4227 = vmatpush.bf16.msrb.mxu0 %v7396_v31  ;;  %4240 = vmatpush.bf16.msrb.mxu1 %v7400_v54 }
 0x806   :  { %4253 = vmatpush.bf16.msrb.mxu2 %v7405_v48  ;;  %4266 = vmatpush.bf16.msrb.mxu3 %v7419_v30 }
 0x809   :  { %4228 = vmatpush.bf16.msrb.mxu0 %v7411_v45  ;;  %4241 = vmatpush.bf16.msrb.mxu1 %v7417_v28 }
 0x80a   :  { %4254 = vmatpush.bf16.msrb.mxu2 %v7422_v58  ;;  %4267 = vmatpush.bf16.msrb.mxu3 %v7428_v36 }
 0x868   :  { %v3982_v39 = vpop.f32.mrf.mxu0  ;;  %v3995_v17 = vpop.f32.mrf.mxu1 }
 0x869   :  { %v4025_v57 = vadd.f32 %v3982_v39, %v3274_v23  ;;  %v4026_v32 = vadd.f32 %v3995_v17, %v3303_v8 }
 0x86b   :  { %v6075_v52 = vmul.f32 -1.442695, %v4025_v57  ;;  %v6076_v35 = vmul.f32 -1.442695, %v4026_v32 }
 0x86d   :  { %6632 = vpow2.f32 %v6075_v52 }
 0x86e   :  { %6634 = vpow2.f32 %v6076_v35 }
 0x86f   :  { %v4008_v4 = vpop.f32.mrf.mxu2  ;;  %v4021_v41 = vpop.f32.mrf.mxu3 }
 0x870   :  { %v4027_v9 = vadd.f32 %v4008_v4, %v3332_v37  ;;  %v3984_v2 = vpop.f32.mrf.mxu0  ;;  %v3997_v14 = vpop.f32.mrf.mxu1  ;;  %v4028_v25 = vadd.f32 %v4021_v41, %v3361_v62 }
 0x872   :  { %v6077_v63 = vmul.f32 -1.442695, %v4027_v9 }
 0x873   :  { %v6633_v6 = vpop.eup %6632 }
 0x874   :  { %v6635_v42 = vpop.eup %6634  ;;  %v4038_v27 = vadd.f32 1.0, %v6633_v6  ;;  %6636 = vpow2.f32 %v6077_v63 }
 0x875   :  { %v4039_v0 = vadd.f32 1.0, %v6635_v42 }
 0x876   :  { %6638 = vrcp.f32 %v4038_v27  ;;  %v4052_v52 = vand.u32 2147483648, %v4038_v27  ;;  %v4050_v37 = vand.u32 2147483647, %v4038_v27  ;;  %vm4046_vm6 = vweird.f32 %v4038_v27 }
 0x877   :  { %6640 = vrcp.f32 %v4039_v0  ;;  %v4010_v53 = vpop.f32.mrf.mxu2  ;;  %v4023_v11 = vpop.f32.mrf.mxu3  ;;  %v4067_v35 = vand.u32 2147483648, %v4039_v0  ;;  %v4065_v9 = vand.u32 2147483647, %v4039_v0  ;;  %vm4061_vm7 = vweird.f32 %v4039_v0 }
 0x878   :  { %v4053_v63 = vor.u32 1.1754944e-38, %v4052_v52  ;;  %vm4051_vm10 = vcmp.eq.f32.partialorder %v4050_v37, 8.507059e+37 }
 0x879   :  { %v4068_v42 = vor.u32 1.1754944e-38, %v4067_v35  ;;  %vm4066_vm11 = vcmp.eq.f32.partialorder %v4065_v9, 8.507059e+37  ;;  %v7875_v9 = vld [vmem:[#allocation21_spill] sm:$0xff] }
 0x87a   :  { %v6637_v12 = vpop.eup %6636 }
 0x87b   :  { %v4040_v61 = vadd.f32 1.0, %v6637_v12 }
 0x87c   :  { %v6639_v23 = vpop.eup %6638 }
 0x87d   :  { %v6641_v8 = vpop.eup %6640  ;;  %v4042_v39 = vmul.f32 %v6639_v23, %v4038_v27  ;;  %6642 = vrcp.f32 %v4040_v61  ;;  %vm4047_vm4 = vweird.f32 %v6639_v23  ;;  %vm4076_vm13 = vweird.f32 %v4040_v61 }
 0x87e   :  { %v4057_v17 = vmul.f32 %v6641_v8, %v4039_v0  ;;  %6644 = vtanh.f32 %v4028_v25  ;;  %vm4062_vm5 = vweird.f32 %v6641_v8  ;;  %vm4048_vm8 = vmor %vm4046_vm6, %vm4047_vm4 }
 0x87f   :  { %v4043_v57 = vsub.f32 1.0, %v4042_v39  ;;  %vm4063_vm9 = vmor %vm4061_vm7, %vm4062_vm5 }
 0x880   :  { %v4058_v32 = vsub.f32 1.0, %v4057_v17 }
 0x881   :  { %v4044_v19 = vmul.f32 %v6639_v23, %v4043_v57 }
 0x882   :  { %v4059_v4 = vmul.f32 %v6641_v8, %v4058_v32  ;;  %v4082_v32 = vand.u32 2147483648, %v4040_v61 }
 0x883   :  { %v6643_v2 = vpop.eup %6642  ;;  %v4045_v14 = vadd.f32 %v6639_v23, %v4044_v19 }
 0x884   :  { %v4072_v41 = vmul.f32 %v6643_v2, %v4040_v61  ;;  %v4060_v6 = vadd.f32 %v6641_v8, %v4059_v4  ;;  %v6645_v11 = vpop.eup %6644  ;;  %vm4077_vm12 = vweird.f32 %v6643_v2  ;;  %v4083_v35 = vor.u32 1.1754944e-38, %v4082_v32 }
 0x885   :  { %v4049_v53 = vsel %vm4048_vm8, %v6639_v23, %v4045_v14  ;;  %v4080_v23 = vand.u32 2147483647, %v4040_v61  ;;  %vm4078_vm14 = vmor %vm4076_vm13, %vm4077_vm12 }
 0x886   :  { %v4073_v12 = vsub.f32 1.0, %v4072_v41  ;;  %v4054_v56 = vsel %vm4051_vm10, %v4053_v63, %v4049_v53  ;;  %v4064_v62 = vsel %vm4063_vm9, %v6641_v8, %v4060_v6 }
 0x887   :  { %v4069_v25 = vsel %vm4066_vm11, %v4068_v42, %v4064_v62  ;;  %v4088_v39 = vmul.f32 %v6645_v11, %v4054_v56  ;;  %vm4081_vm15 = vcmp.eq.f32.partialorder %v4080_v23, 8.507059e+37  ;;  %v7876_v11 = vld [vmem:[#allocation22_spill] sm:$0xff] }
 0x888   :  { %v4074_v17 = vmul.f32 %v6643_v2, %v4073_v12  ;;  %v4087_v57 = vmul.f32 %v4069_v25, %v7659_v16  ;;  %v7874_v16 = vld [vmem:[#allocation20_spill] sm:$0xff]  ;;  %v3335_v12 = vadd.f32 %v7876_v11, %v7565_v46 }
 0x889   :  { %v3277_v61 = vadd.f32 %v7874_v16, %v7555_v44 }
 0x88a   :  { %v7703_v27 = vadd.f32 %v4088_v39, %v4087_v57  ;;  %v4075_v0 = vadd.f32 %v6643_v2, %v4074_v17 }
 0x88c   :  { %6646 = vtanh.f32 %v7703_v27  ;;  %v4079_v52 = vsel %vm4078_vm14, %v6643_v2, %v4075_v0  ;;  %v3306_v2 = vadd.f32 %v7875_v9, %v7557_v43 }
 0x88d   :  { %v4084_v19 = vsel %vm4081_vm15, %v4083_v35, %v4079_v52 }
 0x892   :  { %v6647_v8 = vpop.eup %6646 }
 0x893   :  { %v4091_v37 = vmul.f32 %v6647_v8, %v4084_v19 }
 0x895   :  { %v4096_v4 = vpack.c.bf16 %v4091_v37, %v4091_v37  ;;  %v7877_v37 = vld [vmem:[#allocation23_spill] sm:$0xff] }
 0x897   :  { %4105 = vmatmul.bf16.vlgmr.msra.gmra.mxu0 %v4096_v4  ;;  %4118 = vmatmul.bf16.vlgmr.msra.gmra.mxu1 %v4096_v4 }
 0x898   :  { %4131 = vmatmul.bf16.vlgmr.msra.gmra.mxu2 %v4096_v4  ;;  %4144 = vmatmul.bf16.vlgmr.msra.gmra.mxu3 %v4096_v4  ;;  %v3364_v4 = vadd.f32 %v7877_v37, %v7864_v3 }
 0x899   :  { %4345 = vmatpush.bf16.msra.mxu0 %v7264_v51  ;;  %4358 = vmatpush.bf16.msra.mxu1 %v7266_v13 }
 0x89a   :  { %4371 = vmatpush.bf16.msra.mxu2 %v7268_v55  ;;  %4384 = vmatpush.bf16.msra.mxu3 %v7271_v38 }
 0x89d   :  { %4346 = vmatpush.bf16.msra.mxu0 %v7277_v10  ;;  %4359 = vmatpush.bf16.msra.mxu1 %v7282_v33 }
 0x89e   :  { %4372 = vmatpush.bf16.msra.mxu2 %v7289_v18  ;;  %4385 = vmatpush.bf16.msra.mxu3 %v7291_v29 }
 0x8a1   :  { %4347 = vmatpush.bf16.msra.mxu0 %v7297_v26  ;;  %4360 = vmatpush.bf16.msra.mxu1 %v7299_v1 }
 0x8a2   :  { %4373 = vmatpush.bf16.msra.mxu2 %v7305_v49  ;;  %4386 = vmatpush.bf16.msra.mxu3 %v7333_v22 }
 0x8a5   :  { %4348 = vmatpush.bf16.msra.mxu0 %v7312_v7  ;;  %4361 = vmatpush.bf16.msra.mxu1 %v7314_v59 }
 0x8a6   :  { %4374 = vmatpush.bf16.msra.mxu2 %v7331_v20  ;;  %4387 = vmatpush.bf16.msra.mxu3 %v7352_v50 }
 0x8a9   :  { %4349 = vmatpush.bf16.msra.mxu0 %v7344_v5  ;;  %4362 = vmatpush.bf16.msra.mxu1 %v7348_v24 }
 0x8aa   :  { %4375 = vmatpush.bf16.msra.mxu2 %v7350_v34  ;;  %4388 = vmatpush.bf16.msra.mxu3 %v7381_v60 }
 0x8ad   :  { %4350 = vmatpush.bf16.msra.mxu0 %v7373_v47  ;;  %4363 = vmatpush.bf16.msra.mxu1 %v7379_v40 }
 0x8ae   :  { %4376 = vmatpush.bf16.msra.mxu2 %v7389_v21  ;;  %4389 = vmatpush.bf16.msra.mxu3 %v7402_v15 }
 0x8b1   :  { %4351 = vmatpush.bf16.msra.mxu0 %v7396_v31  ;;  %4364 = vmatpush.bf16.msra.mxu1 %v7400_v54 }
 0x8b2   :  { %4377 = vmatpush.bf16.msra.mxu2 %v7405_v48  ;;  %4390 = vmatpush.bf16.msra.mxu3 %v7419_v30 }
 0x8b5   :  { %4352 = vmatpush.bf16.msra.mxu0 %v7411_v45  ;;  %4365 = vmatpush.bf16.msra.mxu1 %v7417_v28 }
 0x8b6   :  { %4378 = vmatpush.bf16.msra.mxu2 %v7422_v58  ;;  %4391 = vmatpush.bf16.msra.mxu3 %v7428_v36 }
 0x914   :  { %v4106_v14 = vpop.f32.mrf.mxu0  ;;  %v4119_v41 = vpop.f32.mrf.mxu1 }
 0x915   :  { %v4149_v63 = vadd.f32 %v4106_v14, %v3277_v61  ;;  %v4150_v6 = vadd.f32 %v4119_v41, %v3306_v2 }
 0x917   :  { %v6078_v42 = vmul.f32 -1.442695, %v4149_v63  ;;  %v6079_v53 = vmul.f32 -1.442695, %v4150_v6 }
 0x919   :  { %6648 = vpow2.f32 %v6078_v42 }
 0x91a   :  { %6650 = vpow2.f32 %v6079_v53 }
 0x91b   :  { %v4132_v56 = vpop.f32.mrf.mxu2  ;;  %v4145_v62 = vpop.f32.mrf.mxu3 }
 0x91c   :  { %v4151_v25 = vadd.f32 %v4132_v56, %v3335_v12  ;;  %v4108_v39 = vpop.f32.mrf.mxu0  ;;  %v4121_v17 = vpop.f32.mrf.mxu1  ;;  %v4152_v9 = vadd.f32 %v4145_v62, %v3364_v4 }
 0x91e   :  { %v6080_v57 = vmul.f32 -1.442695, %v4151_v25 }
 0x91f   :  { %v6649_v0 = vpop.eup %6648 }
 0x920   :  { %v6651_v32 = vpop.eup %6650  ;;  %v4162_v23 = vadd.f32 1.0, %v6649_v0  ;;  %6652 = vpow2.f32 %v6080_v57 }
 0x921   :  { %v4163_v52 = vadd.f32 1.0, %v6651_v32 }
 0x922   :  { %6654 = vrcp.f32 %v4162_v23  ;;  %v4176_v42 = vand.u32 2147483648, %v4162_v23  ;;  %v4174_v12 = vand.u32 2147483647, %v4162_v23  ;;  %vm4170_vm2 = vweird.f32 %v4162_v23 }
 0x923   :  { %6656 = vrcp.f32 %v4163_v52  ;;  %v4134_v35 = vpop.f32.mrf.mxu2  ;;  %v4147_v8 = vpop.f32.mrf.mxu3  ;;  %v4191_v53 = vand.u32 2147483648, %v4163_v52  ;;  %v4189_v25 = vand.u32 2147483647, %v4163_v52  ;;  %vm4185_vm3 = vweird.f32 %v4163_v52 }
 0x924   :  { %v4177_v57 = vor.u32 1.1754944e-38, %v4176_v42  ;;  %vm4175_vm6 = vcmp.eq.f32.partialorder %v4174_v12, 8.507059e+37 }
 0x925   :  { %v4192_v32 = vor.u32 1.1754944e-38, %v4191_v53  ;;  %vm4190_vm7 = vcmp.eq.f32.partialorder %v4189_v25, 8.507059e+37 }
 0x926   :  { %v6653_v19 = vpop.eup %6652 }
 0x927   :  { %v4164_v16 = vadd.f32 1.0, %v6653_v19 }
 0x928   :  { %v6655_v61 = vpop.eup %6654 }
 0x929   :  { %v6657_v2 = vpop.eup %6656  ;;  %v4166_v14 = vmul.f32 %v6655_v61, %v4162_v23  ;;  %6658 = vrcp.f32 %v4164_v16  ;;  %vm4171_vm0 = vweird.f32 %v6655_v61  ;;  %vm4200_vm9 = vweird.f32 %v4164_v16 }
 0x92a   :  { %v4181_v41 = vmul.f32 %v6657_v2, %v4163_v52  ;;  %6660 = vtanh.f32 %v4152_v9  ;;  %vm4186_vm1 = vweird.f32 %v6657_v2  ;;  %vm4172_vm4 = vmor %vm4170_vm2, %vm4171_vm0 }
 0x92b   :  { %v4167_v63 = vsub.f32 1.0, %v4166_v14  ;;  %vm4187_vm5 = vmor %vm4185_vm3, %vm4186_vm1 }
 0x92c   :  { %v4182_v6 = vsub.f32 1.0, %v4181_v41 }
 0x92d   :  { %v4168_v11 = vmul.f32 %v6655_v61, %v4167_v63 }
 0x92e   :  { %v4183_v56 = vmul.f32 %v6657_v2, %v4182_v6  ;;  %v4206_v6 = vand.u32 2147483648, %v4164_v16 }
 0x92f   :  { %v6659_v39 = vpop.eup %6658  ;;  %v4169_v17 = vadd.f32 %v6655_v61, %v4168_v11 }
 0x930   :  { %v4196_v62 = vmul.f32 %v6659_v39, %v4164_v16  ;;  %v4184_v0 = vadd.f32 %v6657_v2, %v4183_v56  ;;  %v6661_v8 = vpop.eup %6660  ;;  %vm4201_vm8 = vweird.f32 %v6659_v39  ;;  %v4207_v53 = vor.u32 1.1754944e-38, %v4206_v6 }
 0x931   :  { %v4173_v35 = vsel %vm4172_vm4, %v6655_v61, %v4169_v17  ;;  %v4204_v61 = vand.u32 2147483647, %v4164_v16  ;;  %vm4202_vm10 = vmor %vm4200_vm9, %vm4201_vm8 }
 0x932   :  { %v4197_v19 = vsub.f32 1.0, %v4196_v62  ;;  %v4178_v37 = vsel %vm4175_vm6, %v4177_v57, %v4173_v35  ;;  %v4188_v4 = vsel %vm4187_vm5, %v6657_v2, %v4184_v0 }
 0x933   :  { %v4193_v9 = vsel %vm4190_vm7, %v4192_v32, %v4188_v4  ;;  %v4212_v14 = vmul.f32 %v6661_v8, %v4178_v37  ;;  %vm4205_vm11 = vcmp.eq.f32.partialorder %v4204_v61, 8.507059e+37 }
 0x934   :  { %v4198_v41 = vmul.f32 %v6659_v39, %v4197_v19  ;;  %v4211_v63 = vmul.f32 %v4193_v9, %v7703_v27 }
 0x936   :  { %v7747_v23 = vadd.f32 %v4212_v14, %v4211_v63  ;;  %v4199_v52 = vadd.f32 %v6659_v39, %v4198_v41 }
 0x938   :  { %6662 = vtanh.f32 %v7747_v23  ;;  %v4203_v42 = vsel %vm4202_vm10, %v6659_v39, %v4199_v52 }
 0x939   :  { %v4208_v11 = vsel %vm4205_vm11, %v4207_v53, %v4203_v42 }
 0x93e   :  { %v6663_v2 = vpop.eup %6662 }
 0x93f   :  { %v4215_v12 = vmul.f32 %v6663_v2, %v4208_v11 }
 0x941   :  { %v4220_v56 = vpack.c.bf16 %v4215_v12, %v4215_v12 }
 0x943   :  { %4229 = vmatmul.bf16.vlgmr.msrb.gmra.mxu0 %v4220_v56  ;;  %4242 = vmatmul.bf16.vlgmr.msrb.gmra.mxu1 %v4220_v56 }
 0x944   :  { %4255 = vmatmul.bf16.vlgmr.msrb.gmra.mxu2 %v4220_v56  ;;  %4268 = vmatmul.bf16.vlgmr.msrb.gmra.mxu3 %v4220_v56 }
 0x945   :  { %4469 = vmatpush.bf16.msrb.mxu0 %v7264_v51  ;;  %4482 = vmatpush.bf16.msrb.mxu1 %v7266_v13  ;;  %v7878_v51 = vld [vmem:[#allocation24_spill] sm:$0xff] }
 0x946   :  { %4495 = vmatpush.bf16.msrb.mxu2 %v7268_v55  ;;  %4508 = vmatpush.bf16.msrb.mxu3 %v7271_v38  ;;  %v3279_v13 = vadd.f32 %v7878_v51, %v7555_v44  ;;  %v7879_v55 = vld [vmem:[#allocation25_spill] sm:$0xff] }
 0x947   :  { %v3308_v38 = vadd.f32 %v7879_v55, %v7557_v43 }
 0x949   :  { %4470 = vmatpush.bf16.msrb.mxu0 %v7277_v10  ;;  %4483 = vmatpush.bf16.msrb.mxu1 %v7282_v33 }
 0x94a   :  { %4496 = vmatpush.bf16.msrb.mxu2 %v7289_v18  ;;  %4509 = vmatpush.bf16.msrb.mxu3 %v7291_v29 }
 0x94d   :  { %4471 = vmatpush.bf16.msrb.mxu0 %v7297_v26  ;;  %4484 = vmatpush.bf16.msrb.mxu1 %v7299_v1 }
 0x94e   :  { %4497 = vmatpush.bf16.msrb.mxu2 %v7305_v49  ;;  %4510 = vmatpush.bf16.msrb.mxu3 %v7333_v22  ;;  %v7880_v49 = vld [vmem:[#allocation26_spill] sm:$0xff] }
 0x951   :  { %4472 = vmatpush.bf16.msrb.mxu0 %v7312_v7  ;;  %4485 = vmatpush.bf16.msrb.mxu1 %v7314_v59  ;;  %v3337_v7 = vadd.f32 %v7880_v49, %v7565_v46 }
 0x952   :  { %4498 = vmatpush.bf16.msrb.mxu2 %v7331_v20  ;;  %4511 = vmatpush.bf16.msrb.mxu3 %v7352_v50 }
 0x955   :  { %4473 = vmatpush.bf16.msrb.mxu0 %v7344_v5  ;;  %4486 = vmatpush.bf16.msrb.mxu1 %v7348_v24 }
 0x956   :  { %4499 = vmatpush.bf16.msrb.mxu2 %v7350_v34  ;;  %4512 = vmatpush.bf16.msrb.mxu3 %v7381_v60 }
 0x959   :  { %4474 = vmatpush.bf16.msrb.mxu0 %v7373_v47  ;;  %4487 = vmatpush.bf16.msrb.mxu1 %v7379_v40 }
 0x95a   :  { %4500 = vmatpush.bf16.msrb.mxu2 %v7389_v21  ;;  %4513 = vmatpush.bf16.msrb.mxu3 %v7402_v15  ;;  %v7881_v15 = vld [vmem:[#allocation27_spill] sm:$0xff] }
 0x95d   :  { %4475 = vmatpush.bf16.msrb.mxu0 %v7396_v31  ;;  %4488 = vmatpush.bf16.msrb.mxu1 %v7400_v54 }
 0x95e   :  { %4501 = vmatpush.bf16.msrb.mxu2 %v7405_v48  ;;  %4514 = vmatpush.bf16.msrb.mxu3 %v7419_v30  ;;  %v3366_v48 = vadd.f32 %v7881_v15, %v7864_v3 }
 0x961   :  { %4476 = vmatpush.bf16.msrb.mxu0 %v7411_v45  ;;  %4489 = vmatpush.bf16.msrb.mxu1 %v7417_v28 }
 0x962   :  { %4502 = vmatpush.bf16.msrb.mxu2 %v7422_v58  ;;  %4515 = vmatpush.bf16.msrb.mxu3 %v7428_v36 }
 0x9c0   :  { %v4230_v10 = vpop.f32.mrf.mxu0  ;;  %v4243_v33 = vpop.f32.mrf.mxu1 }
 0x9c1   :  { %v4273_v18 = vadd.f32 %v4230_v10, %v3279_v13  ;;  %v4274_v29 = vadd.f32 %v4243_v33, %v3308_v38 }
 0x9c3   :  { %v6081_v26 = vmul.f32 -1.442695, %v4273_v18  ;;  %v6082_v1 = vmul.f32 -1.442695, %v4274_v29 }
 0x9c5   :  { %6664 = vpow2.f32 %v6081_v26  ;;  %v7883_v26 = vld [vmem:[#allocation29_spill] sm:$0xff] }
 0x9c6   :  { %6666 = vpow2.f32 %v6082_v1  ;;  %v3311_v1 = vadd.f32 %v7883_v26, %v7557_v43 }
 0x9c7   :  { %v4256_v59 = vpop.f32.mrf.mxu2  ;;  %v4269_v20 = vpop.f32.mrf.mxu3 }
 0x9c8   :  { %v4275_v22 = vadd.f32 %v4256_v59, %v3337_v7  ;;  %v4232_v5 = vpop.f32.mrf.mxu0  ;;  %v4245_v24 = vpop.f32.mrf.mxu1  ;;  %v4276_v30 = vadd.f32 %v4269_v20, %v3366_v48 }
 0x9c9   :  { %v7884_v24 = vld [vmem:[#allocation30_spill] sm:$0xff] }
 0x9ca   :  { %v6083_v34 = vmul.f32 -1.442695, %v4275_v22 }
 0x9cb   :  { %v6665_v50 = vpop.eup %6664 }
 0x9cc   :  { %v6667_v47 = vpop.eup %6666  ;;  %v4286_v40 = vadd.f32 1.0, %v6665_v50  ;;  %6668 = vpow2.f32 %v6083_v34  ;;  %v3340_v34 = vadd.f32 %v7884_v24, %v7565_v46 }
 0x9cd   :  { %v4287_v60 = vadd.f32 1.0, %v6667_v47 }
 0x9ce   :  { %6670 = vrcp.f32 %v4286_v40  ;;  %v4300_v39 = vand.u32 2147483648, %v4286_v40  ;;  %v4298_v57 = vand.u32 2147483647, %v4286_v40  ;;  %vm4294_vm14 = vweird.f32 %v4286_v40 }
 0x9cf   :  { %6672 = vrcp.f32 %v4287_v60  ;;  %v4258_v21 = vpop.f32.mrf.mxu2  ;;  %v4271_v31 = vpop.f32.mrf.mxu3  ;;  %v4315_v17 = vand.u32 2147483648, %v4287_v60  ;;  %v4313_v32 = vand.u32 2147483647, %v4287_v60  ;;  %vm4309_vm15 = vweird.f32 %v4287_v60 }
 0x9d0   :  { %v4301_v37 = vor.u32 1.1754944e-38, %v4300_v39  ;;  %vm4299_vm2 = vcmp.eq.f32.partialorder %v4298_v57, 8.507059e+37 }
 0x9d1   :  { %v4316_v9 = vor.u32 1.1754944e-38, %v4315_v17  ;;  %vm4314_vm3 = vcmp.eq.f32.partialorder %v4313_v32, 8.507059e+37 }
 0x9d2   :  { %v6669_v54 = vpop.eup %6668 }
 0x9d3   :  { %v4288_v45 = vadd.f32 1.0, %v6669_v54 }
 0x9d4   :  { %v6671_v28 = vpop.eup %6670 }
 0x9d5   :  { %v6673_v58 = vpop.eup %6672  ;;  %v4290_v36 = vmul.f32 %v6671_v28, %v4286_v40  ;;  %6674 = vrcp.f32 %v4288_v45  ;;  %vm4295_vm12 = vweird.f32 %v6671_v28  ;;  %v4330_v56 = vand.u32 2147483648, %v4288_v45 }
 0x9d6   :  { %v4305_v27 = vmul.f32 %v6673_v58, %v4287_v60  ;;  %6676 = vtanh.f32 %v4276_v30  ;;  %vm4310_vm13 = vweird.f32 %v6673_v58  ;;  %vm4296_vm0 = vmor %vm4294_vm14, %vm4295_vm12  ;;  %vm4324_vm5 = vweird.f32 %v4288_v45 }
 0x9d7   :  { %v4291_v16 = vsub.f32 1.0, %v4290_v36  ;;  %vm4311_vm1 = vmor %vm4309_vm15, %vm4310_vm13  ;;  %v4328_v51 = vand.u32 2147483647, %v4288_v45  ;;  %v4331_v55 = vor.u32 1.1754944e-38, %v4330_v56  ;;  %v7885_v36 = vld [vmem:[#allocation31_spill] sm:$0xff] }
 0x9d8   :  { %v4306_v25 = vsub.f32 1.0, %v4305_v27  ;;  %v3369_v27 = vadd.f32 %v7885_v36, %v7864_v3 }
 0x9d9   :  { %v4292_v62 = vmul.f32 %v6671_v28, %v4291_v16  ;;  %vm4329_vm7 = vcmp.eq.f32.partialorder %v4328_v51, 8.507059e+37 }
 0x9da   :  { %v4307_v0 = vmul.f32 %v6673_v58, %v4306_v25 }
 0x9db   :  { %v6675_v35 = vpop.eup %6674  ;;  %v4293_v8 = vadd.f32 %v6671_v28, %v4292_v62 }
 0x9dc   :  { %v4320_v19 = vmul.f32 %v6675_v35, %v4288_v45  ;;  %v4308_v4 = vadd.f32 %v6673_v58, %v4307_v0  ;;  %v6677_v41 = vpop.eup %6676  ;;  %vm4325_vm4 = vweird.f32 %v6675_v35 }
 0x9dd   :  { %v4297_v14 = vsel %vm4296_vm0, %v6671_v28, %v4293_v8  ;;  %vm4326_vm6 = vmor %vm4324_vm5, %vm4325_vm4 }
 0x9de   :  { %v4321_v63 = vsub.f32 1.0, %v4320_v19  ;;  %v4302_v52 = vsel %vm4299_vm2, %v4301_v37, %v4297_v14  ;;  %v4312_v6 = vsel %vm4311_vm1, %v6673_v58, %v4308_v4 }
 0x9df   :  { %v4317_v61 = vsel %vm4314_vm3, %v4316_v9, %v4312_v6  ;;  %v4336_v42 = vmul.f32 %v6677_v41, %v4302_v52 }
 0x9e0   :  { %v4322_v53 = vmul.f32 %v6675_v35, %v4321_v63  ;;  %v4335_v2 = vmul.f32 %v4317_v61, %v7747_v23  ;;  %v7882_v23 = vld [vmem:[#allocation28_spill] sm:$0xff] }
 0x9e1   :  { %v3282_v29 = vadd.f32 %v7882_v23, %v7555_v44 }
 0x9e2   :  { %v7791_v11 = vadd.f32 %v4336_v42, %v4335_v2  ;;  %v4323_v12 = vadd.f32 %v6675_v35, %v4322_v53 }
 0x9e4   :  { %6678 = vtanh.f32 %v7791_v11  ;;  %v4327_v13 = vsel %vm4326_vm6, %v6675_v35, %v4323_v12 }
 0x9e5   :  { %v4332_v10 = vsel %vm4329_vm7, %v4331_v55, %v4327_v13 }
 0x9ea   :  { %v6679_v38 = vpop.eup %6678 }
 0x9eb   :  { %v4339_v33 = vmul.f32 %v6679_v38, %v4332_v10 }
 0x9ed   :  { %v4344_v18 = vpack.c.bf16 %v4339_v33, %v4339_v33 }
 0x9ef   :  { %4353 = vmatmul.bf16.vlgmr.msra.gmra.mxu0 %v4344_v18  ;;  %4366 = vmatmul.bf16.vlgmr.msra.gmra.mxu1 %v4344_v18 }
 0x9f0   :  { %4379 = vmatmul.bf16.vlgmr.msra.gmra.mxu2 %v4344_v18  ;;  %4392 = vmatmul.bf16.vlgmr.msra.gmra.mxu3 %v4344_v18 }
 0xa6c   :  { %v4354_v49 = vpop.f32.mrf.mxu0  ;;  %v4367_v7 = vpop.f32.mrf.mxu1 }
 0xa6d   :  { %v4397_v59 = vadd.f32 %v4354_v49, %v3282_v29  ;;  %v4398_v20 = vadd.f32 %v4367_v7, %v3311_v1 }
 0xa6f   :  { %v6084_v22 = vmul.f32 -1.442695, %v4397_v59  ;;  %v6085_v5 = vmul.f32 -1.442695, %v4398_v20 }
 0xa71   :  { %6680 = vpow2.f32 %v6084_v22  ;;  %v7887_v22 = vld [vmem:[#allocation33_spill] sm:$0xff] }
 0xa72   :  { %6682 = vpow2.f32 %v6085_v5  ;;  %v3313_v5 = vadd.f32 %v7887_v22, %v7557_v43 }
 0xa73   :  { %v4380_v50 = vpop.f32.mrf.mxu2  ;;  %v4393_v47 = vpop.f32.mrf.mxu3 }
 0xa74   :  { %v4399_v40 = vadd.f32 %v4380_v50, %v3340_v34  ;;  %v4356_v60 = vpop.f32.mrf.mxu0  ;;  %v4369_v21 = vpop.f32.mrf.mxu1  ;;  %v4400_v39 = vadd.f32 %v4393_v47, %v3369_v27 }
 0xa75   :  { %v7888_v21 = vld [vmem:[#allocation34_spill] sm:$0xff] }
 0xa76   :  { %v6086_v31 = vmul.f32 -1.442695, %v4399_v40 }
 0xa77   :  { %v6681_v54 = vpop.eup %6680 }
 0xa78   :  { %v6683_v15 = vpop.eup %6682  ;;  %v4410_v48 = vadd.f32 1.0, %v6681_v54  ;;  %6684 = vpow2.f32 %v6086_v31  ;;  %v3342_v31 = vadd.f32 %v7888_v21, %v7565_v46 }
 0xa79   :  { %v4411_v45 = vadd.f32 1.0, %v6683_v15 }
 0xa7a   :  { %6686 = vrcp.f32 %v4410_v48  ;;  %v4424_v35 = vand.u32 2147483648, %v4410_v48  ;;  %v4422_v37 = vand.u32 2147483647, %v4410_v48  ;;  %vm4418_vm10 = vweird.f32 %v4410_v48 }
 0xa7b   :  { %6688 = vrcp.f32 %v4411_v45  ;;  %v4382_v28 = vpop.f32.mrf.mxu2  ;;  %v4395_v30 = vpop.f32.mrf.mxu3  ;;  %v4439_v8 = vand.u32 2147483648, %v4411_v45  ;;  %v4437_v9 = vand.u32 2147483647, %v4411_v45  ;;  %vm4433_vm11 = vweird.f32 %v4411_v45 }
 0xa7c   :  { %v4425_v52 = vor.u32 1.1754944e-38, %v4424_v35  ;;  %vm4423_vm14 = vcmp.eq.f32.partialorder %v4422_v37, 8.507059e+37 }
 0xa7d   :  { %v4440_v61 = vor.u32 1.1754944e-38, %v4439_v8  ;;  %vm4438_vm15 = vcmp.eq.f32.partialorder %v4437_v9, 8.507059e+37 }
 0xa7e   :  { %v6685_v58 = vpop.eup %6684 }
 0xa7f   :  { %v4412_v16 = vadd.f32 1.0, %v6685_v58 }
 0xa80   :  { %v6687_v25 = vpop.eup %6686 }
 0xa81   :  { %v6689_v17 = vpop.eup %6688  ;;  %v4414_v62 = vmul.f32 %v6687_v25, %v4410_v48  ;;  %6690 = vrcp.f32 %v4412_v16  ;;  %vm4419_vm8 = vweird.f32 %v6687_v25  ;;  %v4454_v18 = vand.u32 2147483648, %v4412_v16 }
 0xa82   :  { %v4429_v57 = vmul.f32 %v6689_v17, %v4411_v45  ;;  %6692 = vtanh.f32 %v4400_v39  ;;  %vm4434_vm9 = vweird.f32 %v6689_v17  ;;  %vm4420_vm12 = vmor %vm4418_vm10, %vm4419_vm8  ;;  %vm4448_vm1 = vweird.f32 %v4412_v16  ;;  %v7889_v39 = vld [vmem:[#allocation35_spill] sm:$0xff] }
 0xa83   :  { %v4415_v0 = vsub.f32 1.0, %v4414_v62  ;;  %vm4435_vm13 = vmor %vm4433_vm11, %vm4434_vm9  ;;  %v4452_v23 = vand.u32 2147483647, %v4412_v16  ;;  %v4455_v26 = vor.u32 1.1754944e-38, %v4454_v18  ;;  %v3371_v46 = vadd.f32 %v7889_v39, %v7864_v3 }
 0xa84   :  { %v4430_v32 = vsub.f32 1.0, %v4429_v57 }
 0xa85   :  { %v4416_v19 = vmul.f32 %v6687_v25, %v4415_v0  ;;  %vm4453_vm3 = vcmp.eq.f32.partialorder %v4452_v23, 8.507059e+37 }
 0xa86   :  { %v4431_v4 = vmul.f32 %v6689_v17, %v4430_v32 }
 0xa87   :  { %v6691_v14 = vpop.eup %6690  ;;  %v4417_v41 = vadd.f32 %v6687_v25, %v4416_v19 }
 0xa88   :  { %v4444_v63 = vmul.f32 %v6691_v14, %v4412_v16  ;;  %v4432_v6 = vadd.f32 %v6689_v17, %v4431_v4  ;;  %v6693_v53 = vpop.eup %6692  ;;  %vm4449_vm0 = vweird.f32 %v6691_v14 }
 0xa89   :  { %v4421_v42 = vsel %vm4420_vm12, %v6687_v25, %v4417_v41  ;;  %vm4450_vm2 = vmor %vm4448_vm1, %vm4449_vm0 }
 0xa8a   :  { %v4445_v2 = vsub.f32 1.0, %v4444_v63  ;;  %v4426_v12 = vsel %vm4423_vm14, %v4425_v52, %v4421_v42  ;;  %v4436_v56 = vsel %vm4435_vm13, %v6689_v17, %v4432_v6 }
 0xa8b   :  { %v4441_v51 = vsel %vm4438_vm15, %v4440_v61, %v4436_v56  ;;  %v4460_v13 = vmul.f32 %v6693_v53, %v4426_v12 }
 0xa8c   :  { %v4446_v55 = vmul.f32 %v6691_v14, %v4445_v2  ;;  %v4459_v38 = vmul.f32 %v4441_v51, %v7791_v11  ;;  %v7886_v11 = vld [vmem:[#allocation32_spill] sm:$0xff] }
 0xa8d   :  { %v3284_v20 = vadd.f32 %v7886_v11, %v7555_v44 }
 0xa8e   :  { %v7803_v10 = vadd.f32 %v4460_v13, %v4459_v38  ;;  %v4447_v33 = vadd.f32 %v6691_v14, %v4446_v55 }
 0xa90   :  { %6694 = vtanh.f32 %v7803_v10  ;;  %v4451_v29 = vsel %vm4450_vm2, %v6691_v14, %v4447_v33 }
 0xa91   :  { %v4456_v49 = vsel %vm4453_vm3, %v4455_v26, %v4451_v29 }
 0xa96   :  { %v6695_v1 = vpop.eup %6694 }
 0xa97   :  { %v4463_v7 = vmul.f32 %v6695_v1, %v4456_v49 }
 0xa99   :  { %v4468_v59 = vpack.c.bf16 %v4463_v7, %v4463_v7 }
 0xa9b   :  { %4477 = vmatmul.bf16.vlgmr.msrb.gmra.mxu0 %v4468_v59  ;;  %4490 = vmatmul.bf16.vlgmr.msrb.gmra.mxu1 %v4468_v59 }
 0xa9c   :  { %4503 = vmatmul.bf16.vlgmr.msrb.gmra.mxu2 %v4468_v59  ;;  %4516 = vmatmul.bf16.vlgmr.msrb.gmra.mxu3 %v4468_v59 }
 0xb18   :  { %v4478_v24 = vpop.f32.mrf.mxu0  ;;  %v4491_v34 = vpop.f32.mrf.mxu1 }
 0xb19   :  { %v4521_v50 = vadd.f32 %v4478_v24, %v3284_v20  ;;  %v4522_v47 = vadd.f32 %v4491_v34, %v3313_v5 }
 0xb1b   :  { %v6087_v40 = vmul.f32 -1.442695, %v4521_v50  ;;  %v6088_v60 = vmul.f32 -1.442695, %v4522_v47 }
 0xb1d   :  { %6696 = vpow2.f32 %v6087_v40 }
 0xb1e   :  { %6698 = vpow2.f32 %v6088_v60 }
 0xb1f   :  { %v4504_v54 = vpop.f32.mrf.mxu2  ;;  %v4517_v15 = vpop.f32.mrf.mxu3 }
 0xb20   :  { %v4523_v48 = vadd.f32 %v4504_v54, %v3342_v31  ;;  %v4480_v45 = vpop.f32.mrf.mxu0  ;;  %v4493_v28 = vpop.f32.mrf.mxu1  ;;  %v4524_v57 = vadd.f32 %v4517_v15, %v3371_v46 }
 0xb22   :  { %v6089_v44 = vmul.f32 -1.442695, %v4523_v48 }
 0xb23   :  { %v6697_v30 = vpop.eup %6696 }
 0xb24   :  { %v6699_v58 = vpop.eup %6698  ;;  %v4534_v43 = vadd.f32 1.0, %v6697_v30  ;;  %6700 = vpow2.f32 %v6089_v44 }
 0xb25   :  { %v4535_v36 = vadd.f32 1.0, %v6699_v58 }
 0xb26   :  { %6702 = vrcp.f32 %v4534_v43  ;;  %v4548_v37 = vand.u32 2147483648, %v4534_v43  ;;  %v4546_v14 = vand.u32 2147483647, %v4534_v43  ;;  %vm4542_vm6 = vweird.f32 %v4534_v43 }
 0xb27   :  { %6704 = vrcp.f32 %v4535_v36  ;;  %v4506_v27 = vpop.f32.mrf.mxu2  ;;  %v4519_v16 = vpop.f32.mrf.mxu3  ;;  %v4563_v4 = vand.u32 2147483648, %v4535_v36  ;;  %v4561_v63 = vand.u32 2147483647, %v4535_v36  ;;  %vm4557_vm7 = vweird.f32 %v4535_v36 }
 0xb28   :  { %v4549_v61 = vor.u32 1.1754944e-38, %v4548_v37  ;;  %vm4547_vm10 = vcmp.eq.f32.partialorder %v4546_v14, 8.507059e+37 }
 0xb29   :  { %v4564_v53 = vor.u32 1.1754944e-38, %v4563_v4  ;;  %vm4562_vm11 = vcmp.eq.f32.partialorder %v4561_v63, 8.507059e+37 }
 0xb2a   :  { %v6701_v25 = vpop.eup %6700 }
 0xb2b   :  { %v4536_v17 = vadd.f32 1.0, %v6701_v25 }
 0xb2c   :  { %v6703_v62 = vpop.eup %6702 }
 0xb2d   :  { %v6705_v0 = vpop.eup %6704  ;;  %v4538_v32 = vmul.f32 %v6703_v62, %v4534_v43  ;;  %6706 = vrcp.f32 %v4536_v17  ;;  %vm4543_vm4 = vweird.f32 %v6703_v62  ;;  %v4578_v26 = vand.u32 2147483648, %v4536_v17 }
 0xb2e   :  { %v4553_v35 = vmul.f32 %v6705_v0, %v4535_v36  ;;  %6708 = vtanh.f32 %v4524_v57  ;;  %vm4558_vm5 = vweird.f32 %v6705_v0  ;;  %vm4544_vm8 = vmor %vm4542_vm6, %vm4543_vm4  ;;  %vm4572_vm13 = vweird.f32 %v4536_v17 }
 0xb2f   :  { %v4539_v8 = vsub.f32 1.0, %v4538_v32  ;;  %vm4559_vm9 = vmor %vm4557_vm7, %vm4558_vm5  ;;  %v4576_v1 = vand.u32 2147483647, %v4536_v17  ;;  %v4579_v7 = vor.u32 1.1754944e-38, %v4578_v26 }
 0xb30   :  { %v4554_v19 = vsub.f32 1.0, %v4553_v35 }
 0xb31   :  { %v4540_v9 = vmul.f32 %v6703_v62, %v4539_v8  ;;  %vm4577_vm15 = vcmp.eq.f32.partialorder %v4576_v1, 8.507059e+37 }
 0xb32   :  { %v4555_v41 = vmul.f32 %v6705_v0, %v4554_v19 }
 0xb33   :  { %v6707_v52 = vpop.eup %6706  ;;  %v4541_v3 = vadd.f32 %v6703_v62, %v4540_v9 }
 0xb34   :  { %v4568_v6 = vmul.f32 %v6707_v52, %v4536_v17  ;;  %v4556_v42 = vadd.f32 %v6705_v0, %v4555_v41  ;;  %v6709_v12 = vpop.eup %6708  ;;  %vm4573_vm12 = vweird.f32 %v6707_v52 }
 0xb35   :  { %v4545_v2 = vsel %vm4544_vm8, %v6703_v62, %v4541_v3  ;;  %vm4574_vm14 = vmor %vm4572_vm13, %vm4573_vm12 }
 0xb36   :  { %v4569_v56 = vsub.f32 1.0, %v4568_v6  ;;  %v4550_v51 = vsel %vm4547_vm10, %v4549_v61, %v4545_v2  ;;  %v4560_v13 = vsel %vm4559_vm9, %v6705_v0, %v4556_v42 }
 0xb37   :  { %v4565_v55 = vsel %vm4562_vm11, %v4564_v53, %v4560_v13  ;;  %v4584_v38 = vmul.f32 %v6709_v12, %v4550_v51 }
 0xb38   :  { %v4570_v33 = vmul.f32 %v6707_v52, %v4569_v56  ;;  %v4583_v18 = vmul.f32 %v4565_v55, %v7803_v10 }
 0xb3a   :  { %v4585_v23 = vadd.f32 %v4584_v38, %v4583_v18  ;;  %v4571_v29 = vadd.f32 %v6707_v52, %v4570_v33 }
 0xb3c   :  { %6710 = vtanh.f32 %v4585_v23  ;;  %v4575_v49 = vsel %vm4574_vm14, %v6707_v52, %v4571_v29 }
 0xb3d   :  { %v4580_v11 = vsel %vm4577_vm15, %v4579_v7, %v4575_v49 }
 0xb42   :  { %v6711_v59 = vpop.eup %6710 }
 0xb43   :  { %v4587_v20 = vmul.f32 %v6711_v59, %v4580_v11 }
 0xb45   :  { %4588 = vst [vmem:[%s7825_s7] sm:$0xff] %v4587_v20 }
 0xb46   :  { %4593 = vsyncpa [#allocation5], 1 }
 0xb47   :  { %4594 = vsyncpa [#allocation7], 1 }

</bundles_post_ra>
